<compile_context>
chip_gen: v7x
topology: tpu7x:2x2x1
jax: 0.10.0
libtpu: 0.0.40
codegen_flags: <defaults>
</compile_context>

<pallas_src>
import jax
import jax.numpy as jnp
from jax import lax
from jax.experimental import pallas as pl
from jax.experimental.pallas import tpu as pltpu
import numpy as np

_SIGN_BIT = -(1 << 31)        # 0x80000000 bit pattern as int32
_LOW_31 = (1 << 31) - 1       # 0x7FFFFFFF


# ---------------------------------------------------------------------------
# Fused MCA kernel: TB batch elements per grid step.
#   x_ref : (TB*C, HW) f32  (rows = batch-major then channel; lanes = H*W)
#   w1    : (Cr, C), b1: (Cr, 1)   -- fc1 (1x1 conv) as a matrix
#   w2    : (C, Cr), b2: (C, 1)    -- fc2 (1x1 conv) as a matrix
#   o_ref : (C, TB) f32  column t = MCA output for batch element (step*TB + t)
# ---------------------------------------------------------------------------
def mca_kernel(x_ref, w1_ref, b1_ref, w2_ref, b2_ref, o_ref):
    x = x_ref[...]                                   # (R, HW), R = TB*C
    R, HW = x.shape
    C = w1_ref.shape[1]
    TB = R // C
    k = (HW + 1) // 2                                # rank of the lower median

    # --- avg / max pooling: lane-axis reductions ---
    mean = jnp.sum(x, axis=1, keepdims=True) * jnp.float32(1.0 / HW)   # (R, 1)
    mx = jnp.max(x, axis=1, keepdims=True)                             # (R, 1)

    # --- median pooling: bitwise binary search (radix select), 32 steps ---
    # Map f32 -> order-monotone signed int32 key: positives keep their bits,
    # negatives flip the 31 non-sign bits.  The k-th smallest key is found bit
    # by bit (MSB first, in "unsigned" bit space); counts are done with the
    # signed view (key <= candidate) so only signed int32 compares are needed.
    # TODO(synk): NaN inputs: torch.median propagates NaN, here NaNs just sort
    # to an extreme of the key order instead.
    u = pltpu.bitcast(x, jnp.int32)                                    # raw bits
    ks = jnp.where(u < 0, u ^ jnp.int32(_LOW_31), u)                   # monotone key
    ans_u = jnp.zeros((R, 1), dtype=jnp.int32)                         # answer bits
    k_f = jnp.float32(k)
    for b in range(31, -1, -1):                                        # unrolled
        low_mask = (1 << b) - 1
        bit_pat = _SIGN_BIT if b == 31 else (1 << b)
        cand_s = (ans_u | jnp.int32(low_mask)) ^ jnp.int32(_SIGN_BIT)  # signed view
        cnt = jnp.sum((ks <= cand_s).astype(jnp.float32), axis=1, keepdims=True)
        ans_u = jnp.where(cnt >= k_f, ans_u, ans_u | jnp.int32(bit_pat))
    ans_s = ans_u ^ jnp.int32(_SIGN_BIT)                               # key of median
    med = jnp.min(jnp.where(ks >= ans_s, x, jnp.inf), axis=1, keepdims=True)  # (R, 1)

    # --- shared MLP: ONE matmul pair for all TB elements x 3 pool types ---
    # Pooled RHS P: (C, 3*TB), columns ordered [means(TB) | maxs(TB) | medians(TB)].
    cols = []
    for pool in (mean, mx, med):
        for t in range(TB):
            cols.append(pool[t * C:(t + 1) * C, :])                    # (C, 1)
    P = jnp.concatenate(cols, axis=1)                                  # (C, 3*TB)
    h = jnp.dot(w1_ref[...], P, preferred_element_type=jnp.float32) + b1_ref[...]
    h = jnp.maximum(h, 0.0)                                            # (Cr, 3*TB)
    a = jnp.dot(w2_ref[...], h, preferred_element_type=jnp.float32) + b2_ref[...]
    s = jax.nn.sigmoid(a)                                              # (C, 3*TB)
    o_ref[...] = s[:, 0:TB] + s[:, TB:2 * TB] + s[:, 2 * TB:3 * TB]    # (C, TB)


# ---------------------------------------------------------------------------
# Wrapper: pure reshapes on the input (no NCHW transpose, no extra HBM pass).
# ---------------------------------------------------------------------------
def mca_forward(x_nchw, params, tb=4):
    B, C, H, W = x_nchw.shape
    HW = H * W
    Cr = params["w1"].shape[0]
    TB = min(tb, B)
    assert B % TB == 0, "demo assumes TB divides B"
    assert (TB * C) % 8 == 0 and HW % 128 == 0, "demo assumes aligned tiles"
    xf = x_nchw.reshape(B * C, HW)                   # NCHW flatten: lanes = H*W

    out = pl.pallas_call(
        mca_kernel,
        out_shape=jax.ShapeDtypeStruct((B // TB, C, TB), jnp.float32),
        grid_spec=pltpu.PrefetchScalarGridSpec(
            num_scalar_prefetch=0,
            grid=(B // TB,),
            in_specs=[
                pl.BlockSpec((TB * C, HW), lambda b: (b, 0)),
                pl.BlockSpec((Cr, C), lambda b: (0, 0)),
                pl.BlockSpec((Cr, 1), lambda b: (0, 0)),
                pl.BlockSpec((C, Cr), lambda b: (0, 0)),
                pl.BlockSpec((C, 1), lambda b: (0, 0)),
            ],
            out_specs=pl.BlockSpec((None, C, TB), lambda b: (b, 0, 0)),
        ),
        compiler_params=pltpu.CompilerParams(dimension_semantics=("parallel",)),
    )(xf, params["w1"], params["b1"], params["w2"], params["b2"])
    # (B//TB, C, TB) -> (B, C, 1, 1)   (tiny host-side transpose of the result)
    return out.transpose(0, 2, 1).reshape(B, C, 1, 1)


# ---------------------------------------------------------------------------
# Deterministic synthetic parameters (fc1 / fc2 are 1x1 convs -> plain matrices).
# ---------------------------------------------------------------------------
def init_params(key, C, Cr):
    ks = jax.random.split(key, 4)
    w1 = jax.random.normal(ks[0], (Cr, C), jnp.float32) / np.sqrt(C)
    b1 = 0.1 * jax.random.normal(ks[1], (Cr, 1), jnp.float32)
    w2 = jax.random.normal(ks[2], (C, Cr), jnp.float32) / np.sqrt(Cr)
    b2 = 0.1 * jax.random.normal(ks[3], (C, 1), jnp.float32)
    return dict(w1=w1, b1=b1, w2=w2, b2=b2)


# Pure-JAX reference (matches the PyTorch MCA forward, incl. lower median).
def mca_reference(x_nchw, params):
    B, C, H, W = x_nchw.shape
    HW = H * W
    xf = x_nchw.reshape(B, C, HW)
    avg = jnp.mean(xf, axis=2)                                  # (B, C)
    mx = jnp.max(xf, axis=2)                                    # (B, C)
    med = jnp.sort(xf, axis=2)[:, :, (HW - 1) // 2]             # lower median
    hp = lax.Precision.HIGHEST

    def branch(p):
        h = jax.nn.relu(jnp.einsum("bc,rc->br", p, params["w1"], precision=hp)
                        + params["b1"][:, 0])
        return jax.nn.sigmoid(jnp.einsum("br,cr->bc", h, params["w2"], precision=hp)
                              + params["b2"][:, 0])

    out = branch(avg) + branch(mx) + branch(med)
    return out.reshape(B, C, 1, 1)


if __name__ == "__main__":
    B, C, H, W, Cr = 16, 16, 16, 16, 4               # H*W = 256, TB = 4 -> grid (4,)
    key = jax.random.PRNGKey(0)
    k_x, k_p = jax.random.split(key)
    x = jax.random.normal(k_x, (B, C, H, W), jnp.float32)       # NCHW like PyTorch
    params = init_params(k_p, C, Cr)

    out = mca_forward(x, params, tb=4)
    out = jax.block_until_ready(out)

    ref = mca_reference(x, params)
    assert out.shape == (B, C, 1, 1)
    assert np.allclose(np.asarray(out), np.asarray(ref), rtol=1e-2, atol=1e-2), \
        float(np.max(np.abs(np.asarray(out) - np.asarray(ref))))
    print("KERNEL_OK")
</pallas_src>

<mosaic_0001>
module attributes {stable_mosaic.version = 11 : i64} {
  func.func @mca_kernel(%arg0: i32, %arg1: memref<64x256xf32, #tpu.memory_space<vmem>>, %arg2: memref<4x16xf32, #tpu.memory_space<vmem>>, %arg3: memref<4x1xf32, #tpu.memory_space<vmem>>, %arg4: memref<16x4xf32, #tpu.memory_space<vmem>>, %arg5: memref<16x1xf32, #tpu.memory_space<vmem>>, %arg6: memref<1x16x4xf32, #tpu.memory_space<vmem>>) attributes {dimension_semantics = [#tpu.dimension_semantics<parallel>], iteration_bounds = array<i64: 4>, scalar_prefetch = 0 : i64, scratch_operands = 0 : i64, tpu.core_type = #tpu.core_type<tc>, window_params = [{transform_indices = @transform_0, window_bounds = array<i64: 64, 256>}, {pipeline_mode = #tpu.pipeline_mode<synchronous>, transform_indices = @transform_1, window_bounds = array<i64: 4, 16>}, {pipeline_mode = #tpu.pipeline_mode<synchronous>, transform_indices = @transform_2, window_bounds = array<i64: 4, 1>}, {pipeline_mode = #tpu.pipeline_mode<synchronous>, transform_indices = @transform_3, window_bounds = array<i64: 16, 4>}, {pipeline_mode = #tpu.pipeline_mode<synchronous>, transform_indices = @transform_4, window_bounds = array<i64: 16, 1>}, {transform_indices = @transform_5, window_bounds = array<i64: 1, 16, 4>}]} {
    %c0 = arith.constant 0 : index
    %c0_0 = arith.constant 0 : index
    %0 = vector.load %arg1[%c0, %c0_0] : memref<64x256xf32, #tpu.memory_space<vmem>>, vector<64x256xf32>
    %cst = arith.constant dense<0.000000e+00> : vector<64xf32>
    %1 = vector.multi_reduction <add>, %0, %cst [1] : vector<64x256xf32> to vector<64xf32>
    %2 = vector.shape_cast %1 : vector<64xf32> to vector<64x1xf32>
    %cst_1 = arith.constant 3.906250e-03 : f32
    %3 = vector.broadcast %cst_1 : f32 to vector<64x1xf32>
    %4 = arith.mulf %2, %3 : vector<64x1xf32>
    %cst_2 = arith.constant dense<0xFF800000> : vector<64xf32>
    %5 = vector.multi_reduction <maximumf>, %0, %cst_2 [1] : vector<64x256xf32> to vector<64xf32>
    %6 = vector.shape_cast %5 : vector<64xf32> to vector<64x1xf32>
    %7 = tpu.bitcast %0 : vector<64x256xf32> -> vector<64x256xi32>
    %c0_i32 = arith.constant 0 : i32
    %8 = vector.broadcast %c0_i32 : i32 to vector<64x256xi32>
    %9 = arith.cmpi slt, %7, %8 : vector<64x256xi32>
    %c2147483647_i32 = arith.constant 2147483647 : i32
    %10 = vector.broadcast %c2147483647_i32 : i32 to vector<64x256xi32>
    %11 = arith.xori %7, %10 : vector<64x256xi32>
    %12 = arith.select %9, %11, %7 : vector<64x256xi1>, vector<64x256xi32>
    %c0_i32_3 = arith.constant 0 : i32
    %13 = vector.broadcast %c0_i32_3 : i32 to vector<64x1xi32>
    %c2147483647_i32_4 = arith.constant 2147483647 : i32
    %14 = vector.broadcast %c2147483647_i32_4 : i32 to vector<64x1xi32>
    %15 = arith.ori %13, %14 : vector<64x1xi32>
    %c-2147483648_i32 = arith.constant -2147483648 : i32
    %16 = vector.broadcast %c-2147483648_i32 : i32 to vector<64x1xi32>
    %17 = arith.xori %15, %16 : vector<64x1xi32>
    %18 = vector.broadcast %17 : vector<64x1xi32> to vector<64x256xi32>
    %19 = arith.cmpi sle, %12, %18 : vector<64x256xi32>
    %20 = arith.extui %19 : vector<64x256xi1> to vector<64x256xi32>
    %21 = arith.sitofp %20 : vector<64x256xi32> to vector<64x256xf32>
    %cst_5 = arith.constant dense<0.000000e+00> : vector<64xf32>
    %22 = vector.multi_reduction <add>, %21, %cst_5 [1] : vector<64x256xf32> to vector<64xf32>
    %23 = vector.shape_cast %22 : vector<64xf32> to vector<64x1xf32>
    %cst_6 = arith.constant 1.280000e+02 : f32
    %24 = vector.broadcast %cst_6 : f32 to vector<64x1xf32>
    %25 = arith.cmpf oge, %23, %24 : vector<64x1xf32>
    %c-2147483648_i32_7 = arith.constant -2147483648 : i32
    %26 = vector.broadcast %c-2147483648_i32_7 : i32 to vector<64x1xi32>
    %27 = arith.ori %13, %26 : vector<64x1xi32>
    %28 = arith.select %25, %13, %27 : vector<64x1xi1>, vector<64x1xi32>
    %c1073741823_i32 = arith.constant 1073741823 : i32
    %29 = vector.broadcast %c1073741823_i32 : i32 to vector<64x1xi32>
    %30 = arith.ori %28, %29 : vector<64x1xi32>
    %c-2147483648_i32_8 = arith.constant -2147483648 : i32
    %31 = vector.broadcast %c-2147483648_i32_8 : i32 to vector<64x1xi32>
    %32 = arith.xori %30, %31 : vector<64x1xi32>
    %33 = vector.broadcast %32 : vector<64x1xi32> to vector<64x256xi32>
    %34 = arith.cmpi sle, %12, %33 : vector<64x256xi32>
    %35 = arith.extui %34 : vector<64x256xi1> to vector<64x256xi32>
    %36 = arith.sitofp %35 : vector<64x256xi32> to vector<64x256xf32>
    %cst_9 = arith.constant dense<0.000000e+00> : vector<64xf32>
    %37 = vector.multi_reduction <add>, %36, %cst_9 [1] : vector<64x256xf32> to vector<64xf32>
    %38 = vector.shape_cast %37 : vector<64xf32> to vector<64x1xf32>
    %cst_10 = arith.constant 1.280000e+02 : f32
    %39 = vector.broadcast %cst_10 : f32 to vector<64x1xf32>
    %40 = arith.cmpf oge, %38, %39 : vector<64x1xf32>
    %c1073741824_i32 = arith.constant 1073741824 : i32
    %41 = vector.broadcast %c1073741824_i32 : i32 to vector<64x1xi32>
    %42 = arith.ori %28, %41 : vector<64x1xi32>
    %43 = arith.select %40, %28, %42 : vector<64x1xi1>, vector<64x1xi32>
    %c536870911_i32 = arith.constant 536870911 : i32
    %44 = vector.broadcast %c536870911_i32 : i32 to vector<64x1xi32>
    %45 = arith.ori %43, %44 : vector<64x1xi32>
    %c-2147483648_i32_11 = arith.constant -2147483648 : i32
    %46 = vector.broadcast %c-2147483648_i32_11 : i32 to vector<64x1xi32>
    %47 = arith.xori %45, %46 : vector<64x1xi32>
    %48 = vector.broadcast %47 : vector<64x1xi32> to vector<64x256xi32>
    %49 = arith.cmpi sle, %12, %48 : vector<64x256xi32>
    %50 = arith.extui %49 : vector<64x256xi1> to vector<64x256xi32>
    %51 = arith.sitofp %50 : vector<64x256xi32> to vector<64x256xf32>
    %cst_12 = arith.constant dense<0.000000e+00> : vector<64xf32>
    %52 = vector.multi_reduction <add>, %51, %cst_12 [1] : vector<64x256xf32> to vector<64xf32>
    %53 = vector.shape_cast %52 : vector<64xf32> to vector<64x1xf32>
    %cst_13 = arith.constant 1.280000e+02 : f32
    %54 = vector.broadcast %cst_13 : f32 to vector<64x1xf32>
    %55 = arith.cmpf oge, %53, %54 : vector<64x1xf32>
    %c536870912_i32 = arith.constant 536870912 : i32
    %56 = vector.broadcast %c536870912_i32 : i32 to vector<64x1xi32>
    %57 = arith.ori %43, %56 : vector<64x1xi32>
    %58 = arith.select %55, %43, %57 : vector<64x1xi1>, vector<64x1xi32>
    %c268435455_i32 = arith.constant 268435455 : i32
    %59 = vector.broadcast %c268435455_i32 : i32 to vector<64x1xi32>
    %60 = arith.ori %58, %59 : vector<64x1xi32>
    %c-2147483648_i32_14 = arith.constant -2147483648 : i32
    %61 = vector.broadcast %c-2147483648_i32_14 : i32 to vector<64x1xi32>
    %62 = arith.xori %60, %61 : vector<64x1xi32>
    %63 = vector.broadcast %62 : vector<64x1xi32> to vector<64x256xi32>
    %64 = arith.cmpi sle, %12, %63 : vector<64x256xi32>
    %65 = arith.extui %64 : vector<64x256xi1> to vector<64x256xi32>
    %66 = arith.sitofp %65 : vector<64x256xi32> to vector<64x256xf32>
    %cst_15 = arith.constant dense<0.000000e+00> : vector<64xf32>
    %67 = vector.multi_reduction <add>, %66, %cst_15 [1] : vector<64x256xf32> to vector<64xf32>
    %68 = vector.shape_cast %67 : vector<64xf32> to vector<64x1xf32>
    %cst_16 = arith.constant 1.280000e+02 : f32
    %69 = vector.broadcast %cst_16 : f32 to vector<64x1xf32>
    %70 = arith.cmpf oge, %68, %69 : vector<64x1xf32>
    %c268435456_i32 = arith.constant 268435456 : i32
    %71 = vector.broadcast %c268435456_i32 : i32 to vector<64x1xi32>
    %72 = arith.ori %58, %71 : vector<64x1xi32>
    %73 = arith.select %70, %58, %72 : vector<64x1xi1>, vector<64x1xi32>
    %c134217727_i32 = arith.constant 134217727 : i32
    %74 = vector.broadcast %c134217727_i32 : i32 to vector<64x1xi32>
    %75 = arith.ori %73, %74 : vector<64x1xi32>
    %c-2147483648_i32_17 = arith.constant -2147483648 : i32
    %76 = vector.broadcast %c-2147483648_i32_17 : i32 to vector<64x1xi32>
    %77 = arith.xori %75, %76 : vector<64x1xi32>
    %78 = vector.broadcast %77 : vector<64x1xi32> to vector<64x256xi32>
    %79 = arith.cmpi sle, %12, %78 : vector<64x256xi32>
    %80 = arith.extui %79 : vector<64x256xi1> to vector<64x256xi32>
    %81 = arith.sitofp %80 : vector<64x256xi32> to vector<64x256xf32>
    %cst_18 = arith.constant dense<0.000000e+00> : vector<64xf32>
    %82 = vector.multi_reduction <add>, %81, %cst_18 [1] : vector<64x256xf32> to vector<64xf32>
    %83 = vector.shape_cast %82 : vector<64xf32> to vector<64x1xf32>
    %cst_19 = arith.constant 1.280000e+02 : f32
    %84 = vector.broadcast %cst_19 : f32 to vector<64x1xf32>
    %85 = arith.cmpf oge, %83, %84 : vector<64x1xf32>
    %c134217728_i32 = arith.constant 134217728 : i32
    %86 = vector.broadcast %c134217728_i32 : i32 to vector<64x1xi32>
    %87 = arith.ori %73, %86 : vector<64x1xi32>
    %88 = arith.select %85, %73, %87 : vector<64x1xi1>, vector<64x1xi32>
    %c67108863_i32 = arith.constant 67108863 : i32
    %89 = vector.broadcast %c67108863_i32 : i32 to vector<64x1xi32>
    %90 = arith.ori %88, %89 : vector<64x1xi32>
    %c-2147483648_i32_20 = arith.constant -2147483648 : i32
    %91 = vector.broadcast %c-2147483648_i32_20 : i32 to vector<64x1xi32>
    %92 = arith.xori %90, %91 : vector<64x1xi32>
    %93 = vector.broadcast %92 : vector<64x1xi32> to vector<64x256xi32>
    %94 = arith.cmpi sle, %12, %93 : vector<64x256xi32>
    %95 = arith.extui %94 : vector<64x256xi1> to vector<64x256xi32>
    %96 = arith.sitofp %95 : vector<64x256xi32> to vector<64x256xf32>
    %cst_21 = arith.constant dense<0.000000e+00> : vector<64xf32>
    %97 = vector.multi_reduction <add>, %96, %cst_21 [1] : vector<64x256xf32> to vector<64xf32>
    %98 = vector.shape_cast %97 : vector<64xf32> to vector<64x1xf32>
    %cst_22 = arith.constant 1.280000e+02 : f32
    %99 = vector.broadcast %cst_22 : f32 to vector<64x1xf32>
    %100 = arith.cmpf oge, %98, %99 : vector<64x1xf32>
    %c67108864_i32 = arith.constant 67108864 : i32
    %101 = vector.broadcast %c67108864_i32 : i32 to vector<64x1xi32>
    %102 = arith.ori %88, %101 : vector<64x1xi32>
    %103 = arith.select %100, %88, %102 : vector<64x1xi1>, vector<64x1xi32>
    %c33554431_i32 = arith.constant 33554431 : i32
    %104 = vector.broadcast %c33554431_i32 : i32 to vector<64x1xi32>
    %105 = arith.ori %103, %104 : vector<64x1xi32>
    %c-2147483648_i32_23 = arith.constant -2147483648 : i32
    %106 = vector.broadcast %c-2147483648_i32_23 : i32 to vector<64x1xi32>
    %107 = arith.xori %105, %106 : vector<64x1xi32>
    %108 = vector.broadcast %107 : vector<64x1xi32> to vector<64x256xi32>
    %109 = arith.cmpi sle, %12, %108 : vector<64x256xi32>
    %110 = arith.extui %109 : vector<64x256xi1> to vector<64x256xi32>
    %111 = arith.sitofp %110 : vector<64x256xi32> to vector<64x256xf32>
    %cst_24 = arith.constant dense<0.000000e+00> : vector<64xf32>
    %112 = vector.multi_reduction <add>, %111, %cst_24 [1] : vector<64x256xf32> to vector<64xf32>
    %113 = vector.shape_cast %112 : vector<64xf32> to vector<64x1xf32>
    %cst_25 = arith.constant 1.280000e+02 : f32
    %114 = vector.broadcast %cst_25 : f32 to vector<64x1xf32>
    %115 = arith.cmpf oge, %113, %114 : vector<64x1xf32>
    %c33554432_i32 = arith.constant 33554432 : i32
    %116 = vector.broadcast %c33554432_i32 : i32 to vector<64x1xi32>
    %117 = arith.ori %103, %116 : vector<64x1xi32>
    %118 = arith.select %115, %103, %117 : vector<64x1xi1>, vector<64x1xi32>
    %c16777215_i32 = arith.constant 16777215 : i32
    %119 = vector.broadcast %c16777215_i32 : i32 to vector<64x1xi32>
    %120 = arith.ori %118, %119 : vector<64x1xi32>
    %c-2147483648_i32_26 = arith.constant -2147483648 : i32
    %121 = vector.broadcast %c-2147483648_i32_26 : i32 to vector<64x1xi32>
    %122 = arith.xori %120, %121 : vector<64x1xi32>
    %123 = vector.broadcast %122 : vector<64x1xi32> to vector<64x256xi32>
    %124 = arith.cmpi sle, %12, %123 : vector<64x256xi32>
    %125 = arith.extui %124 : vector<64x256xi1> to vector<64x256xi32>
    %126 = arith.sitofp %125 : vector<64x256xi32> to vector<64x256xf32>
    %cst_27 = arith.constant dense<0.000000e+00> : vector<64xf32>
    %127 = vector.multi_reduction <add>, %126, %cst_27 [1] : vector<64x256xf32> to vector<64xf32>
    %128 = vector.shape_cast %127 : vector<64xf32> to vector<64x1xf32>
    %cst_28 = arith.constant 1.280000e+02 : f32
    %129 = vector.broadcast %cst_28 : f32 to vector<64x1xf32>
    %130 = arith.cmpf oge, %128, %129 : vector<64x1xf32>
    %c16777216_i32 = arith.constant 16777216 : i32
    %131 = vector.broadcast %c16777216_i32 : i32 to vector<64x1xi32>
    %132 = arith.ori %118, %131 : vector<64x1xi32>
    %133 = arith.select %130, %118, %132 : vector<64x1xi1>, vector<64x1xi32>
    %c8388607_i32 = arith.constant 8388607 : i32
    %134 = vector.broadcast %c8388607_i32 : i32 to vector<64x1xi32>
    %135 = arith.ori %133, %134 : vector<64x1xi32>
    %c-2147483648_i32_29 = arith.constant -2147483648 : i32
    %136 = vector.broadcast %c-2147483648_i32_29 : i32 to vector<64x1xi32>
    %137 = arith.xori %135, %136 : vector<64x1xi32>
    %138 = vector.broadcast %137 : vector<64x1xi32> to vector<64x256xi32>
    %139 = arith.cmpi sle, %12, %138 : vector<64x256xi32>
    %140 = arith.extui %139 : vector<64x256xi1> to vector<64x256xi32>
    %141 = arith.sitofp %140 : vector<64x256xi32> to vector<64x256xf32>
    %cst_30 = arith.constant dense<0.000000e+00> : vector<64xf32>
    %142 = vector.multi_reduction <add>, %141, %cst_30 [1] : vector<64x256xf32> to vector<64xf32>
    %143 = vector.shape_cast %142 : vector<64xf32> to vector<64x1xf32>
    %cst_31 = arith.constant 1.280000e+02 : f32
    %144 = vector.broadcast %cst_31 : f32 to vector<64x1xf32>
    %145 = arith.cmpf oge, %143, %144 : vector<64x1xf32>
    %c8388608_i32 = arith.constant 8388608 : i32
    %146 = vector.broadcast %c8388608_i32 : i32 to vector<64x1xi32>
    %147 = arith.ori %133, %146 : vector<64x1xi32>
    %148 = arith.select %145, %133, %147 : vector<64x1xi1>, vector<64x1xi32>
    %c4194303_i32 = arith.constant 4194303 : i32
    %149 = vector.broadcast %c4194303_i32 : i32 to vector<64x1xi32>
    %150 = arith.ori %148, %149 : vector<64x1xi32>
    %c-2147483648_i32_32 = arith.constant -2147483648 : i32
    %151 = vector.broadcast %c-2147483648_i32_32 : i32 to vector<64x1xi32>
    %152 = arith.xori %150, %151 : vector<64x1xi32>
    %153 = vector.broadcast %152 : vector<64x1xi32> to vector<64x256xi32>
    %154 = arith.cmpi sle, %12, %153 : vector<64x256xi32>
    %155 = arith.extui %154 : vector<64x256xi1> to vector<64x256xi32>
    %156 = arith.sitofp %155 : vector<64x256xi32> to vector<64x256xf32>
    %cst_33 = arith.constant dense<0.000000e+00> : vector<64xf32>
    %157 = vector.multi_reduction <add>, %156, %cst_33 [1] : vector<64x256xf32> to vector<64xf32>
    %158 = vector.shape_cast %157 : vector<64xf32> to vector<64x1xf32>
    %cst_34 = arith.constant 1.280000e+02 : f32
    %159 = vector.broadcast %cst_34 : f32 to vector<64x1xf32>
    %160 = arith.cmpf oge, %158, %159 : vector<64x1xf32>
    %c4194304_i32 = arith.constant 4194304 : i32
    %161 = vector.broadcast %c4194304_i32 : i32 to vector<64x1xi32>
    %162 = arith.ori %148, %161 : vector<64x1xi32>
    %163 = arith.select %160, %148, %162 : vector<64x1xi1>, vector<64x1xi32>
    %c2097151_i32 = arith.constant 2097151 : i32
    %164 = vector.broadcast %c2097151_i32 : i32 to vector<64x1xi32>
    %165 = arith.ori %163, %164 : vector<64x1xi32>
    %c-2147483648_i32_35 = arith.constant -2147483648 : i32
    %166 = vector.broadcast %c-2147483648_i32_35 : i32 to vector<64x1xi32>
    %167 = arith.xori %165, %166 : vector<64x1xi32>
    %168 = vector.broadcast %167 : vector<64x1xi32> to vector<64x256xi32>
    %169 = arith.cmpi sle, %12, %168 : vector<64x256xi32>
    %170 = arith.extui %169 : vector<64x256xi1> to vector<64x256xi32>
    %171 = arith.sitofp %170 : vector<64x256xi32> to vector<64x256xf32>
    %cst_36 = arith.constant dense<0.000000e+00> : vector<64xf32>
    %172 = vector.multi_reduction <add>, %171, %cst_36 [1] : vector<64x256xf32> to vector<64xf32>
    %173 = vector.shape_cast %172 : vector<64xf32> to vector<64x1xf32>
    %cst_37 = arith.constant 1.280000e+02 : f32
    %174 = vector.broadcast %cst_37 : f32 to vector<64x1xf32>
    %175 = arith.cmpf oge, %173, %174 : vector<64x1xf32>
    %c2097152_i32 = arith.constant 2097152 : i32
    %176 = vector.broadcast %c2097152_i32 : i32 to vector<64x1xi32>
    %177 = arith.ori %163, %176 : vector<64x1xi32>
    %178 = arith.select %175, %163, %177 : vector<64x1xi1>, vector<64x1xi32>
    %c1048575_i32 = arith.constant 1048575 : i32
    %179 = vector.broadcast %c1048575_i32 : i32 to vector<64x1xi32>
    %180 = arith.ori %178, %179 : vector<64x1xi32>
    %c-2147483648_i32_38 = arith.constant -2147483648 : i32
    %181 = vector.broadcast %c-2147483648_i32_38 : i32 to vector<64x1xi32>
    %182 = arith.xori %180, %181 : vector<64x1xi32>
    %183 = vector.broadcast %182 : vector<64x1xi32> to vector<64x256xi32>
    %184 = arith.cmpi sle, %12, %183 : vector<64x256xi32>
    %185 = arith.extui %184 : vector<64x256xi1> to vector<64x256xi32>
    %186 = arith.sitofp %185 : vector<64x256xi32> to vector<64x256xf32>
    %cst_39 = arith.constant dense<0.000000e+00> : vector<64xf32>
    %187 = vector.multi_reduction <add>, %186, %cst_39 [1] : vector<64x256xf32> to vector<64xf32>
    %188 = vector.shape_cast %187 : vector<64xf32> to vector<64x1xf32>
    %cst_40 = arith.constant 1.280000e+02 : f32
    %189 = vector.broadcast %cst_40 : f32 to vector<64x1xf32>
    %190 = arith.cmpf oge, %188, %189 : vector<64x1xf32>
    %c1048576_i32 = arith.constant 1048576 : i32
    %191 = vector.broadcast %c1048576_i32 : i32 to vector<64x1xi32>
    %192 = arith.ori %178, %191 : vector<64x1xi32>
    %193 = arith.select %190, %178, %192 : vector<64x1xi1>, vector<64x1xi32>
    %c524287_i32 = arith.constant 524287 : i32
    %194 = vector.broadcast %c524287_i32 : i32 to vector<64x1xi32>
    %195 = arith.ori %193, %194 : vector<64x1xi32>
    %c-2147483648_i32_41 = arith.constant -2147483648 : i32
    %196 = vector.broadcast %c-2147483648_i32_41 : i32 to vector<64x1xi32>
    %197 = arith.xori %195, %196 : vector<64x1xi32>
    %198 = vector.broadcast %197 : vector<64x1xi32> to vector<64x256xi32>
    %199 = arith.cmpi sle, %12, %198 : vector<64x256xi32>
    %200 = arith.extui %199 : vector<64x256xi1> to vector<64x256xi32>
    %201 = arith.sitofp %200 : vector<64x256xi32> to vector<64x256xf32>
    %cst_42 = arith.constant dense<0.000000e+00> : vector<64xf32>
    %202 = vector.multi_reduction <add>, %201, %cst_42 [1] : vector<64x256xf32> to vector<64xf32>
    %203 = vector.shape_cast %202 : vector<64xf32> to vector<64x1xf32>
    %cst_43 = arith.constant 1.280000e+02 : f32
    %204 = vector.broadcast %cst_43 : f32 to vector<64x1xf32>
    %205 = arith.cmpf oge, %203, %204 : vector<64x1xf32>
    %c524288_i32 = arith.constant 524288 : i32
    %206 = vector.broadcast %c524288_i32 : i32 to vector<64x1xi32>
    %207 = arith.ori %193, %206 : vector<64x1xi32>
    %208 = arith.select %205, %193, %207 : vector<64x1xi1>, vector<64x1xi32>
    %c262143_i32 = arith.constant 262143 : i32
    %209 = vector.broadcast %c262143_i32 : i32 to vector<64x1xi32>
    %210 = arith.ori %208, %209 : vector<64x1xi32>
    %c-2147483648_i32_44 = arith.constant -2147483648 : i32
    %211 = vector.broadcast %c-2147483648_i32_44 : i32 to vector<64x1xi32>
    %212 = arith.xori %210, %211 : vector<64x1xi32>
    %213 = vector.broadcast %212 : vector<64x1xi32> to vector<64x256xi32>
    %214 = arith.cmpi sle, %12, %213 : vector<64x256xi32>
    %215 = arith.extui %214 : vector<64x256xi1> to vector<64x256xi32>
    %216 = arith.sitofp %215 : vector<64x256xi32> to vector<64x256xf32>
    %cst_45 = arith.constant dense<0.000000e+00> : vector<64xf32>
    %217 = vector.multi_reduction <add>, %216, %cst_45 [1] : vector<64x256xf32> to vector<64xf32>
    %218 = vector.shape_cast %217 : vector<64xf32> to vector<64x1xf32>
    %cst_46 = arith.constant 1.280000e+02 : f32
    %219 = vector.broadcast %cst_46 : f32 to vector<64x1xf32>
    %220 = arith.cmpf oge, %218, %219 : vector<64x1xf32>
    %c262144_i32 = arith.constant 262144 : i32
    %221 = vector.broadcast %c262144_i32 : i32 to vector<64x1xi32>
    %222 = arith.ori %208, %221 : vector<64x1xi32>
    %223 = arith.select %220, %208, %222 : vector<64x1xi1>, vector<64x1xi32>
    %c131071_i32 = arith.constant 131071 : i32
    %224 = vector.broadcast %c131071_i32 : i32 to vector<64x1xi32>
    %225 = arith.ori %223, %224 : vector<64x1xi32>
    %c-2147483648_i32_47 = arith.constant -2147483648 : i32
    %226 = vector.broadcast %c-2147483648_i32_47 : i32 to vector<64x1xi32>
    %227 = arith.xori %225, %226 : vector<64x1xi32>
    %228 = vector.broadcast %227 : vector<64x1xi32> to vector<64x256xi32>
    %229 = arith.cmpi sle, %12, %228 : vector<64x256xi32>
    %230 = arith.extui %229 : vector<64x256xi1> to vector<64x256xi32>
    %231 = arith.sitofp %230 : vector<64x256xi32> to vector<64x256xf32>
    %cst_48 = arith.constant dense<0.000000e+00> : vector<64xf32>
    %232 = vector.multi_reduction <add>, %231, %cst_48 [1] : vector<64x256xf32> to vector<64xf32>
    %233 = vector.shape_cast %232 : vector<64xf32> to vector<64x1xf32>
    %cst_49 = arith.constant 1.280000e+02 : f32
    %234 = vector.broadcast %cst_49 : f32 to vector<64x1xf32>
    %235 = arith.cmpf oge, %233, %234 : vector<64x1xf32>
    %c131072_i32 = arith.constant 131072 : i32
    %236 = vector.broadcast %c131072_i32 : i32 to vector<64x1xi32>
    %237 = arith.ori %223, %236 : vector<64x1xi32>
    %238 = arith.select %235, %223, %237 : vector<64x1xi1>, vector<64x1xi32>
    %c65535_i32 = arith.constant 65535 : i32
    %239 = vector.broadcast %c65535_i32 : i32 to vector<64x1xi32>
    %240 = arith.ori %238, %239 : vector<64x1xi32>
    %c-2147483648_i32_50 = arith.constant -2147483648 : i32
    %241 = vector.broadcast %c-2147483648_i32_50 : i32 to vector<64x1xi32>
    %242 = arith.xori %240, %241 : vector<64x1xi32>
    %243 = vector.broadcast %242 : vector<64x1xi32> to vector<64x256xi32>
    %244 = arith.cmpi sle, %12, %243 : vector<64x256xi32>
    %245 = arith.extui %244 : vector<64x256xi1> to vector<64x256xi32>
    %246 = arith.sitofp %245 : vector<64x256xi32> to vector<64x256xf32>
    %cst_51 = arith.constant dense<0.000000e+00> : vector<64xf32>
    %247 = vector.multi_reduction <add>, %246, %cst_51 [1] : vector<64x256xf32> to vector<64xf32>
    %248 = vector.shape_cast %247 : vector<64xf32> to vector<64x1xf32>
    %cst_52 = arith.constant 1.280000e+02 : f32
    %249 = vector.broadcast %cst_52 : f32 to vector<64x1xf32>
    %250 = arith.cmpf oge, %248, %249 : vector<64x1xf32>
    %c65536_i32 = arith.constant 65536 : i32
    %251 = vector.broadcast %c65536_i32 : i32 to vector<64x1xi32>
    %252 = arith.ori %238, %251 : vector<64x1xi32>
    %253 = arith.select %250, %238, %252 : vector<64x1xi1>, vector<64x1xi32>
    %c32767_i32 = arith.constant 32767 : i32
    %254 = vector.broadcast %c32767_i32 : i32 to vector<64x1xi32>
    %255 = arith.ori %253, %254 : vector<64x1xi32>
    %c-2147483648_i32_53 = arith.constant -2147483648 : i32
    %256 = vector.broadcast %c-2147483648_i32_53 : i32 to vector<64x1xi32>
    %257 = arith.xori %255, %256 : vector<64x1xi32>
    %258 = vector.broadcast %257 : vector<64x1xi32> to vector<64x256xi32>
    %259 = arith.cmpi sle, %12, %258 : vector<64x256xi32>
    %260 = arith.extui %259 : vector<64x256xi1> to vector<64x256xi32>
    %261 = arith.sitofp %260 : vector<64x256xi32> to vector<64x256xf32>
    %cst_54 = arith.constant dense<0.000000e+00> : vector<64xf32>
    %262 = vector.multi_reduction <add>, %261, %cst_54 [1] : vector<64x256xf32> to vector<64xf32>
    %263 = vector.shape_cast %262 : vector<64xf32> to vector<64x1xf32>
    %cst_55 = arith.constant 1.280000e+02 : f32
    %264 = vector.broadcast %cst_55 : f32 to vector<64x1xf32>
    %265 = arith.cmpf oge, %263, %264 : vector<64x1xf32>
    %c32768_i32 = arith.constant 32768 : i32
    %266 = vector.broadcast %c32768_i32 : i32 to vector<64x1xi32>
    %267 = arith.ori %253, %266 : vector<64x1xi32>
    %268 = arith.select %265, %253, %267 : vector<64x1xi1>, vector<64x1xi32>
    %c16383_i32 = arith.constant 16383 : i32
    %269 = vector.broadcast %c16383_i32 : i32 to vector<64x1xi32>
    %270 = arith.ori %268, %269 : vector<64x1xi32>
    %c-2147483648_i32_56 = arith.constant -2147483648 : i32
    %271 = vector.broadcast %c-2147483648_i32_56 : i32 to vector<64x1xi32>
    %272 = arith.xori %270, %271 : vector<64x1xi32>
    %273 = vector.broadcast %272 : vector<64x1xi32> to vector<64x256xi32>
    %274 = arith.cmpi sle, %12, %273 : vector<64x256xi32>
    %275 = arith.extui %274 : vector<64x256xi1> to vector<64x256xi32>
    %276 = arith.sitofp %275 : vector<64x256xi32> to vector<64x256xf32>
    %cst_57 = arith.constant dense<0.000000e+00> : vector<64xf32>
    %277 = vector.multi_reduction <add>, %276, %cst_57 [1] : vector<64x256xf32> to vector<64xf32>
    %278 = vector.shape_cast %277 : vector<64xf32> to vector<64x1xf32>
    %cst_58 = arith.constant 1.280000e+02 : f32
    %279 = vector.broadcast %cst_58 : f32 to vector<64x1xf32>
    %280 = arith.cmpf oge, %278, %279 : vector<64x1xf32>
    %c16384_i32 = arith.constant 16384 : i32
    %281 = vector.broadcast %c16384_i32 : i32 to vector<64x1xi32>
    %282 = arith.ori %268, %281 : vector<64x1xi32>
    %283 = arith.select %280, %268, %282 : vector<64x1xi1>, vector<64x1xi32>
    %c8191_i32 = arith.constant 8191 : i32
    %284 = vector.broadcast %c8191_i32 : i32 to vector<64x1xi32>
    %285 = arith.ori %283, %284 : vector<64x1xi32>
    %c-2147483648_i32_59 = arith.constant -2147483648 : i32
    %286 = vector.broadcast %c-2147483648_i32_59 : i32 to vector<64x1xi32>
    %287 = arith.xori %285, %286 : vector<64x1xi32>
    %288 = vector.broadcast %287 : vector<64x1xi32> to vector<64x256xi32>
    %289 = arith.cmpi sle, %12, %288 : vector<64x256xi32>
    %290 = arith.extui %289 : vector<64x256xi1> to vector<64x256xi32>
    %291 = arith.sitofp %290 : vector<64x256xi32> to vector<64x256xf32>
    %cst_60 = arith.constant dense<0.000000e+00> : vector<64xf32>
    %292 = vector.multi_reduction <add>, %291, %cst_60 [1] : vector<64x256xf32> to vector<64xf32>
    %293 = vector.shape_cast %292 : vector<64xf32> to vector<64x1xf32>
    %cst_61 = arith.constant 1.280000e+02 : f32
    %294 = vector.broadcast %cst_61 : f32 to vector<64x1xf32>
    %295 = arith.cmpf oge, %293, %294 : vector<64x1xf32>
    %c8192_i32 = arith.constant 8192 : i32
    %296 = vector.broadcast %c8192_i32 : i32 to vector<64x1xi32>
    %297 = arith.ori %283, %296 : vector<64x1xi32>
    %298 = arith.select %295, %283, %297 : vector<64x1xi1>, vector<64x1xi32>
    %c4095_i32 = arith.constant 4095 : i32
    %299 = vector.broadcast %c4095_i32 : i32 to vector<64x1xi32>
    %300 = arith.ori %298, %299 : vector<64x1xi32>
    %c-2147483648_i32_62 = arith.constant -2147483648 : i32
    %301 = vector.broadcast %c-2147483648_i32_62 : i32 to vector<64x1xi32>
    %302 = arith.xori %300, %301 : vector<64x1xi32>
    %303 = vector.broadcast %302 : vector<64x1xi32> to vector<64x256xi32>
    %304 = arith.cmpi sle, %12, %303 : vector<64x256xi32>
    %305 = arith.extui %304 : vector<64x256xi1> to vector<64x256xi32>
    %306 = arith.sitofp %305 : vector<64x256xi32> to vector<64x256xf32>
    %cst_63 = arith.constant dense<0.000000e+00> : vector<64xf32>
    %307 = vector.multi_reduction <add>, %306, %cst_63 [1] : vector<64x256xf32> to vector<64xf32>
    %308 = vector.shape_cast %307 : vector<64xf32> to vector<64x1xf32>
    %cst_64 = arith.constant 1.280000e+02 : f32
    %309 = vector.broadcast %cst_64 : f32 to vector<64x1xf32>
    %310 = arith.cmpf oge, %308, %309 : vector<64x1xf32>
    %c4096_i32 = arith.constant 4096 : i32
    %311 = vector.broadcast %c4096_i32 : i32 to vector<64x1xi32>
    %312 = arith.ori %298, %311 : vector<64x1xi32>
    %313 = arith.select %310, %298, %312 : vector<64x1xi1>, vector<64x1xi32>
    %c2047_i32 = arith.constant 2047 : i32
    %314 = vector.broadcast %c2047_i32 : i32 to vector<64x1xi32>
    %315 = arith.ori %313, %314 : vector<64x1xi32>
    %c-2147483648_i32_65 = arith.constant -2147483648 : i32
    %316 = vector.broadcast %c-2147483648_i32_65 : i32 to vector<64x1xi32>
    %317 = arith.xori %315, %316 : vector<64x1xi32>
    %318 = vector.broadcast %317 : vector<64x1xi32> to vector<64x256xi32>
    %319 = arith.cmpi sle, %12, %318 : vector<64x256xi32>
    %320 = arith.extui %319 : vector<64x256xi1> to vector<64x256xi32>
    %321 = arith.sitofp %320 : vector<64x256xi32> to vector<64x256xf32>
    %cst_66 = arith.constant dense<0.000000e+00> : vector<64xf32>
    %322 = vector.multi_reduction <add>, %321, %cst_66 [1] : vector<64x256xf32> to vector<64xf32>
    %323 = vector.shape_cast %322 : vector<64xf32> to vector<64x1xf32>
    %cst_67 = arith.constant 1.280000e+02 : f32
    %324 = vector.broadcast %cst_67 : f32 to vector<64x1xf32>
    %325 = arith.cmpf oge, %323, %324 : vector<64x1xf32>
    %c2048_i32 = arith.constant 2048 : i32
    %326 = vector.broadcast %c2048_i32 : i32 to vector<64x1xi32>
    %327 = arith.ori %313, %326 : vector<64x1xi32>
    %328 = arith.select %325, %313, %327 : vector<64x1xi1>, vector<64x1xi32>
    %c1023_i32 = arith.constant 1023 : i32
    %329 = vector.broadcast %c1023_i32 : i32 to vector<64x1xi32>
    %330 = arith.ori %328, %329 : vector<64x1xi32>
    %c-2147483648_i32_68 = arith.constant -2147483648 : i32
    %331 = vector.broadcast %c-2147483648_i32_68 : i32 to vector<64x1xi32>
    %332 = arith.xori %330, %331 : vector<64x1xi32>
    %333 = vector.broadcast %332 : vector<64x1xi32> to vector<64x256xi32>
    %334 = arith.cmpi sle, %12, %333 : vector<64x256xi32>
    %335 = arith.extui %334 : vector<64x256xi1> to vector<64x256xi32>
    %336 = arith.sitofp %335 : vector<64x256xi32> to vector<64x256xf32>
    %cst_69 = arith.constant dense<0.000000e+00> : vector<64xf32>
    %337 = vector.multi_reduction <add>, %336, %cst_69 [1] : vector<64x256xf32> to vector<64xf32>
    %338 = vector.shape_cast %337 : vector<64xf32> to vector<64x1xf32>
    %cst_70 = arith.constant 1.280000e+02 : f32
    %339 = vector.broadcast %cst_70 : f32 to vector<64x1xf32>
    %340 = arith.cmpf oge, %338, %339 : vector<64x1xf32>
    %c1024_i32 = arith.constant 1024 : i32
    %341 = vector.broadcast %c1024_i32 : i32 to vector<64x1xi32>
    %342 = arith.ori %328, %341 : vector<64x1xi32>
    %343 = arith.select %340, %328, %342 : vector<64x1xi1>, vector<64x1xi32>
    %c511_i32 = arith.constant 511 : i32
    %344 = vector.broadcast %c511_i32 : i32 to vector<64x1xi32>
    %345 = arith.ori %343, %344 : vector<64x1xi32>
    %c-2147483648_i32_71 = arith.constant -2147483648 : i32
    %346 = vector.broadcast %c-2147483648_i32_71 : i32 to vector<64x1xi32>
    %347 = arith.xori %345, %346 : vector<64x1xi32>
    %348 = vector.broadcast %347 : vector<64x1xi32> to vector<64x256xi32>
    %349 = arith.cmpi sle, %12, %348 : vector<64x256xi32>
    %350 = arith.extui %349 : vector<64x256xi1> to vector<64x256xi32>
    %351 = arith.sitofp %350 : vector<64x256xi32> to vector<64x256xf32>
    %cst_72 = arith.constant dense<0.000000e+00> : vector<64xf32>
    %352 = vector.multi_reduction <add>, %351, %cst_72 [1] : vector<64x256xf32> to vector<64xf32>
    %353 = vector.shape_cast %352 : vector<64xf32> to vector<64x1xf32>
    %cst_73 = arith.constant 1.280000e+02 : f32
    %354 = vector.broadcast %cst_73 : f32 to vector<64x1xf32>
    %355 = arith.cmpf oge, %353, %354 : vector<64x1xf32>
    %c512_i32 = arith.constant 512 : i32
    %356 = vector.broadcast %c512_i32 : i32 to vector<64x1xi32>
    %357 = arith.ori %343, %356 : vector<64x1xi32>
    %358 = arith.select %355, %343, %357 : vector<64x1xi1>, vector<64x1xi32>
    %c255_i32 = arith.constant 255 : i32
    %359 = vector.broadcast %c255_i32 : i32 to vector<64x1xi32>
    %360 = arith.ori %358, %359 : vector<64x1xi32>
    %c-2147483648_i32_74 = arith.constant -2147483648 : i32
    %361 = vector.broadcast %c-2147483648_i32_74 : i32 to vector<64x1xi32>
    %362 = arith.xori %360, %361 : vector<64x1xi32>
    %363 = vector.broadcast %362 : vector<64x1xi32> to vector<64x256xi32>
    %364 = arith.cmpi sle, %12, %363 : vector<64x256xi32>
    %365 = arith.extui %364 : vector<64x256xi1> to vector<64x256xi32>
    %366 = arith.sitofp %365 : vector<64x256xi32> to vector<64x256xf32>
    %cst_75 = arith.constant dense<0.000000e+00> : vector<64xf32>
    %367 = vector.multi_reduction <add>, %366, %cst_75 [1] : vector<64x256xf32> to vector<64xf32>
    %368 = vector.shape_cast %367 : vector<64xf32> to vector<64x1xf32>
    %cst_76 = arith.constant 1.280000e+02 : f32
    %369 = vector.broadcast %cst_76 : f32 to vector<64x1xf32>
    %370 = arith.cmpf oge, %368, %369 : vector<64x1xf32>
    %c256_i32 = arith.constant 256 : i32
    %371 = vector.broadcast %c256_i32 : i32 to vector<64x1xi32>
    %372 = arith.ori %358, %371 : vector<64x1xi32>
    %373 = arith.select %370, %358, %372 : vector<64x1xi1>, vector<64x1xi32>
    %c127_i32 = arith.constant 127 : i32
    %374 = vector.broadcast %c127_i32 : i32 to vector<64x1xi32>
    %375 = arith.ori %373, %374 : vector<64x1xi32>
    %c-2147483648_i32_77 = arith.constant -2147483648 : i32
    %376 = vector.broadcast %c-2147483648_i32_77 : i32 to vector<64x1xi32>
    %377 = arith.xori %375, %376 : vector<64x1xi32>
    %378 = vector.broadcast %377 : vector<64x1xi32> to vector<64x256xi32>
    %379 = arith.cmpi sle, %12, %378 : vector<64x256xi32>
    %380 = arith.extui %379 : vector<64x256xi1> to vector<64x256xi32>
    %381 = arith.sitofp %380 : vector<64x256xi32> to vector<64x256xf32>
    %cst_78 = arith.constant dense<0.000000e+00> : vector<64xf32>
    %382 = vector.multi_reduction <add>, %381, %cst_78 [1] : vector<64x256xf32> to vector<64xf32>
    %383 = vector.shape_cast %382 : vector<64xf32> to vector<64x1xf32>
    %cst_79 = arith.constant 1.280000e+02 : f32
    %384 = vector.broadcast %cst_79 : f32 to vector<64x1xf32>
    %385 = arith.cmpf oge, %383, %384 : vector<64x1xf32>
    %c128_i32 = arith.constant 128 : i32
    %386 = vector.broadcast %c128_i32 : i32 to vector<64x1xi32>
    %387 = arith.ori %373, %386 : vector<64x1xi32>
    %388 = arith.select %385, %373, %387 : vector<64x1xi1>, vector<64x1xi32>
    %c63_i32 = arith.constant 63 : i32
    %389 = vector.broadcast %c63_i32 : i32 to vector<64x1xi32>
    %390 = arith.ori %388, %389 : vector<64x1xi32>
    %c-2147483648_i32_80 = arith.constant -2147483648 : i32
    %391 = vector.broadcast %c-2147483648_i32_80 : i32 to vector<64x1xi32>
    %392 = arith.xori %390, %391 : vector<64x1xi32>
    %393 = vector.broadcast %392 : vector<64x1xi32> to vector<64x256xi32>
    %394 = arith.cmpi sle, %12, %393 : vector<64x256xi32>
    %395 = arith.extui %394 : vector<64x256xi1> to vector<64x256xi32>
    %396 = arith.sitofp %395 : vector<64x256xi32> to vector<64x256xf32>
    %cst_81 = arith.constant dense<0.000000e+00> : vector<64xf32>
    %397 = vector.multi_reduction <add>, %396, %cst_81 [1] : vector<64x256xf32> to vector<64xf32>
    %398 = vector.shape_cast %397 : vector<64xf32> to vector<64x1xf32>
    %cst_82 = arith.constant 1.280000e+02 : f32
    %399 = vector.broadcast %cst_82 : f32 to vector<64x1xf32>
    %400 = arith.cmpf oge, %398, %399 : vector<64x1xf32>
    %c64_i32 = arith.constant 64 : i32
    %401 = vector.broadcast %c64_i32 : i32 to vector<64x1xi32>
    %402 = arith.ori %388, %401 : vector<64x1xi32>
    %403 = arith.select %400, %388, %402 : vector<64x1xi1>, vector<64x1xi32>
    %c31_i32 = arith.constant 31 : i32
    %404 = vector.broadcast %c31_i32 : i32 to vector<64x1xi32>
    %405 = arith.ori %403, %404 : vector<64x1xi32>
    %c-2147483648_i32_83 = arith.constant -2147483648 : i32
    %406 = vector.broadcast %c-2147483648_i32_83 : i32 to vector<64x1xi32>
    %407 = arith.xori %405, %406 : vector<64x1xi32>
    %408 = vector.broadcast %407 : vector<64x1xi32> to vector<64x256xi32>
    %409 = arith.cmpi sle, %12, %408 : vector<64x256xi32>
    %410 = arith.extui %409 : vector<64x256xi1> to vector<64x256xi32>
    %411 = arith.sitofp %410 : vector<64x256xi32> to vector<64x256xf32>
    %cst_84 = arith.constant dense<0.000000e+00> : vector<64xf32>
    %412 = vector.multi_reduction <add>, %411, %cst_84 [1] : vector<64x256xf32> to vector<64xf32>
    %413 = vector.shape_cast %412 : vector<64xf32> to vector<64x1xf32>
    %cst_85 = arith.constant 1.280000e+02 : f32
    %414 = vector.broadcast %cst_85 : f32 to vector<64x1xf32>
    %415 = arith.cmpf oge, %413, %414 : vector<64x1xf32>
    %c32_i32 = arith.constant 32 : i32
    %416 = vector.broadcast %c32_i32 : i32 to vector<64x1xi32>
    %417 = arith.ori %403, %416 : vector<64x1xi32>
    %418 = arith.select %415, %403, %417 : vector<64x1xi1>, vector<64x1xi32>
    %c15_i32 = arith.constant 15 : i32
    %419 = vector.broadcast %c15_i32 : i32 to vector<64x1xi32>
    %420 = arith.ori %418, %419 : vector<64x1xi32>
    %c-2147483648_i32_86 = arith.constant -2147483648 : i32
    %421 = vector.broadcast %c-2147483648_i32_86 : i32 to vector<64x1xi32>
    %422 = arith.xori %420, %421 : vector<64x1xi32>
    %423 = vector.broadcast %422 : vector<64x1xi32> to vector<64x256xi32>
    %424 = arith.cmpi sle, %12, %423 : vector<64x256xi32>
    %425 = arith.extui %424 : vector<64x256xi1> to vector<64x256xi32>
    %426 = arith.sitofp %425 : vector<64x256xi32> to vector<64x256xf32>
    %cst_87 = arith.constant dense<0.000000e+00> : vector<64xf32>
    %427 = vector.multi_reduction <add>, %426, %cst_87 [1] : vector<64x256xf32> to vector<64xf32>
    %428 = vector.shape_cast %427 : vector<64xf32> to vector<64x1xf32>
    %cst_88 = arith.constant 1.280000e+02 : f32
    %429 = vector.broadcast %cst_88 : f32 to vector<64x1xf32>
    %430 = arith.cmpf oge, %428, %429 : vector<64x1xf32>
    %c16_i32 = arith.constant 16 : i32
    %431 = vector.broadcast %c16_i32 : i32 to vector<64x1xi32>
    %432 = arith.ori %418, %431 : vector<64x1xi32>
    %433 = arith.select %430, %418, %432 : vector<64x1xi1>, vector<64x1xi32>
    %c7_i32 = arith.constant 7 : i32
    %434 = vector.broadcast %c7_i32 : i32 to vector<64x1xi32>
    %435 = arith.ori %433, %434 : vector<64x1xi32>
    %c-2147483648_i32_89 = arith.constant -2147483648 : i32
    %436 = vector.broadcast %c-2147483648_i32_89 : i32 to vector<64x1xi32>
    %437 = arith.xori %435, %436 : vector<64x1xi32>
    %438 = vector.broadcast %437 : vector<64x1xi32> to vector<64x256xi32>
    %439 = arith.cmpi sle, %12, %438 : vector<64x256xi32>
    %440 = arith.extui %439 : vector<64x256xi1> to vector<64x256xi32>
    %441 = arith.sitofp %440 : vector<64x256xi32> to vector<64x256xf32>
    %cst_90 = arith.constant dense<0.000000e+00> : vector<64xf32>
    %442 = vector.multi_reduction <add>, %441, %cst_90 [1] : vector<64x256xf32> to vector<64xf32>
    %443 = vector.shape_cast %442 : vector<64xf32> to vector<64x1xf32>
    %cst_91 = arith.constant 1.280000e+02 : f32
    %444 = vector.broadcast %cst_91 : f32 to vector<64x1xf32>
    %445 = arith.cmpf oge, %443, %444 : vector<64x1xf32>
    %c8_i32 = arith.constant 8 : i32
    %446 = vector.broadcast %c8_i32 : i32 to vector<64x1xi32>
    %447 = arith.ori %433, %446 : vector<64x1xi32>
    %448 = arith.select %445, %433, %447 : vector<64x1xi1>, vector<64x1xi32>
    %c3_i32 = arith.constant 3 : i32
    %449 = vector.broadcast %c3_i32 : i32 to vector<64x1xi32>
    %450 = arith.ori %448, %449 : vector<64x1xi32>
    %c-2147483648_i32_92 = arith.constant -2147483648 : i32
    %451 = vector.broadcast %c-2147483648_i32_92 : i32 to vector<64x1xi32>
    %452 = arith.xori %450, %451 : vector<64x1xi32>
    %453 = vector.broadcast %452 : vector<64x1xi32> to vector<64x256xi32>
    %454 = arith.cmpi sle, %12, %453 : vector<64x256xi32>
    %455 = arith.extui %454 : vector<64x256xi1> to vector<64x256xi32>
    %456 = arith.sitofp %455 : vector<64x256xi32> to vector<64x256xf32>
    %cst_93 = arith.constant dense<0.000000e+00> : vector<64xf32>
    %457 = vector.multi_reduction <add>, %456, %cst_93 [1] : vector<64x256xf32> to vector<64xf32>
    %458 = vector.shape_cast %457 : vector<64xf32> to vector<64x1xf32>
    %cst_94 = arith.constant 1.280000e+02 : f32
    %459 = vector.broadcast %cst_94 : f32 to vector<64x1xf32>
    %460 = arith.cmpf oge, %458, %459 : vector<64x1xf32>
    %c4_i32 = arith.constant 4 : i32
    %461 = vector.broadcast %c4_i32 : i32 to vector<64x1xi32>
    %462 = arith.ori %448, %461 : vector<64x1xi32>
    %463 = arith.select %460, %448, %462 : vector<64x1xi1>, vector<64x1xi32>
    %c1_i32 = arith.constant 1 : i32
    %464 = vector.broadcast %c1_i32 : i32 to vector<64x1xi32>
    %465 = arith.ori %463, %464 : vector<64x1xi32>
    %c-2147483648_i32_95 = arith.constant -2147483648 : i32
    %466 = vector.broadcast %c-2147483648_i32_95 : i32 to vector<64x1xi32>
    %467 = arith.xori %465, %466 : vector<64x1xi32>
    %468 = vector.broadcast %467 : vector<64x1xi32> to vector<64x256xi32>
    %469 = arith.cmpi sle, %12, %468 : vector<64x256xi32>
    %470 = arith.extui %469 : vector<64x256xi1> to vector<64x256xi32>
    %471 = arith.sitofp %470 : vector<64x256xi32> to vector<64x256xf32>
    %cst_96 = arith.constant dense<0.000000e+00> : vector<64xf32>
    %472 = vector.multi_reduction <add>, %471, %cst_96 [1] : vector<64x256xf32> to vector<64xf32>
    %473 = vector.shape_cast %472 : vector<64xf32> to vector<64x1xf32>
    %cst_97 = arith.constant 1.280000e+02 : f32
    %474 = vector.broadcast %cst_97 : f32 to vector<64x1xf32>
    %475 = arith.cmpf oge, %473, %474 : vector<64x1xf32>
    %c2_i32 = arith.constant 2 : i32
    %476 = vector.broadcast %c2_i32 : i32 to vector<64x1xi32>
    %477 = arith.ori %463, %476 : vector<64x1xi32>
    %478 = arith.select %475, %463, %477 : vector<64x1xi1>, vector<64x1xi32>
    %c0_i32_98 = arith.constant 0 : i32
    %479 = vector.broadcast %c0_i32_98 : i32 to vector<64x1xi32>
    %480 = arith.ori %478, %479 : vector<64x1xi32>
    %c-2147483648_i32_99 = arith.constant -2147483648 : i32
    %481 = vector.broadcast %c-2147483648_i32_99 : i32 to vector<64x1xi32>
    %482 = arith.xori %480, %481 : vector<64x1xi32>
    %483 = vector.broadcast %482 : vector<64x1xi32> to vector<64x256xi32>
    %484 = arith.cmpi sle, %12, %483 : vector<64x256xi32>
    %485 = arith.extui %484 : vector<64x256xi1> to vector<64x256xi32>
    %486 = arith.sitofp %485 : vector<64x256xi32> to vector<64x256xf32>
    %cst_100 = arith.constant dense<0.000000e+00> : vector<64xf32>
    %487 = vector.multi_reduction <add>, %486, %cst_100 [1] : vector<64x256xf32> to vector<64xf32>
    %488 = vector.shape_cast %487 : vector<64xf32> to vector<64x1xf32>
    %cst_101 = arith.constant 1.280000e+02 : f32
    %489 = vector.broadcast %cst_101 : f32 to vector<64x1xf32>
    %490 = arith.cmpf oge, %488, %489 : vector<64x1xf32>
    %c1_i32_102 = arith.constant 1 : i32
    %491 = vector.broadcast %c1_i32_102 : i32 to vector<64x1xi32>
    %492 = arith.ori %478, %491 : vector<64x1xi32>
    %493 = arith.select %490, %478, %492 : vector<64x1xi1>, vector<64x1xi32>
    %c-2147483648_i32_103 = arith.constant -2147483648 : i32
    %494 = vector.broadcast %c-2147483648_i32_103 : i32 to vector<64x1xi32>
    %495 = arith.xori %493, %494 : vector<64x1xi32>
    %496 = vector.broadcast %495 : vector<64x1xi32> to vector<64x256xi32>
    %497 = arith.cmpi sge, %12, %496 : vector<64x256xi32>
    %cst_104 = arith.constant 0x7F800000 : f32
    %498 = vector.broadcast %cst_104 : f32 to vector<64x256xf32>
    %499 = arith.select %497, %0, %498 : vector<64x256xi1>, vector<64x256xf32>
    %cst_105 = arith.constant dense<0x7F800000> : vector<64xf32>
    %500 = vector.multi_reduction <minimumf>, %499, %cst_105 [1] : vector<64x256xf32> to vector<64xf32>
    %501 = vector.shape_cast %500 : vector<64xf32> to vector<64x1xf32>
    %502 = vector.extract_strided_slice %4 {offsets = [0, 0], sizes = [16, 1], strides = [1, 1]} : vector<64x1xf32> to vector<16x1xf32>
    %503 = vector.extract_strided_slice %4 {offsets = [16, 0], sizes = [16, 1], strides = [1, 1]} : vector<64x1xf32> to vector<16x1xf32>
    %504 = vector.extract_strided_slice %4 {offsets = [32, 0], sizes = [16, 1], strides = [1, 1]} : vector<64x1xf32> to vector<16x1xf32>
    %505 = vector.extract_strided_slice %4 {offsets = [48, 0], sizes = [16, 1], strides = [1, 1]} : vector<64x1xf32> to vector<16x1xf32>
    %506 = vector.extract_strided_slice %6 {offsets = [0, 0], sizes = [16, 1], strides = [1, 1]} : vector<64x1xf32> to vector<16x1xf32>
    %507 = vector.extract_strided_slice %6 {offsets = [16, 0], sizes = [16, 1], strides = [1, 1]} : vector<64x1xf32> to vector<16x1xf32>
    %508 = vector.extract_strided_slice %6 {offsets = [32, 0], sizes = [16, 1], strides = [1, 1]} : vector<64x1xf32> to vector<16x1xf32>
    %509 = vector.extract_strided_slice %6 {offsets = [48, 0], sizes = [16, 1], strides = [1, 1]} : vector<64x1xf32> to vector<16x1xf32>
    %510 = vector.extract_strided_slice %501 {offsets = [0, 0], sizes = [16, 1], strides = [1, 1]} : vector<64x1xf32> to vector<16x1xf32>
    %511 = vector.extract_strided_slice %501 {offsets = [16, 0], sizes = [16, 1], strides = [1, 1]} : vector<64x1xf32> to vector<16x1xf32>
    %512 = vector.extract_strided_slice %501 {offsets = [32, 0], sizes = [16, 1], strides = [1, 1]} : vector<64x1xf32> to vector<16x1xf32>
    %513 = vector.extract_strided_slice %501 {offsets = [48, 0], sizes = [16, 1], strides = [1, 1]} : vector<64x1xf32> to vector<16x1xf32>
    %514 = tpu.concatenate %502, %503, %504, %505, %506, %507, %508, %509, %510, %511, %512, %513 in 1 : vector<16x1xf32>, vector<16x1xf32>, vector<16x1xf32>, vector<16x1xf32>, vector<16x1xf32>, vector<16x1xf32>, vector<16x1xf32>, vector<16x1xf32>, vector<16x1xf32>, vector<16x1xf32>, vector<16x1xf32>, vector<16x1xf32> -> vector<16x12xf32>
    %c0_106 = arith.constant 0 : index
    %c0_107 = arith.constant 0 : index
    %515 = vector.load %arg2[%c0_106, %c0_107] : memref<4x16xf32, #tpu.memory_space<vmem>>, vector<4x16xf32>
    %cst_108 = arith.constant dense<0.000000e+00> : vector<4x12xf32>
    %516 = tpu.matmul %515, %514, %cst_108 {dimension_numbers = #tpu.dot_dimension_numbers<[1], [0], [0], [1], [0, 0, 1, 1], [], []>} : vector<4x16xf32>, vector<16x12xf32>, vector<4x12xf32> -> vector<4x12xf32>
    %c0_109 = arith.constant 0 : index
    %c0_110 = arith.constant 0 : index
    %517 = vector.load %arg3[%c0_109, %c0_110] : memref<4x1xf32, #tpu.memory_space<vmem>>, vector<4x1xf32>
    %518 = vector.broadcast %517 : vector<4x1xf32> to vector<4x12xf32>
    %519 = arith.addf %516, %518 : vector<4x12xf32>
    %cst_111 = arith.constant 0.000000e+00 : f32
    %520 = vector.broadcast %cst_111 : f32 to vector<4x12xf32>
    %521 = arith.maximumf %519, %520 : vector<4x12xf32>
    %c0_112 = arith.constant 0 : index
    %c0_113 = arith.constant 0 : index
    %522 = vector.load %arg4[%c0_112, %c0_113] : memref<16x4xf32, #tpu.memory_space<vmem>>, vector<16x4xf32>
    %cst_114 = arith.constant dense<0.000000e+00> : vector<16x12xf32>
    %523 = tpu.matmul %522, %521, %cst_114 {dimension_numbers = #tpu.dot_dimension_numbers<[1], [0], [0], [1], [0, 0, 1, 1], [], []>} : vector<16x4xf32>, vector<4x12xf32>, vector<16x12xf32> -> vector<16x12xf32>
    %c0_115 = arith.constant 0 : index
    %c0_116 = arith.constant 0 : index
    %524 = vector.load %arg5[%c0_115, %c0_116] : memref<16x1xf32, #tpu.memory_space<vmem>>, vector<16x1xf32>
    %525 = vector.broadcast %524 : vector<16x1xf32> to vector<16x12xf32>
    %526 = arith.addf %523, %525 : vector<16x12xf32>
    %527 = arith.negf %526 : vector<16x12xf32>
    %528 = math.exp %527 : vector<16x12xf32>
    %cst_117 = arith.constant 1.000000e+00 : f32
    %529 = vector.broadcast %cst_117 : f32 to vector<16x12xf32>
    %530 = arith.addf %529, %528 : vector<16x12xf32>
    %531 = arith.divf %529, %530 : vector<16x12xf32>
    %532 = vector.extract_strided_slice %531 {offsets = [0, 0], sizes = [16, 4], strides = [1, 1]} : vector<16x12xf32> to vector<16x4xf32>
    %533 = vector.extract_strided_slice %531 {offsets = [0, 4], sizes = [16, 4], strides = [1, 1]} : vector<16x12xf32> to vector<16x4xf32>
    %534 = arith.addf %532, %533 : vector<16x4xf32>
    %535 = vector.extract_strided_slice %531 {offsets = [0, 8], sizes = [16, 4], strides = [1, 1]} : vector<16x12xf32> to vector<16x4xf32>
    %536 = arith.addf %534, %535 : vector<16x4xf32>
    %c0_118 = arith.constant 0 : index
    %c0_119 = arith.constant 0 : index
    %c0_120 = arith.constant 0 : index
    %537 = vector.load %arg6[%c0_118, %c0_119, %c0_120] : memref<1x16x4xf32, #tpu.memory_space<vmem>>, vector<1x16x4xf32>
    %538 = vector.shape_cast %537 : vector<1x16x4xf32> to vector<16x4xf32>
    %539 = vector.shape_cast %536 : vector<16x4xf32> to vector<1x16x4xf32>
    tpu.vector_store %arg6[%c0_118, %c0_119, %c0_120], %539 {strides = array<i32>} : memref<1x16x4xf32, #tpu.memory_space<vmem>>, vector<1x16x4xf32>,
    return
  }
  func.func @transform_0(%arg0: i32) -> (i32, i32) {
    %c0_i32 = arith.constant 0 : i32
    %c0_i32_0 = arith.constant 0 : i32
    return %arg0, %c0_i32 : i32, i32
  }
  func.func @transform_1(%arg0: i32) -> (i32, i32) {
    %c0_i32 = arith.constant 0 : i32
    %c0_i32_0 = arith.constant 0 : i32
    %c0_i32_1 = arith.constant 0 : i32
    return %c0_i32, %c0_i32_0 : i32, i32
  }
  func.func @transform_2(%arg0: i32) -> (i32, i32) {
    %c0_i32 = arith.constant 0 : i32
    %c0_i32_0 = arith.constant 0 : i32
    %c0_i32_1 = arith.constant 0 : i32
    return %c0_i32, %c0_i32_0 : i32, i32
  }
  func.func @transform_3(%arg0: i32) -> (i32, i32) {
    %c0_i32 = arith.constant 0 : i32
    %c0_i32_0 = arith.constant 0 : i32
    %c0_i32_1 = arith.constant 0 : i32
    return %c0_i32, %c0_i32_0 : i32, i32
  }
  func.func @transform_4(%arg0: i32) -> (i32, i32) {
    %c0_i32 = arith.constant 0 : i32
    %c0_i32_0 = arith.constant 0 : i32
    %c0_i32_1 = arith.constant 0 : i32
    return %c0_i32, %c0_i32_0 : i32, i32
  }
  func.func @transform_5(%arg0: i32) -> (i32, i32, i32) {
    %c0_i32 = arith.constant 0 : i32
    %c0_i32_0 = arith.constant 0 : i32
    %c0_i32_1 = arith.constant 0 : i32
    return %arg0, %c0_i32, %c0_i32_0 : i32, i32, i32
  }
}

</mosaic_0001>

<bundles_post_ra>
// kernel: tpu_custom_call.1
= control target key start
LH: loop header
LB: loop body
LE: loop exit
PB: predicated region body
PF: predicated region fallthrough
CT: control target
= control target key end

     0   :  { %10 = vsyncpa [#allocation3], 0  ;;  %s7609_s0 = inlined_call_operand.hbm [shape: f32[256,256], index: 0, kind: input, shape index: {}]   ;;  %s7610_s1 = inlined_call_operand.vmem [shape: f32[4,16], index: 1, kind: input, shape index: {}]   ;;  %s7611_s2 = inlined_call_operand.vmem [shape: f32[4,1], index: 2, kind: input, shape index: {}]   ;;  %s7612_s3 = inlined_call_operand.vmem [shape: f32[16,4], index: 3, kind: input, shape index: {}]   ;;  %s7613_s4 = inlined_call_operand.vmem [shape: f32[16,1], index: 4, kind: input, shape index: {}]   ;;  %s7614_s5 = inlined_call_operand.vmem [shape: f32[4,16,4], index: 5, kind: output, shape index: {}]  }
   0x1   :  { %12 = vsyncpa [#allocation3 + $0x1], 0  ;;  %s5047_s18 = smov 0   ;;  %s5049_s19 = smov 0  }
   0x2   :  { %s5051_s20 = smov 0   ;;  %s5053_s21 = smov 0  }
   0x3 LB: > { %s5066_s22 = sadd.s32 4294967295, %s5005_s21   ;;  %s5069_s23 = sadd.s32 1, %s5005_s21   ;;  %s5005_s21 = sphi %s5053_s21, %s7621_s21   ;;  %s5001_s20 = sphi %s5051_s20, %s7620_s20   ;;  %s4997_s19 = sphi %s5049_s19, %s7619_s19   ;;  %s4993_s18 = sphi %s5047_s18, %s7618_s18  }
   0x4   : > { %s22_s24 = ssub.s32 %s5005_s21, %s5069_s23  ;;  %s25_s25 = sadd.s32 1, %s5001_s20 }
   0x5   : > { %p23_p0 = scmp.eq.s32.totalorder %s22_s24, 0  ;;  %p32_p1 = scmp.ne.s32.totalorder %s5001_s20, %s4997_s19 }
   0x6   : > { %p33_p2 = scmp.eq.s32.totalorder %s5005_s21, 0  ;;  %p38_p3 = scmp.ne.s32.totalorder %s4997_s19, %s4993_s18 }
   0x7   : > { %s5079_s26 = scalar_select %p23_p0, %s5001_s20, %s25_s25  }
   0x8   : > { %p34_p4 = por %p33_p2, %p32_p1  ;;  %p39_p5 = scmp.eq.s32.totalorder %s5066_s22, 0 }
   0x9   : > { %p4873_p6 = scmp.lt.s32.totalorder %s5005_s21, 4  ;;  %s184_s28 = sand.u32 1, %s5001_s20  }
   0xa   : > { %p5083_p7 = por %p39_p5, %p38_p3  ;;  %s4315_s29 = sshll.u32 %s184_s28, 7 }
   0xb   : > { %s4844_s30 = sshll.u32 %s5005_s21, 11  ;;  %s188_s9 = scalar_lea.vmem [#allocation2], %s4315_s29 }
   0xc   : > { %s5092_s8 = scalar_lea.hbm %s7609_s0, %s4844_s30  ;;  %s196_s10 = sshll.u32 %s188_s9, 4  ;;  %s5094_s10 = int_to_ptr.vmem [resolvable:$true] %s196_s10 }
   0xd   : > { %p5096_p8 = pnand %p4873_p6, %p34_p4  ;;  %s5101_s12 = scalar_lea.sflag [#allocation3], %s184_s28 }
   0xe   : > { %s4941_s13 = scalar_lea.hbm %s5092_s8, 2048  ;;  %s4946_s16 = scalar_lea.hbm %s7609_s0, 8192 }
   0xf   : > { %p4942_p10 = scmp.ne.s32.totalorder %s5092_s8, %s4941_s13  ;;  %p4943_p11 = pneg %p5096_p8 }
  0x10   : > { %p4947_p0 = scmp.lt.u32.totalorder %s5092_s8, %s7609_s0  ;;  %p4948_p1 = scmp.lt.u32.totalorder %s4946_s16, %s4941_s13 }
  0x11   : > { %p4944_p12 = pnand %p4943_p11, %p4942_p10  ;;  %p4950_p3 = scmp.lt.u32.totalorder %s4941_s13, %s5092_s8 }
  0x12   : > { %p4949_p2 = por %p4948_p1, %p4947_p0 }
  0x13   : > { %p4945_p13 = pneg %p4944_p12 }
  0x14   : > { %p4951_p4 = por %p4950_p3, %p4949_p2 }
  0x16   : > { %p4952_p5 = pnand %p4951_p4, %p4945_p13 }
  0x18   : > { %4955 = shalt.err (!%p4952_p5)
}
  0x19   : > { %s4956_s24 = scalar_lea.vmem %s5094_s10, 2048  ;;  %s5007_s25 = smov [#allocation2]  }
  0x1a   : > { %p4957_p6 = scmp.ne.s32.totalorder %s5094_s10, %s4956_s24  ;;  %s4961_s28 = sshll.u32 %s5007_s25, 4  ;;  %s4962_s28 = int_to_ptr.vmem [resolvable:$false] %s4961_s28 }
  0x1b   : > { %s4963_s29 = scalar_lea.vmem %s4962_s28, 4096  ;;  %p4964_p9 = scmp.lt.s32.totalorder %s5094_s10, %s4962_s28 }
  0x1c   : > { %p4959_p10 = pnand %p4957_p6, %p4943_p11  ;;  %p4965_p0 = scmp.lt.s32.totalorder %s4963_s29, %s4956_s24 }
  0x1e   : > { %p4960_p12 = pneg %p4959_p10  ;;  %p4966_p1 = por %p4965_p0, %p4964_p9 }
  0x20   : > { %p4967_p2 = pnand %p4966_p1, %p4960_p12 }
  0x22   : > { %4970 = shalt.err (!%p4967_p2)
}
  0x23   : > { %s5008_s30 = smov 256   ;;  %s5009_s6 = smov 16  }
  0x24   : > { %4872 = dma.hbm_to_vmem [thread:$0]  (!%p5096_p8), %s5092_s8, 2048, %s5094_s10, %s5101_s12, %s5008_s30, %s5008_s30, %s5009_s6  }
  0x25   : > { %p204_p11 = scmp.lt.s32.totalorder %s5005_s21, 5  ;;  %p7617_p13 = scmp.ge.s32.totalorder %s5005_s21, 1 }
  0x27   : > { %p205_p3 = pnand %p7617_p13, %p204_p11 }
  0x28   : > { %s210_s7 = sand.u32 (!%p205_p3), 1, %s4997_s19  }
  0x29   : > { %208 = sbr.rel (%p205_p3) target bundleno = 5677 (0x162d), region = 40  ;;  %s4320_s9 = sshll.u32 (!%p205_p3), %s210_s7, 7 }
  0x2a   : > { %s211_s13 = scalar_lea.sflag (!%p205_p3), [#allocation3], %s210_s7  ;;  %s5133_s14 = scalar_lea.vmem (!%p205_p3), [#allocation2], %s4320_s9 }
  0x30   : > { %4988 = dma.done.wait (%p5083_p7), %s211_s13, 2048  }
  0x31   : > { %4990 = vsyncadd (%p5083_p7), %s211_s13, 4294965248  ;;  %v247_v0 = vld [vmem:[%s5133_s14] sm:$0xff]  ;;  %v248_v1 = vld [vmem:[%s5133_s14 + $0x8] sm:$0xff]  ;;  %v5010_v14 = vmov 0.0   ;;  %s5015_s28 = smov 124   ;;  %s5016_s29 = smov 120  }
  0x32   : > { %v251_v2 = vld [vmem:[%s5133_s14 + $0x20] sm:$0xff]  ;;  %vm335_vm0 = vcmp.lt.s32.totalorder %v247_v0, 0  ;;  %vm336_vm1 = vcmp.lt.s32.totalorder %v248_v1, 0  ;;  %v351_v3 = vxor.u32 2147483647, %v247_v0  ;;  %v252_v5 = vld [vmem:[%s5133_s14 + $0x28] sm:$0xff] }
  0x33   : > { %v352_v4 = vxor.u32 2147483647, %v248_v1  ;;  %vm339_vm2 = vcmp.lt.s32.totalorder %v251_v2, 0  ;;  %v355_v6 = vxor.u32 2147483647, %v251_v2  ;;  %v249_v7 = vld [vmem:[%s5133_s14 + $0x10] sm:$0xff] }
  0x34   : > { %v5144_v8 = vsel %vm335_vm0, %v351_v3, %v247_v0  ;;  %vm340_vm3 = vcmp.lt.s32.totalorder %v252_v5, 0  ;;  %v356_v10 = vxor.u32 2147483647, %v252_v5  ;;  %v250_v11 = vld [vmem:[%s5133_s14 + $0x18] sm:$0xff]  ;;  %vm337_vm6 = vcmp.lt.s32.totalorder %v249_v7, 0  ;;  %v253_v13 = vld [vmem:[%s5133_s14 + $0x30] sm:$0xff] }
  0x35   : > { %v5146_v9 = vsel %vm336_vm1, %v352_v4, %v248_v1  ;;  %vm383_vm4 = vcmp.le.s32.totalorder %v5144_v8, 4294967295  ;;  %v5151_v12 = vsel %vm339_vm2, %v355_v6, %v251_v2  ;;  %v254_v18 = vld [vmem:[%s5133_s14 + $0x38] sm:$0xff]  ;;  %vm338_vm9 = vcmp.lt.s32.totalorder %v250_v11, 0  ;;  %v255_v21 = vld [vmem:[%s5133_s14 + $0x40] sm:$0xff]  ;;  %v256_v22 = vld [vmem:[%s5133_s14 + $0x48] sm:$0xff]  ;;  %p242_p7 = scmp.lt.s32.totalorder %s5066_s22, 3 }
  0x36   : > { %vm384_vm5 = vcmp.le.s32.totalorder %v5146_v9, 4294967295  ;;  %v4323_v15 = vsel %vm383_vm4, 1.0, %v5010_v14  ;;  %v5156_v17 = vsel %vm340_vm3, %v356_v10, %v252_v5  ;;  %vm387_vm7 = vcmp.le.s32.totalorder %v5151_v12, 4294967295  ;;  %v257_v33 = vld [vmem:[%s5133_s14 + $0x50] sm:$0xff]  ;;  %v258_v34 = vld [vmem:[%s5133_s14 + $0x58] sm:$0xff]  ;;  %v259_v37 = vld [vmem:[%s5133_s14 + $0x60] sm:$0xff] }
  0x37   : > { %v4324_v16 = vsel %vm384_vm5, 1.0, %v5010_v14  ;;  %vm388_vm8 = vcmp.le.s32.totalorder %v5156_v17, 4294967295  ;;  %v4327_v20 = vsel %vm387_vm7, 1.0, %v5010_v14  ;;  %v353_v24 = vxor.u32 2147483647, %v249_v7  ;;  %v260_v42 = vld [vmem:[%s5133_s14 + $0x68] sm:$0xff] }
  0x38   : > { %v431_v19 = vadd.f32 %v4324_v16, %v4323_v15  ;;  %v4328_v23 = vsel %vm388_vm8, 1.0, %v5010_v14  ;;  %v354_v25 = vxor.u32 2147483647, %v250_v11  ;;  %vm341_vm10 = vcmp.lt.s32.totalorder %v253_v13, 0  ;;  %v261_v53 = vld [vmem:[%s5133_s14 + $0x70] sm:$0xff]  ;;  %v262_v56 = vld [vmem:[%s5133_s14 + $0x78] sm:$0xff] }
  0x39   : > { %v437_v26 = vadd.f32 %v4328_v23, %v4327_v20  ;;  %vm342_vm11 = vcmp.lt.s32.totalorder %v254_v18, 0  ;;  %v357_v27 = vxor.u32 2147483647, %v253_v13  ;;  %v358_v28 = vxor.u32 2147483647, %v254_v18  ;;  %s7623_s22 = smov (!%p242_p7, %s5066_s22), 3 }
  0x3a   : > { %432 = vadd.xlane.f32.xlu0 %v431_v19  ;;  %v5166_v29 = vsel %vm337_vm6, %v353_v24, %v249_v7  ;;  %v5168_v30 = vsel %vm338_vm9, %v354_v25, %v250_v11  ;;  %vm343_vm12 = vcmp.lt.s32.totalorder %v255_v21, 0  ;;  %vm344_vm13 = vcmp.lt.s32.totalorder %v256_v22, 0  ;;  %s4845_s30 = sshll.u32 %s7623_s22, 4 }
  0x3b   : > { %438 = vadd.xlane.f32.xlu1 %v437_v26  ;;  %vm385_vm14 = vcmp.le.s32.totalorder %v5166_v29, 4294967295  ;;  %vm386_vm15 = vcmp.le.s32.totalorder %v5168_v30, 4294967295  ;;  %v5172_v31 = vsel %vm341_vm10, %v357_v27, %v253_v13  ;;  %v5174_v32 = vsel %vm342_vm11, %v358_v28, %v254_v18  ;;  %s246_s9 = scalar_lea.vmem %s7614_s5, %s4845_s30 }
  0x3c   : > { %v4325_v35 = vsel %vm385_vm14, 1.0, %v5010_v14  ;;  %v4326_v36 = vsel %vm386_vm15, 1.0, %v5010_v14  ;;  %vm389_vm0 = vcmp.le.s32.totalorder %v5172_v31, 4294967295  ;;  %vm390_vm1 = vcmp.le.s32.totalorder %v5174_v32, 4294967295 }
  0x3d   : > { %v434_v38 = vadd.f32 %v4326_v36, %v4325_v35  ;;  %v4329_v39 = vsel %vm389_vm0, 1.0, %v5010_v14  ;;  %v4330_v40 = vsel %vm390_vm1, 1.0, %v5010_v14  ;;  %v359_v41 = vxor.u32 2147483647, %v255_v21 }
  0x3e   : > { %v440_v43 = vadd.f32 %v4330_v40, %v4329_v39  ;;  %v360_v44 = vxor.u32 2147483647, %v256_v22  ;;  %vm345_vm2 = vcmp.lt.s32.totalorder %v257_v33, 0  ;;  %vm346_vm3 = vcmp.lt.s32.totalorder %v258_v34, 0 }
  0x3f   : > { %435 = vadd.xlane.f32.xlu0 %v434_v38  ;;  %v5187_v45 = vsel %vm343_vm12, %v359_v41, %v255_v21  ;;  %v361_v46 = vxor.u32 2147483647, %v257_v33  ;;  %v362_v47 = vxor.u32 2147483647, %v258_v34  ;;  %vm347_vm4 = vcmp.lt.s32.totalorder %v259_v37, 0 }
  0x40   : > { %441 = vadd.xlane.f32.xlu1 %v440_v43  ;;  %v5190_v48 = vsel %vm344_vm13, %v360_v44, %v256_v22  ;;  %vm391_vm5 = vcmp.le.s32.totalorder %v5187_v45, 4294967295  ;;  %vm348_vm6 = vcmp.lt.s32.totalorder %v260_v42, 0  ;;  %v363_v49 = vxor.u32 2147483647, %v259_v37 }
  0x41   : > { %vm392_vm7 = vcmp.le.s32.totalorder %v5190_v48, 4294967295  ;;  %v4331_v50 = vsel %vm391_vm5, 1.0, %v5010_v14  ;;  %v5195_v51 = vsel %vm345_vm2, %v361_v46, %v257_v33  ;;  %v5197_v52 = vsel %vm346_vm3, %v362_v47, %v258_v34 }
  0x42   : > { %v4332_v54 = vsel %vm392_vm7, 1.0, %v5010_v14  ;;  %vm393_vm8 = vcmp.le.s32.totalorder %v5195_v51, 4294967295  ;;  %vm394_vm9 = vcmp.le.s32.totalorder %v5197_v52, 4294967295  ;;  %v364_v55 = vxor.u32 2147483647, %v260_v42 }
  0x43   : > { %v443_v57 = vadd.f32 %v4332_v54, %v4331_v50  ;;  %v4333_v58 = vsel %vm393_vm8, 1.0, %v5010_v14  ;;  %v4334_v59 = vsel %vm394_vm9, 1.0, %v5010_v14  ;;  %v5207_v60 = vsel %vm347_vm4, %v363_v49, %v259_v37 }
  0x44   : > { %v446_v61 = vadd.f32 %v4334_v59, %v4333_v58  ;;  %v5210_v62 = vsel %vm348_vm6, %v364_v55, %v260_v42  ;;  %vm395_vm10 = vcmp.le.s32.totalorder %v5207_v60, 4294967295  ;;  %vm349_vm11 = vcmp.lt.s32.totalorder %v261_v53, 0 }
  0x45   : > { %444 = vadd.xlane.f32.xlu0 %v443_v57  ;;  %vm396_vm12 = vcmp.le.s32.totalorder %v5210_v62, 4294967295  ;;  %v4335_v63 = vsel %vm395_vm10, 1.0, %v5010_v14  ;;  %vm350_vm13 = vcmp.lt.s32.totalorder %v262_v56, 0  ;;  %v365_v0 = vxor.u32 2147483647, %v261_v53 }
  0x46   : > { %447 = vadd.xlane.f32.xlu1 %v446_v61  ;;  %v4336_v1 = vsel %vm396_vm12, 1.0, %v5010_v14  ;;  %v366_v2 = vxor.u32 2147483647, %v262_v56  ;;  %v5011_v13 = vmov 2147483648  }
  0x47   : > { %v449_v3 = vadd.f32 %v4336_v1, %v4335_v63  ;;  %v5216_v4 = vsel %vm349_vm11, %v365_v0, %v261_v53 }
  0x48   : > { %v5218_v5 = vsel %vm350_vm13, %v366_v2, %v262_v56  ;;  %vm397_vm14 = vcmp.le.s32.totalorder %v5216_v4, 4294967295 }
  0x49   : > { %450 = vadd.xlane.f32.xlu0 %v449_v3  ;;  %vm398_vm15 = vcmp.le.s32.totalorder %v5218_v5, 4294967295  ;;  %v4337_v6 = vsel %vm397_vm14, 1.0, %v5010_v14 }
  0x4a   : > { %v4338_v7 = vsel %vm398_vm15, 1.0, %v5010_v14 }
  0x4b   : > { %v452_v10 = vadd.f32 %v4338_v7, %v4337_v6 }
  0x4d   : > { %453 = vadd.xlane.f32.xlu1 %v452_v10 }
  0xc7   : > { %v433_v11 = vpop.xlane.xlu0 %432 }
  0xc8   : > { %vm455_vm0 = vcmp.ge.f32.partialorder %v433_v11, 128.0  ;;  %v439_v16 = vpop.xlane.xlu1 %438 }
  0xc9   : > { %v5225_v15 = vsel %vm455_vm0, 0, %v5011_v13  ;;  %vm457_vm1 = vcmp.ge.f32.partialorder %v439_v16, 128.0 }
  0xca   : > { %v471_v18 = vor.u32 1073741823, %v5225_v15  ;;  %v5229_v19 = vsel %vm457_vm1, 0, %v5011_v13 }
  0xcb   : > { %v473_v20 = vor.u32 1073741823, %v5229_v19 }
  0xcc   : > { %v479_v21 = vxor.u32 2147483648, %v471_v18  ;;  %v436_v22 = vpop.xlane.xlu0 %435 }
  0xcd   : > { %vm456_vm2 = vcmp.ge.f32.partialorder %v436_v22, 128.0  ;;  %v442_v23 = vpop.xlane.xlu1 %441  ;;  %v481_v24 = vxor.u32 2147483648, %v473_v20 }
  0xce   : > { %vm487_vm3 = vcmp.le.s32.totalorder %v5144_v8, %v479_v21  ;;  %vm488_vm4 = vcmp.le.s32.totalorder %v5146_v9, %v479_v21  ;;  %v5235_v25 = vsel %vm456_vm2, 0, %v5011_v13  ;;  %vm458_vm5 = vcmp.ge.f32.partialorder %v442_v23, 128.0 }
  0xcf   : > { %v4339_v26 = vsel %vm487_vm3, 1.0, %v5010_v14  ;;  %v4340_v27 = vsel %vm488_vm4, 1.0, %v5010_v14  ;;  %v472_v28 = vor.u32 1073741823, %v5235_v25  ;;  %v5241_v33 = vsel %vm458_vm5, 0, %v5011_v13 }
  0xd0   : > { %v535_v34 = vadd.f32 %v4340_v27, %v4339_v26  ;;  %v474_v35 = vor.u32 1073741823, %v5241_v33  ;;  %vm491_vm6 = vcmp.le.s32.totalorder %v5151_v12, %v481_v24  ;;  %vm492_vm7 = vcmp.le.s32.totalorder %v5156_v17, %v481_v24 }
  0xd1   : > { %v4343_v36 = vsel %vm491_vm6, 1.0, %v5010_v14  ;;  %v4344_v37 = vsel %vm492_vm7, 1.0, %v5010_v14  ;;  %v480_v38 = vxor.u32 2147483648, %v472_v28  ;;  %v567_v27 = vor.u32 1073741824, %v5225_v15 }
  0xd2   : > { %536 = vadd.xlane.f32.xlu0 %v535_v34  ;;  %v445_v39 = vpop.xlane.xlu0 %444  ;;  %v541_v40 = vadd.f32 %v4344_v37, %v4343_v36  ;;  %v482_v41 = vxor.u32 2147483648, %v474_v35  ;;  %v569_v36 = vor.u32 1073741824, %v5229_v19 }
  0xd3   : > { %vm459_vm8 = vcmp.ge.f32.partialorder %v445_v39, 128.0  ;;  %v448_v42 = vpop.xlane.xlu1 %447  ;;  %vm489_vm9 = vcmp.le.s32.totalorder %v5166_v29, %v480_v38  ;;  %vm490_vm10 = vcmp.le.s32.totalorder %v5168_v30, %v480_v38  ;;  %v568_v39 = vor.u32 1073741824, %v5235_v25 }
  0xd4   : > { %v5251_v43 = vsel %vm459_vm8, 0, %v5011_v13  ;;  %vm460_vm11 = vcmp.ge.f32.partialorder %v448_v42, 128.0  ;;  %v4341_v44 = vsel %vm489_vm9, 1.0, %v5010_v14  ;;  %v4342_v46 = vsel %vm490_vm10, 1.0, %v5010_v14 }
  0xd5   : > { %v475_v47 = vor.u32 1073741823, %v5251_v43  ;;  %v5257_v49 = vsel %vm460_vm11, 0, %v5011_v13  ;;  %v538_v50 = vadd.f32 %v4342_v46, %v4341_v44  ;;  %vm493_vm12 = vcmp.le.s32.totalorder %v5172_v31, %v482_v41 }
  0xd6   : > { %542 = vadd.xlane.f32.xlu0 %v541_v40  ;;  %v476_v53 = vor.u32 1073741823, %v5257_v49  ;;  %v451_v54 = vpop.xlane.xlu0 %450  ;;  %vm494_vm13 = vcmp.le.s32.totalorder %v5174_v32, %v482_v41  ;;  %v4345_v55 = vsel %vm493_vm12, 1.0, %v5010_v14 }
  0xd7   : > { %vm461_vm14 = vcmp.ge.f32.partialorder %v451_v54, 128.0  ;;  %539 = vadd.xlane.f32.xlu1 %v538_v50  ;;  %v4346_v56 = vsel %vm494_vm13, 1.0, %v5010_v14  ;;  %v483_v57 = vxor.u32 2147483648, %v475_v47  ;;  %v570_v54 = vor.u32 1073741824, %v5241_v33 }
  0xd8   : > { %v5265_v58 = vsel %vm461_vm14, 0, %v5011_v13  ;;  %v544_v59 = vadd.f32 %v4346_v56, %v4345_v55  ;;  %v484_v61 = vxor.u32 2147483648, %v476_v53  ;;  %v571_v56 = vor.u32 1073741824, %v5251_v43 }
  0xd9   : > { %v477_v63 = vor.u32 1073741823, %v5265_v58  ;;  %vm495_vm15 = vcmp.le.s32.totalorder %v5187_v45, %v483_v57  ;;  %vm496_vm0 = vcmp.le.s32.totalorder %v5190_v48, %v483_v57 }
  0xda   : > { %v454_v0 = vpop.xlane.xlu1 %453  ;;  %v4347_v1 = vsel %vm495_vm15, 1.0, %v5010_v14  ;;  %v4348_v2 = vsel %vm496_vm0, 1.0, %v5010_v14  ;;  %vm497_vm1 = vcmp.le.s32.totalorder %v5195_v51, %v484_v61  ;;  %vm498_vm2 = vcmp.le.s32.totalorder %v5197_v52, %v484_v61 }
  0xdb   : > { %vm462_vm3 = vcmp.ge.f32.partialorder %v454_v0, 128.0  ;;  %545 = vadd.xlane.f32.xlu1 %v544_v59  ;;  %v547_v3 = vadd.f32 %v4348_v2, %v4347_v1  ;;  %v4349_v6 = vsel %vm497_vm1, 1.0, %v5010_v14  ;;  %v4350_v7 = vsel %vm498_vm2, 1.0, %v5010_v14 }
  0xdc   : > { %v5277_v10 = vsel %vm462_vm3, 0, %v5011_v13  ;;  %v550_v11 = vadd.f32 %v4350_v7, %v4349_v6  ;;  %v485_v16 = vxor.u32 2147483648, %v477_v63 }
  0xdd   : > { %v478_v18 = vor.u32 1073741823, %v5277_v10  ;;  %548 = vadd.xlane.f32.xlu0 %v547_v3 }
  0xde   : > { %vm499_vm4 = vcmp.le.s32.totalorder %v5207_v60, %v485_v16  ;;  %vm500_vm5 = vcmp.le.s32.totalorder %v5210_v62, %v485_v16 }
  0xdf   : > { %551 = vadd.xlane.f32.xlu1 %v550_v11  ;;  %v4351_v20 = vsel %vm499_vm4, 1.0, %v5010_v14  ;;  %v4352_v21 = vsel %vm500_vm5, 1.0, %v5010_v14  ;;  %v486_v22 = vxor.u32 2147483648, %v478_v18 }
  0xe0   : > { %v553_v23 = vadd.f32 %v4352_v21, %v4351_v20  ;;  %v573_v20 = vor.u32 1073741824, %v5265_v58 }
  0xe1   : > { %vm501_vm6 = vcmp.le.s32.totalorder %v5216_v4, %v486_v22  ;;  %vm502_vm7 = vcmp.le.s32.totalorder %v5218_v5, %v486_v22 }
  0xe2   : > { %554 = vadd.xlane.f32.xlu0 %v553_v23  ;;  %v4353_v13 = vsel %vm501_vm6, 1.0, %v5010_v14  ;;  %v4354_v24 = vsel %vm502_vm7, 1.0, %v5010_v14  ;;  %v574_v23 = vor.u32 1073741824, %v5277_v10 }
  0xe3   : > { %v556_v26 = vadd.f32 %v4354_v24, %v4353_v13 }
  0xe5   : > { %557 = vadd.xlane.f32.xlu1 %v556_v26 }
 0x15f   : > { %v537_v28 = vpop.xlane.xlu0 %536 }
 0x160   : > { %vm559_vm8 = vcmp.ge.f32.partialorder %v537_v28, 128.0 }
 0x161   : > { %v5290_v34 = vsel %vm559_vm8, %v5225_v15, %v567_v27 }
 0x162   : > { %v583_v35 = vor.u32 536870911, %v5290_v34 }
 0x163   : > { %v543_v37 = vpop.xlane.xlu0 %542 }
 0x164   : > { %vm561_vm9 = vcmp.ge.f32.partialorder %v543_v37, 128.0  ;;  %v591_v38 = vxor.u32 2147483648, %v583_v35  ;;  %v540_v40 = vpop.xlane.xlu1 %539 }
 0x165   : > { %v5296_v41 = vsel %vm561_vm9, %v5229_v19, %v569_v36  ;;  %vm560_vm10 = vcmp.ge.f32.partialorder %v540_v40, 128.0 }
 0x166   : > { %vm599_vm11 = vcmp.le.s32.totalorder %v5144_v8, %v591_v38  ;;  %vm600_vm12 = vcmp.le.s32.totalorder %v5146_v9, %v591_v38  ;;  %v5301_v15 = vsel %vm560_vm10, %v5235_v25, %v568_v39  ;;  %v585_v46 = vor.u32 536870911, %v5296_v41 }
 0x167   : > { %v4355_v42 = vsel %vm599_vm11, 1.0, %v5010_v14  ;;  %v4356_v44 = vsel %vm600_vm12, 1.0, %v5010_v14  ;;  %v584_v50 = vor.u32 536870911, %v5301_v15  ;;  %v572_v25 = vor.u32 1073741824, %v5257_v49 }
 0x168   : > { %v647_v47 = vadd.f32 %v4356_v44, %v4355_v42  ;;  %v546_v53 = vpop.xlane.xlu1 %545  ;;  %v593_v19 = vxor.u32 2147483648, %v585_v46 }
 0x169   : > { %vm562_vm13 = vcmp.ge.f32.partialorder %v546_v53, 128.0  ;;  %v592_v55 = vxor.u32 2147483648, %v584_v50 }
 0x16a   : > { %648 = vadd.xlane.f32.xlu0 %v647_v47  ;;  %v549_v57 = vpop.xlane.xlu0 %548  ;;  %vm603_vm14 = vcmp.le.s32.totalorder %v5151_v12, %v593_v19  ;;  %vm604_vm15 = vcmp.le.s32.totalorder %v5156_v17, %v593_v19  ;;  %v5313_v59 = vsel %vm562_vm13, %v5241_v33, %v570_v54 }
 0x16b   : > { %vm563_vm0 = vcmp.ge.f32.partialorder %v549_v57, 128.0  ;;  %vm601_vm1 = vcmp.le.s32.totalorder %v5166_v29, %v592_v55  ;;  %vm602_vm2 = vcmp.le.s32.totalorder %v5168_v30, %v592_v55  ;;  %v4359_v2 = vsel %vm603_vm14, 1.0, %v5010_v14 }
 0x16c   : > { %v5318_v61 = vsel %vm563_vm0, %v5251_v43, %v571_v56  ;;  %v552_v63 = vpop.xlane.xlu1 %551  ;;  %v4357_v0 = vsel %vm601_vm1, 1.0, %v5010_v14  ;;  %v4358_v1 = vsel %vm602_vm2, 1.0, %v5010_v14  ;;  %v4360_v33 = vsel %vm604_vm15, 1.0, %v5010_v14 }
 0x16d   : > { %vm564_vm3 = vcmp.ge.f32.partialorder %v552_v63, 128.0  ;;  %v650_v3 = vadd.f32 %v4358_v1, %v4357_v0  ;;  %v653_v7 = vadd.f32 %v4360_v33, %v4359_v2  ;;  %v586_v11 = vor.u32 536870911, %v5313_v59 }
 0x16e   : > { %v5325_v6 = vsel %vm564_vm3, %v5257_v49, %v572_v25  ;;  %v587_v43 = vor.u32 536870911, %v5318_v61  ;;  %v679_v56 = vor.u32 536870912, %v5290_v34  ;;  %v680_v1 = vor.u32 536870912, %v5301_v15 }
 0x16f   : > { %v555_v16 = vpop.xlane.xlu0 %554  ;;  %651 = vadd.xlane.f32.xlu1 %v650_v3  ;;  %v588_v18 = vor.u32 536870911, %v5325_v6  ;;  %654 = vadd.xlane.f32.xlu0 %v653_v7  ;;  %v594_v21 = vxor.u32 2147483648, %v586_v11  ;;  %v681_v3 = vor.u32 536870912, %v5296_v41 }
 0x170   : > { %vm565_vm4 = vcmp.ge.f32.partialorder %v555_v16, 128.0  ;;  %v595_v22 = vxor.u32 2147483648, %v587_v43 }
 0x171   : > { %v596_v13 = vxor.u32 2147483648, %v588_v18  ;;  %v5333_v49 = vsel %vm565_vm4, %v5265_v58, %v573_v20  ;;  %vm605_vm5 = vcmp.le.s32.totalorder %v5172_v31, %v594_v21  ;;  %vm606_vm6 = vcmp.le.s32.totalorder %v5174_v32, %v594_v21 }
 0x172   : > { %v558_v24 = vpop.xlane.xlu1 %557  ;;  %vm607_vm7 = vcmp.le.s32.totalorder %v5187_v45, %v595_v22  ;;  %v4361_v26 = vsel %vm605_vm5, 1.0, %v5010_v14  ;;  %v4362_v27 = vsel %vm606_vm6, 1.0, %v5010_v14  ;;  %vm608_vm9 = vcmp.le.s32.totalorder %v5190_v48, %v595_v22 }
 0x173   : > { %vm566_vm8 = vcmp.ge.f32.partialorder %v558_v24, 128.0  ;;  %v656_v35 = vadd.f32 %v4362_v27, %v4361_v26  ;;  %v4363_v58 = vsel %vm607_vm7, 1.0, %v5010_v14  ;;  %v4364_v36 = vsel %vm608_vm9, 1.0, %v5010_v14 }
 0x174   : > { %v5342_v28 = vsel %vm566_vm8, %v5277_v10, %v574_v23  ;;  %v659_v37 = vadd.f32 %v4364_v36, %v4363_v58  ;;  %vm609_vm10 = vcmp.le.s32.totalorder %v5195_v51, %v596_v13  ;;  %vm610_vm11 = vcmp.le.s32.totalorder %v5197_v52, %v596_v13 }
 0x175   : > { %657 = vadd.xlane.f32.xlu1 %v656_v35  ;;  %v4365_v38 = vsel %vm609_vm10, 1.0, %v5010_v14  ;;  %v4366_v39 = vsel %vm610_vm11, 1.0, %v5010_v14  ;;  %v589_v40 = vor.u32 536870911, %v5333_v49  ;;  %v590_v10 = vor.u32 536870911, %v5342_v28 }
 0x176   : > { %660 = vadd.xlane.f32.xlu0 %v659_v37  ;;  %v662_v42 = vadd.f32 %v4366_v39, %v4365_v38  ;;  %v682_v23 = vor.u32 536870912, %v5313_v59  ;;  %v684_v38 = vor.u32 536870912, %v5325_v6 }
 0x177   : > { %v597_v44 = vxor.u32 2147483648, %v589_v40  ;;  %v598_v46 = vxor.u32 2147483648, %v590_v10 }
 0x179   : > { %663 = vadd.xlane.f32.xlu1 %v662_v42  ;;  %vm611_vm12 = vcmp.le.s32.totalorder %v5207_v60, %v597_v44  ;;  %vm612_vm13 = vcmp.le.s32.totalorder %v5210_v62, %v597_v44  ;;  %vm613_vm14 = vcmp.le.s32.totalorder %v5216_v4, %v598_v46  ;;  %vm614_vm15 = vcmp.le.s32.totalorder %v5218_v5, %v598_v46 }
 0x17a   : > { %v4367_v47 = vsel %vm611_vm12, 1.0, %v5010_v14  ;;  %v4368_v50 = vsel %vm612_vm13, 1.0, %v5010_v14  ;;  %v4369_v53 = vsel %vm613_vm14, 1.0, %v5010_v14  ;;  %v4370_v19 = vsel %vm614_vm15, 1.0, %v5010_v14 }
 0x17b   : > { %v665_v54 = vadd.f32 %v4368_v50, %v4367_v47  ;;  %v668_v55 = vadd.f32 %v4370_v19, %v4369_v53  ;;  %v685_v46 = vor.u32 536870912, %v5333_v49  ;;  %v686_v47 = vor.u32 536870912, %v5342_v28 }
 0x17d   : > { %666 = vadd.xlane.f32.xlu0 %v665_v54  ;;  %669 = vadd.xlane.f32.xlu1 %v668_v55 }
 0x1f7   : > { %v649_v25 = vpop.xlane.xlu0 %648 }
 0x1f8   : > { %vm671_vm0 = vcmp.ge.f32.partialorder %v649_v25, 128.0 }
 0x1f9   : > { %v5362_v57 = vsel %vm671_vm0, %v5290_v34, %v679_v56 }
 0x1fa   : > { %v695_v63 = vor.u32 268435455, %v5362_v57 }
 0x1fc   : > { %v703_v0 = vxor.u32 2147483648, %v695_v63  ;;  %v652_v2 = vpop.xlane.xlu1 %651  ;;  %v655_v33 = vpop.xlane.xlu0 %654 }
 0x1fd   : > { %vm672_vm1 = vcmp.ge.f32.partialorder %v652_v2, 128.0  ;;  %vm673_vm4 = vcmp.ge.f32.partialorder %v655_v33, 128.0 }
 0x1fe   : > { %vm711_vm2 = vcmp.le.s32.totalorder %v5144_v8, %v703_v0  ;;  %vm712_vm3 = vcmp.le.s32.totalorder %v5146_v9, %v703_v0  ;;  %v5370_v7 = vsel %vm672_vm1, %v5301_v15, %v680_v1  ;;  %v5375_v43 = vsel %vm673_vm4, %v5296_v41, %v681_v3 }
 0x1ff   : > { %v4371_v34 = vsel %vm711_vm2, 1.0, %v5010_v14  ;;  %v4372_v11 = vsel %vm712_vm3, 1.0, %v5010_v14  ;;  %v696_v18 = vor.u32 268435455, %v5370_v7  ;;  %v697_v20 = vor.u32 268435455, %v5375_v43 }
 0x200   : > { %v759_v16 = vadd.f32 %v4372_v11, %v4371_v34  ;;  %v683_v15 = vor.u32 536870912, %v5318_v61 }
 0x201   : > { %v704_v21 = vxor.u32 2147483648, %v696_v18  ;;  %v705_v22 = vxor.u32 2147483648, %v697_v20 }
 0x202   : > { %760 = vadd.xlane.f32.xlu0 %v759_v16  ;;  %v658_v13 = vpop.xlane.xlu1 %657 }
 0x203   : > { %vm713_vm5 = vcmp.le.s32.totalorder %v5166_v29, %v704_v21  ;;  %vm714_vm6 = vcmp.le.s32.totalorder %v5168_v30, %v704_v21  ;;  %vm674_vm7 = vcmp.ge.f32.partialorder %v658_v13, 128.0  ;;  %v661_v41 = vpop.xlane.xlu0 %660  ;;  %vm715_vm8 = vcmp.le.s32.totalorder %v5151_v12, %v705_v22 }
 0x204   : > { %v4373_v24 = vsel %vm713_vm5, 1.0, %v5010_v14  ;;  %v4374_v26 = vsel %vm714_vm6, 1.0, %v5010_v14  ;;  %v5387_v27 = vsel %vm674_vm7, %v5313_v59, %v682_v23  ;;  %vm675_vm9 = vcmp.ge.f32.partialorder %v661_v41, 128.0 }
 0x205   : > { %v762_v35 = vadd.f32 %v4374_v26, %v4373_v24  ;;  %vm716_vm10 = vcmp.le.s32.totalorder %v5156_v17, %v705_v22  ;;  %v5391_v58 = vsel %vm675_vm9, %v5318_v61, %v683_v15  ;;  %v4375_v36 = vsel %vm715_vm8, 1.0, %v5010_v14 }
 0x206   : > { %v4376_v37 = vsel %vm716_vm10, 1.0, %v5010_v14  ;;  %v664_v39 = vpop.xlane.xlu1 %663  ;;  %v698_v10 = vor.u32 268435455, %v5387_v27  ;;  %v699_v59 = vor.u32 268435455, %v5391_v58  ;;  %v791_v13 = vor.u32 268435456, %v5362_v57 }
 0x207   : > { %763 = vadd.xlane.f32.xlu1 %v762_v35  ;;  %v765_v40 = vadd.f32 %v4376_v37, %v4375_v36  ;;  %vm676_vm11 = vcmp.ge.f32.partialorder %v664_v39, 128.0  ;;  %v792_v36 = vor.u32 268435456, %v5370_v7 }
 0x208   : > { %v5399_v42 = vsel %vm676_vm11, %v5325_v6, %v684_v38  ;;  %v706_v61 = vxor.u32 2147483648, %v698_v10  ;;  %v707_v44 = vxor.u32 2147483648, %v699_v59  ;;  %v793_v38 = vor.u32 268435456, %v5375_v43 }
 0x209   : > { %766 = vadd.xlane.f32.xlu0 %v765_v40  ;;  %v700_v50 = vor.u32 268435455, %v5399_v42 }
 0x20a   : > { %v667_v53 = vpop.xlane.xlu0 %666  ;;  %v670_v19 = vpop.xlane.xlu1 %669  ;;  %vm717_vm12 = vcmp.le.s32.totalorder %v5172_v31, %v706_v61  ;;  %vm718_vm13 = vcmp.le.s32.totalorder %v5174_v32, %v706_v61  ;;  %vm719_vm14 = vcmp.le.s32.totalorder %v5187_v45, %v707_v44  ;;  %vm720_vm15 = vcmp.le.s32.totalorder %v5190_v48, %v707_v44 }
 0x20b   : > { %vm677_vm0 = vcmp.ge.f32.partialorder %v667_v53, 128.0  ;;  %vm678_vm1 = vcmp.ge.f32.partialorder %v670_v19, 128.0  ;;  %v4377_v6 = vsel %vm717_vm12, 1.0, %v5010_v14  ;;  %v4378_v54 = vsel %vm718_vm13, 1.0, %v5010_v14 }
 0x20c   : > { %v5411_v55 = vsel %vm677_vm0, %v5333_v49, %v685_v46  ;;  %v5414_v56 = vsel %vm678_vm1, %v5342_v28, %v686_v47  ;;  %v768_v25 = vadd.f32 %v4378_v54, %v4377_v6  ;;  %v4379_v63 = vsel %vm719_vm14, 1.0, %v5010_v14 }
 0x20d   : > { %v4380_v0 = vsel %vm720_vm15, 1.0, %v5010_v14  ;;  %v708_v1 = vxor.u32 2147483648, %v700_v50  ;;  %v701_v3 = vor.u32 268435455, %v5411_v55  ;;  %v702_v33 = vor.u32 268435455, %v5414_v56 }
 0x20e   : > { %769 = vadd.xlane.f32.xlu1 %v768_v25  ;;  %v771_v2 = vadd.f32 %v4380_v0, %v4379_v63  ;;  %v794_v50 = vor.u32 268435456, %v5387_v27 }
 0x20f   : > { %vm721_vm2 = vcmp.le.s32.totalorder %v5195_v51, %v708_v1  ;;  %vm722_vm3 = vcmp.le.s32.totalorder %v5197_v52, %v708_v1  ;;  %v709_v34 = vxor.u32 2147483648, %v701_v3  ;;  %v710_v11 = vxor.u32 2147483648, %v702_v33 }
 0x210   : > { %772 = vadd.xlane.f32.xlu0 %v771_v2  ;;  %v4381_v49 = vsel %vm721_vm2, 1.0, %v5010_v14  ;;  %v4382_v28 = vsel %vm722_vm3, 1.0, %v5010_v14 }
 0x211   : > { %v774_v16 = vadd.f32 %v4382_v28, %v4381_v49  ;;  %vm723_vm4 = vcmp.le.s32.totalorder %v5207_v60, %v709_v34  ;;  %vm724_vm5 = vcmp.le.s32.totalorder %v5210_v62, %v709_v34  ;;  %vm725_vm6 = vcmp.le.s32.totalorder %v5216_v4, %v710_v11 }
 0x212   : > { %vm726_vm7 = vcmp.le.s32.totalorder %v5218_v5, %v710_v11  ;;  %v4383_v18 = vsel %vm723_vm4, 1.0, %v5010_v14  ;;  %v4384_v20 = vsel %vm724_vm5, 1.0, %v5010_v14  ;;  %v4385_v21 = vsel %vm725_vm6, 1.0, %v5010_v14 }
 0x213   : > { %775 = vadd.xlane.f32.xlu1 %v774_v16  ;;  %v4386_v22 = vsel %vm726_vm7, 1.0, %v5010_v14  ;;  %v777_v23 = vadd.f32 %v4384_v20, %v4383_v18  ;;  %v796_v49 = vor.u32 268435456, %v5399_v42  ;;  %v797_v11 = vor.u32 268435456, %v5411_v55 }
 0x214   : > { %v780_v15 = vadd.f32 %v4386_v22, %v4385_v21 }
 0x215   : > { %778 = vadd.xlane.f32.xlu0 %v777_v23 }
 0x217   : > { %781 = vadd.xlane.f32.xlu1 %v780_v15 }
 0x28f   : > { %v761_v41 = vpop.xlane.xlu0 %760 }
 0x290   : > { %vm783_vm8 = vcmp.ge.f32.partialorder %v761_v41, 128.0 }
 0x291   : > { %v5434_v24 = vsel %vm783_vm8, %v5362_v57, %v791_v13 }
 0x292   : > { %v807_v26 = vor.u32 134217727, %v5434_v24 }
 0x294   : > { %v815_v35 = vxor.u32 2147483648, %v807_v26  ;;  %v764_v37 = vpop.xlane.xlu1 %763 }
 0x295   : > { %vm784_vm9 = vcmp.ge.f32.partialorder %v764_v37, 128.0 }
 0x296   : > { %vm823_vm10 = vcmp.le.s32.totalorder %v5144_v8, %v815_v35  ;;  %vm824_vm11 = vcmp.le.s32.totalorder %v5146_v9, %v815_v35  ;;  %v5442_v39 = vsel %vm784_vm9, %v5370_v7, %v792_v36  ;;  %v767_v40 = vpop.xlane.xlu0 %766 }
 0x297   : > { %v4387_v57 = vsel %vm823_vm10, 1.0, %v5010_v14  ;;  %v4388_v10 = vsel %vm824_vm11, 1.0, %v5010_v14  ;;  %vm785_vm12 = vcmp.ge.f32.partialorder %v767_v40, 128.0  ;;  %v808_v61 = vor.u32 134217727, %v5442_v39 }
 0x298   : > { %v871_v59 = vadd.f32 %v4388_v10, %v4387_v57  ;;  %v5448_v44 = vsel %vm785_vm12, %v5375_v43, %v793_v38  ;;  %v795_v43 = vor.u32 268435456, %v5391_v58 }
 0x299   : > { %v816_v46 = vxor.u32 2147483648, %v808_v61  ;;  %v809_v47 = vor.u32 134217727, %v5448_v44 }
 0x29a   : > { %872 = vadd.xlane.f32.xlu0 %v871_v59 }
 0x29b   : > { %vm825_vm13 = vcmp.le.s32.totalorder %v5166_v29, %v816_v46  ;;  %vm826_vm14 = vcmp.le.s32.totalorder %v5168_v30, %v816_v46  ;;  %v817_v7 = vxor.u32 2147483648, %v809_v47  ;;  %v770_v53 = vpop.xlane.xlu1 %769 }
 0x29c   : > { %v4389_v19 = vsel %vm825_vm13, 1.0, %v5010_v14  ;;  %v4390_v6 = vsel %vm826_vm14, 1.0, %v5010_v14  ;;  %vm786_vm15 = vcmp.ge.f32.partialorder %v770_v53, 128.0 }
 0x29d   : > { %v874_v54 = vadd.f32 %v4390_v6, %v4389_v19  ;;  %vm827_vm0 = vcmp.le.s32.totalorder %v5151_v12, %v817_v7  ;;  %vm828_vm1 = vcmp.le.s32.totalorder %v5156_v17, %v817_v7  ;;  %v5460_v25 = vsel %vm786_vm15, %v5387_v27, %v794_v50  ;;  %v773_v63 = vpop.xlane.xlu0 %772 }
 0x29e   : > { %v4391_v0 = vsel %vm827_vm0, 1.0, %v5010_v14  ;;  %v4392_v1 = vsel %vm828_vm1, 1.0, %v5010_v14  ;;  %vm787_vm2 = vcmp.ge.f32.partialorder %v773_v63, 128.0  ;;  %v810_v3 = vor.u32 134217727, %v5460_v25 }
 0x29f   : > { %875 = vadd.xlane.f32.xlu1 %v874_v54  ;;  %v877_v2 = vadd.f32 %v4392_v1, %v4391_v0  ;;  %v5466_v33 = vsel %vm787_vm2, %v5391_v58, %v795_v43  ;;  %v798_v58 = vor.u32 268435456, %v5414_v56  ;;  %v903_v19 = vor.u32 134217728, %v5434_v24 }
 0x2a0   : > { %v776_v28 = vpop.xlane.xlu1 %775  ;;  %v818_v34 = vxor.u32 2147483648, %v810_v3  ;;  %v811_v27 = vor.u32 134217727, %v5466_v33  ;;  %v904_v0 = vor.u32 134217728, %v5442_v39 }
 0x2a1   : > { %878 = vadd.xlane.f32.xlu0 %v877_v2  ;;  %vm788_vm3 = vcmp.ge.f32.partialorder %v776_v28, 128.0  ;;  %v905_v2 = vor.u32 134217728, %v5448_v44 }
 0x2a2   : > { %v5472_v16 = vsel %vm788_vm3, %v5399_v42, %v796_v49  ;;  %vm829_vm4 = vcmp.le.s32.totalorder %v5172_v31, %v818_v34  ;;  %vm830_vm5 = vcmp.le.s32.totalorder %v5174_v32, %v818_v34  ;;  %v819_v18 = vxor.u32 2147483648, %v811_v27  ;;  %v779_v20 = vpop.xlane.xlu0 %778 }
 0x2a3   : > { %v4393_v21 = vsel %vm829_vm4, 1.0, %v5010_v14  ;;  %v4394_v22 = vsel %vm830_vm5, 1.0, %v5010_v14  ;;  %v812_v23 = vor.u32 134217727, %v5472_v16  ;;  %vm789_vm6 = vcmp.ge.f32.partialorder %v779_v20, 128.0 }
 0x2a4   : > { %v782_v15 = vpop.xlane.xlu1 %781  ;;  %v880_v13 = vadd.f32 %v4394_v22, %v4393_v21  ;;  %vm831_vm7 = vcmp.le.s32.totalorder %v5187_v45, %v819_v18  ;;  %vm832_vm8 = vcmp.le.s32.totalorder %v5190_v48, %v819_v18  ;;  %v5483_v42 = vsel %vm789_vm6, %v5411_v55, %v797_v11 }
 0x2a5   : > { %vm790_vm9 = vcmp.ge.f32.partialorder %v782_v15, 128.0  ;;  %v4395_v41 = vsel %vm831_vm7, 1.0, %v5010_v14  ;;  %v4396_v26 = vsel %vm832_vm8, 1.0, %v5010_v14  ;;  %v820_v37 = vxor.u32 2147483648, %v812_v23 }
 0x2a6   : > { %v5488_v35 = vsel %vm790_vm9, %v5414_v56, %v798_v58  ;;  %881 = vadd.xlane.f32.xlu1 %v880_v13  ;;  %v883_v36 = vadd.f32 %v4396_v26, %v4395_v41  ;;  %v813_v38 = vor.u32 134217727, %v5483_v42  ;;  %v906_v20 = vor.u32 134217728, %v5460_v25 }
 0x2a7   : > { %v814_v40 = vor.u32 134217727, %v5488_v35  ;;  %vm833_vm10 = vcmp.le.s32.totalorder %v5195_v51, %v820_v37  ;;  %vm834_vm11 = vcmp.le.s32.totalorder %v5197_v52, %v820_v37 }
 0x2a8   : > { %884 = vadd.xlane.f32.xlu0 %v883_v36  ;;  %v4397_v55 = vsel %vm833_vm10, 1.0, %v5010_v14  ;;  %v4398_v57 = vsel %vm834_vm11, 1.0, %v5010_v14  ;;  %v821_v10 = vxor.u32 2147483648, %v813_v38 }
 0x2a9   : > { %v822_v59 = vxor.u32 2147483648, %v814_v40  ;;  %v886_v56 = vadd.f32 %v4398_v57, %v4397_v55 }
 0x2aa   : > { %vm835_vm12 = vcmp.le.s32.totalorder %v5207_v60, %v821_v10  ;;  %vm836_vm13 = vcmp.le.s32.totalorder %v5210_v62, %v821_v10 }
 0x2ab   : > { %vm837_vm14 = vcmp.le.s32.totalorder %v5216_v4, %v822_v59  ;;  %vm838_vm15 = vcmp.le.s32.totalorder %v5218_v5, %v822_v59  ;;  %887 = vadd.xlane.f32.xlu1 %v886_v56  ;;  %v4399_v61 = vsel %vm835_vm12, 1.0, %v5010_v14  ;;  %v4400_v46 = vsel %vm836_vm13, 1.0, %v5010_v14 }
 0x2ac   : > { %v4401_v47 = vsel %vm837_vm14, 1.0, %v5010_v14  ;;  %v4402_v7 = vsel %vm838_vm15, 1.0, %v5010_v14  ;;  %v889_v50 = vadd.f32 %v4400_v46, %v4399_v61  ;;  %v909_v56 = vor.u32 134217728, %v5483_v42 }
 0x2ad   : > { %v892_v53 = vadd.f32 %v4402_v7, %v4401_v47  ;;  %v910_v47 = vor.u32 134217728, %v5488_v35 }
 0x2ae   : > { %890 = vadd.xlane.f32.xlu0 %v889_v50 }
 0x2af   : > { %893 = vadd.xlane.f32.xlu1 %v892_v53 }
 0x327   : > { %v873_v6 = vpop.xlane.xlu0 %872 }
 0x328   : > { %vm895_vm0 = vcmp.ge.f32.partialorder %v873_v6, 128.0 }
 0x329   : > { %v5506_v54 = vsel %vm895_vm0, %v5434_v24, %v903_v19 }
 0x32a   : > { %v919_v43 = vor.u32 67108863, %v5506_v54 }
 0x32c   : > { %v927_v63 = vxor.u32 2147483648, %v919_v43  ;;  %v876_v1 = vpop.xlane.xlu1 %875 }
 0x32d   : > { %vm896_vm1 = vcmp.ge.f32.partialorder %v876_v1, 128.0 }
 0x32e   : > { %vm935_vm2 = vcmp.le.s32.totalorder %v5144_v8, %v927_v63  ;;  %vm936_vm3 = vcmp.le.s32.totalorder %v5146_v9, %v927_v63  ;;  %v5514_v3 = vsel %vm896_vm1, %v5442_v39, %v904_v0  ;;  %v879_v49 = vpop.xlane.xlu0 %878 }
 0x32f   : > { %v4403_v24 = vsel %vm935_vm2, 1.0, %v5010_v14  ;;  %v4404_v28 = vsel %vm936_vm3, 1.0, %v5010_v14  ;;  %vm897_vm4 = vcmp.ge.f32.partialorder %v879_v49, 128.0  ;;  %v920_v27 = vor.u32 67108863, %v5514_v3 }
 0x330   : > { %v983_v34 = vadd.f32 %v4404_v28, %v4403_v24  ;;  %v5520_v11 = vsel %vm897_vm4, %v5448_v44, %v905_v2  ;;  %v907_v44 = vor.u32 134217728, %v5466_v33 }
 0x331   : > { %v928_v18 = vxor.u32 2147483648, %v920_v27  ;;  %v921_v58 = vor.u32 67108863, %v5520_v11 }
 0x332   : > { %984 = vadd.xlane.f32.xlu0 %v983_v34 }
 0x333   : > { %vm937_vm5 = vcmp.le.s32.totalorder %v5166_v29, %v928_v18  ;;  %vm938_vm6 = vcmp.le.s32.totalorder %v5168_v30, %v928_v18  ;;  %v929_v39 = vxor.u32 2147483648, %v921_v58  ;;  %v882_v21 = vpop.xlane.xlu1 %881 }
 0x334   : > { %v4405_v22 = vsel %vm937_vm5, 1.0, %v5010_v14  ;;  %v4406_v23 = vsel %vm938_vm6, 1.0, %v5010_v14  ;;  %vm898_vm7 = vcmp.ge.f32.partialorder %v882_v21, 128.0 }
 0x335   : > { %v986_v15 = vadd.f32 %v4406_v23, %v4405_v22  ;;  %vm939_vm8 = vcmp.le.s32.totalorder %v5151_v12, %v929_v39  ;;  %vm940_vm9 = vcmp.le.s32.totalorder %v5156_v17, %v929_v39  ;;  %v5532_v13 = vsel %vm898_vm7, %v5460_v25, %v906_v20  ;;  %v885_v41 = vpop.xlane.xlu0 %884 }
 0x336   : > { %v4407_v26 = vsel %vm939_vm8, 1.0, %v5010_v14  ;;  %v4408_v36 = vsel %vm940_vm9, 1.0, %v5010_v14  ;;  %vm899_vm10 = vcmp.ge.f32.partialorder %v885_v41, 128.0  ;;  %v922_v38 = vor.u32 67108863, %v5532_v13 }
 0x337   : > { %987 = vadd.xlane.f32.xlu1 %v986_v15  ;;  %v989_v37 = vadd.f32 %v4408_v36, %v4407_v26  ;;  %v5538_v40 = vsel %vm899_vm10, %v5466_v33, %v907_v44  ;;  %v908_v25 = vor.u32 134217728, %v5472_v16  ;;  %v1015_v22 = vor.u32 67108864, %v5506_v54 }
 0x338   : > { %v930_v55 = vxor.u32 2147483648, %v922_v38  ;;  %v923_v57 = vor.u32 67108863, %v5538_v40  ;;  %v888_v10 = vpop.xlane.xlu1 %887  ;;  %v1016_v26 = vor.u32 67108864, %v5514_v3 }
 0x339   : > { %990 = vadd.xlane.f32.xlu0 %v989_v37  ;;  %vm900_vm11 = vcmp.ge.f32.partialorder %v888_v10, 128.0  ;;  %v1017_v37 = vor.u32 67108864, %v5520_v11 }
 0x33a   : > { %vm941_vm12 = vcmp.le.s32.totalorder %v5172_v31, %v930_v55  ;;  %vm942_vm13 = vcmp.le.s32.totalorder %v5174_v32, %v930_v55  ;;  %v931_v59 = vxor.u32 2147483648, %v923_v57  ;;  %v5546_v61 = vsel %vm900_vm11, %v5472_v16, %v908_v25 }
 0x33b   : > { %v4409_v33 = vsel %vm941_vm12, 1.0, %v5010_v14  ;;  %v4410_v46 = vsel %vm942_vm13, 1.0, %v5010_v14  ;;  %v891_v7 = vpop.xlane.xlu0 %890  ;;  %v924_v16 = vor.u32 67108863, %v5546_v61 }
 0x33c   : > { %v992_v50 = vadd.f32 %v4410_v46, %v4409_v33  ;;  %vm943_vm14 = vcmp.le.s32.totalorder %v5187_v45, %v931_v59  ;;  %vm944_vm15 = vcmp.le.s32.totalorder %v5190_v48, %v931_v59  ;;  %vm901_vm0 = vcmp.ge.f32.partialorder %v891_v7, 128.0  ;;  %v894_v53 = vpop.xlane.xlu1 %893 }
 0x33d   : > { %v4411_v19 = vsel %vm943_vm14, 1.0, %v5010_v14  ;;  %v4412_v6 = vsel %vm944_vm15, 1.0, %v5010_v14  ;;  %v5557_v43 = vsel %vm901_vm0, %v5483_v42, %v909_v56  ;;  %vm902_vm1 = vcmp.ge.f32.partialorder %v894_v53, 128.0 }
 0x33e   : > { %993 = vadd.xlane.f32.xlu1 %v992_v50  ;;  %v995_v63 = vadd.f32 %v4412_v6, %v4411_v19  ;;  %v5560_v0 = vsel %vm902_vm1, %v5488_v35, %v910_v47  ;;  %v932_v1 = vxor.u32 2147483648, %v924_v16  ;;  %v925_v2 = vor.u32 67108863, %v5557_v43 }
 0x33f   : > { %v926_v49 = vor.u32 67108863, %v5560_v0  ;;  %v1018_v46 = vor.u32 67108864, %v5532_v13 }
 0x340   : > { %996 = vadd.xlane.f32.xlu0 %v995_v63  ;;  %vm945_vm2 = vcmp.le.s32.totalorder %v5195_v51, %v932_v1  ;;  %vm946_vm3 = vcmp.le.s32.totalorder %v5197_v52, %v932_v1  ;;  %v933_v24 = vxor.u32 2147483648, %v925_v2 }
 0x341   : > { %v4413_v42 = vsel %vm945_vm2, 1.0, %v5010_v14  ;;  %v4414_v28 = vsel %vm946_vm3, 1.0, %v5010_v14  ;;  %v934_v34 = vxor.u32 2147483648, %v926_v49 }
 0x342   : > { %v998_v27 = vadd.f32 %v4414_v28, %v4413_v42  ;;  %vm947_vm4 = vcmp.le.s32.totalorder %v5207_v60, %v933_v24  ;;  %vm948_vm5 = vcmp.le.s32.totalorder %v5210_v62, %v933_v24 }
 0x343   : > { %v4415_v35 = vsel %vm947_vm4, 1.0, %v5010_v14  ;;  %v4416_v18 = vsel %vm948_vm5, 1.0, %v5010_v14  ;;  %vm949_vm6 = vcmp.le.s32.totalorder %v5216_v4, %v934_v34  ;;  %vm950_vm7 = vcmp.le.s32.totalorder %v5218_v5, %v934_v34 }
 0x344   : > { %999 = vadd.xlane.f32.xlu1 %v998_v27  ;;  %v1001_v58 = vadd.f32 %v4416_v18, %v4415_v35  ;;  %v4417_v39 = vsel %vm949_vm6, 1.0, %v5010_v14  ;;  %v4418_v20 = vsel %vm950_vm7, 1.0, %v5010_v14  ;;  %v1021_v27 = vor.u32 67108864, %v5557_v43 }
 0x345   : > { %v1004_v21 = vadd.f32 %v4418_v20, %v4417_v39 }
 0x346   : > { %1002 = vadd.xlane.f32.xlu0 %v1001_v58 }
 0x348   : > { %1005 = vadd.xlane.f32.xlu1 %v1004_v21 }
 0x3bf   : > { %v985_v23 = vpop.xlane.xlu0 %984 }
 0x3c0   : > { %vm1007_vm8 = vcmp.ge.f32.partialorder %v985_v23, 128.0 }
 0x3c1   : > { %v5578_v15 = vsel %vm1007_vm8, %v5506_v54, %v1015_v22  ;;  %v1022_v22 = vor.u32 67108864, %v5560_v0 }
 0x3c2   : > { %v1031_v44 = vor.u32 33554431, %v5578_v15 }
 0x3c4   : > { %v1039_v41 = vxor.u32 2147483648, %v1031_v44  ;;  %v988_v36 = vpop.xlane.xlu1 %987 }
 0x3c5   : > { %vm1008_vm9 = vcmp.ge.f32.partialorder %v988_v36, 128.0 }
 0x3c6   : > { %vm1047_vm10 = vcmp.le.s32.totalorder %v5144_v8, %v1039_v41  ;;  %vm1048_vm11 = vcmp.le.s32.totalorder %v5146_v9, %v1039_v41  ;;  %v5586_v38 = vsel %vm1008_vm9, %v5514_v3, %v1016_v26  ;;  %v991_v55 = vpop.xlane.xlu0 %990 }
 0x3c7   : > { %v4419_v54 = vsel %vm1047_vm10, 1.0, %v5010_v14  ;;  %v4420_v57 = vsel %vm1048_vm11, 1.0, %v5010_v14  ;;  %vm1009_vm12 = vcmp.ge.f32.partialorder %v991_v55, 128.0  ;;  %v1032_v10 = vor.u32 33554431, %v5586_v38 }
 0x3c8   : > { %v1095_v25 = vadd.f32 %v4420_v57, %v4419_v54  ;;  %v5592_v59 = vsel %vm1009_vm12, %v5520_v11, %v1017_v37  ;;  %v1019_v11 = vor.u32 67108864, %v5538_v40 }
 0x3c9   : > { %v1040_v56 = vxor.u32 2147483648, %v1032_v10  ;;  %v1033_v33 = vor.u32 33554431, %v5592_v59 }
 0x3ca   : > { %1096 = vadd.xlane.f32.xlu0 %v1095_v25 }
 0x3cb   : > { %vm1049_vm13 = vcmp.le.s32.totalorder %v5166_v29, %v1040_v56  ;;  %vm1050_vm14 = vcmp.le.s32.totalorder %v5168_v30, %v1040_v56  ;;  %v1041_v3 = vxor.u32 2147483648, %v1033_v33  ;;  %v994_v47 = vpop.xlane.xlu1 %993 }
 0x3cc   : > { %v4421_v7 = vsel %vm1049_vm13, 1.0, %v5010_v14  ;;  %v4422_v50 = vsel %vm1050_vm14, 1.0, %v5010_v14  ;;  %vm1010_vm15 = vcmp.ge.f32.partialorder %v994_v47, 128.0 }
 0x3cd   : > { %v1098_v53 = vadd.f32 %v4422_v50, %v4421_v7  ;;  %vm1051_vm0 = vcmp.le.s32.totalorder %v5151_v12, %v1041_v3  ;;  %vm1052_vm1 = vcmp.le.s32.totalorder %v5156_v17, %v1041_v3  ;;  %v5604_v19 = vsel %vm1010_vm15, %v5532_v13, %v1018_v46  ;;  %v997_v6 = vpop.xlane.xlu0 %996 }
 0x3ce   : > { %v4423_v16 = vsel %vm1051_vm0, 1.0, %v5010_v14  ;;  %v4424_v63 = vsel %vm1052_vm1, 1.0, %v5010_v14  ;;  %vm1011_vm2 = vcmp.ge.f32.partialorder %v997_v6, 128.0  ;;  %v1034_v2 = vor.u32 33554431, %v5604_v19 }
 0x3cf   : > { %1099 = vadd.xlane.f32.xlu1 %v1098_v53  ;;  %v1101_v1 = vadd.f32 %v4424_v63, %v4423_v16  ;;  %v5610_v49 = vsel %vm1011_vm2, %v5538_v40, %v1019_v11  ;;  %v1020_v13 = vor.u32 67108864, %v5546_v61  ;;  %v1127_v7 = vor.u32 33554432, %v5578_v15 }
 0x3d0   : > { %v1042_v24 = vxor.u32 2147483648, %v1034_v2  ;;  %v1035_v42 = vor.u32 33554431, %v5610_v49  ;;  %v1128_v16 = vor.u32 33554432, %v5586_v38 }
 0x3d1   : > { %1102 = vadd.xlane.f32.xlu0 %v1101_v1  ;;  %v1000_v28 = vpop.xlane.xlu1 %999  ;;  %v1129_v1 = vor.u32 33554432, %v5592_v59 }
 0x3d2   : > { %vm1053_vm3 = vcmp.le.s32.totalorder %v5172_v31, %v1042_v24  ;;  %vm1054_vm4 = vcmp.le.s32.totalorder %v5174_v32, %v1042_v24  ;;  %v1043_v34 = vxor.u32 2147483648, %v1035_v42  ;;  %vm1012_vm5 = vcmp.ge.f32.partialorder %v1000_v28, 128.0 }
 0x3d3   : > { %v4425_v35 = vsel %vm1053_vm3, 1.0, %v5010_v14  ;;  %v4426_v40 = vsel %vm1054_vm4, 1.0, %v5010_v14  ;;  %v5620_v18 = vsel %vm1012_vm5, %v5546_v61, %v1020_v13  ;;  %v1003_v58 = vpop.xlane.xlu0 %1002 }
 0x3d4   : > { %v1104_v39 = vadd.f32 %v4426_v40, %v4425_v35  ;;  %vm1055_vm6 = vcmp.le.s32.totalorder %v5187_v45, %v1043_v34  ;;  %vm1056_vm7 = vcmp.le.s32.totalorder %v5190_v48, %v1043_v34  ;;  %vm1013_vm8 = vcmp.ge.f32.partialorder %v1003_v58, 128.0 }
 0x3d5   : > { %v4427_v20 = vsel %vm1055_vm6, 1.0, %v5010_v14  ;;  %v4428_v21 = vsel %vm1056_vm7, 1.0, %v5010_v14  ;;  %v5628_v23 = vsel %vm1013_vm8, %v5557_v43, %v1021_v27  ;;  %v1006_v44 = vpop.xlane.xlu1 %1005  ;;  %v1036_v41 = vor.u32 33554431, %v5620_v18 }
 0x3d6   : > { %1105 = vadd.xlane.f32.xlu1 %v1104_v39  ;;  %v1107_v61 = vadd.f32 %v4428_v21, %v4427_v20  ;;  %vm1014_vm9 = vcmp.ge.f32.partialorder %v1006_v44, 128.0  ;;  %v1037_v26 = vor.u32 33554431, %v5628_v23  ;;  %v1130_v40 = vor.u32 33554432, %v5604_v19 }
 0x3d7   : > { %v5633_v36 = vsel %vm1014_vm9, %v5560_v0, %v1022_v22  ;;  %v1044_v37 = vxor.u32 2147483648, %v1036_v41 }
 0x3d8   : > { %1108 = vadd.xlane.f32.xlu0 %v1107_v61  ;;  %v1045_v55 = vxor.u32 2147483648, %v1037_v26  ;;  %v1038_v54 = vor.u32 33554431, %v5633_v36 }
 0x3d9   : > { %vm1057_vm10 = vcmp.le.s32.totalorder %v5195_v51, %v1044_v37  ;;  %vm1058_vm11 = vcmp.le.s32.totalorder %v5197_v52, %v1044_v37 }
 0x3da   : > { %v4429_v43 = vsel %vm1057_vm10, 1.0, %v5010_v14  ;;  %v4430_v57 = vsel %vm1058_vm11, 1.0, %v5010_v14  ;;  %vm1059_vm12 = vcmp.le.s32.totalorder %v5207_v60, %v1045_v55  ;;  %vm1060_vm13 = vcmp.le.s32.totalorder %v5210_v62, %v1045_v55 }
 0x3db   : > { %v1110_v25 = vadd.f32 %v4430_v57, %v4429_v43  ;;  %v4431_v0 = vsel %vm1059_vm12, 1.0, %v5010_v14  ;;  %v4432_v10 = vsel %vm1060_vm13, 1.0, %v5010_v14  ;;  %v1046_v56 = vxor.u32 2147483648, %v1038_v54 }
 0x3dc   : > { %v1113_v33 = vadd.f32 %v4432_v10, %v4431_v0  ;;  %v1132_v57 = vor.u32 33554432, %v5620_v18 }
 0x3dd   : > { %1111 = vadd.xlane.f32.xlu1 %v1110_v25  ;;  %vm1061_vm14 = vcmp.le.s32.totalorder %v5216_v4, %v1046_v56  ;;  %vm1062_vm15 = vcmp.le.s32.totalorder %v5218_v5, %v1046_v56  ;;  %v1133_v25 = vor.u32 33554432, %v5628_v23 }
 0x3de   : > { %1114 = vadd.xlane.f32.xlu0 %v1113_v33  ;;  %v4433_v3 = vsel %vm1061_vm14, 1.0, %v5010_v14  ;;  %v4434_v46 = vsel %vm1062_vm15, 1.0, %v5010_v14 }
 0x3df   : > { %v1116_v47 = vadd.f32 %v4434_v46, %v4433_v3 }
 0x3e1   : > { %1117 = vadd.xlane.f32.xlu1 %v1116_v47 }
 0x457   : > { %v1097_v50 = vpop.xlane.xlu0 %1096 }
 0x458   : > { %vm1119_vm0 = vcmp.ge.f32.partialorder %v1097_v50, 128.0 }
 0x459   : > { %v5650_v53 = vsel %vm1119_vm0, %v5578_v15, %v1127_v7 }
 0x45a   : > { %v1143_v11 = vor.u32 16777215, %v5650_v53 }
 0x45c   : > { %v1151_v6 = vxor.u32 2147483648, %v1143_v11  ;;  %v1100_v63 = vpop.xlane.xlu1 %1099 }
 0x45d   : > { %vm1120_vm1 = vcmp.ge.f32.partialorder %v1100_v63, 128.0 }
 0x45e   : > { %vm1159_vm2 = vcmp.le.s32.totalorder %v5144_v8, %v1151_v6  ;;  %vm1160_vm3 = vcmp.le.s32.totalorder %v5146_v9, %v1151_v6  ;;  %v5658_v2 = vsel %vm1120_vm1, %v5586_v38, %v1128_v16  ;;  %v1103_v24 = vpop.xlane.xlu0 %1102  ;;  %v1134_v6 = vor.u32 33554432, %v5633_v36 }
 0x45f   : > { %v4435_v15 = vsel %vm1159_vm2, 1.0, %v5010_v14  ;;  %v4436_v42 = vsel %vm1160_vm3, 1.0, %v5010_v14  ;;  %vm1121_vm4 = vcmp.ge.f32.partialorder %v1103_v24, 128.0  ;;  %v1144_v28 = vor.u32 16777215, %v5658_v2 }
 0x460   : > { %v1207_v13 = vadd.f32 %v4436_v42, %v4435_v15  ;;  %v5664_v34 = vsel %vm1121_vm4, %v5592_v59, %v1129_v1  ;;  %v1131_v59 = vor.u32 33554432, %v5610_v49 }
 0x461   : > { %v1152_v27 = vxor.u32 2147483648, %v1144_v28  ;;  %v1145_v35 = vor.u32 16777215, %v5664_v34 }
 0x462   : > { %1208 = vadd.xlane.f32.xlu0 %v1207_v13 }
 0x463   : > { %vm1161_vm5 = vcmp.le.s32.totalorder %v5166_v29, %v1152_v27  ;;  %vm1162_vm6 = vcmp.le.s32.totalorder %v5168_v30, %v1152_v27  ;;  %v1153_v38 = vxor.u32 2147483648, %v1145_v35  ;;  %v1106_v58 = vpop.xlane.xlu1 %1105 }
 0x464   : > { %v4437_v39 = vsel %vm1161_vm5, 1.0, %v5010_v14  ;;  %v4438_v20 = vsel %vm1162_vm6, 1.0, %v5010_v14  ;;  %vm1122_vm7 = vcmp.ge.f32.partialorder %v1106_v58, 128.0 }
 0x465   : > { %v1210_v21 = vadd.f32 %v4438_v20, %v4437_v39  ;;  %vm1163_vm8 = vcmp.le.s32.totalorder %v5151_v12, %v1153_v38  ;;  %vm1164_vm9 = vcmp.le.s32.totalorder %v5156_v17, %v1153_v38  ;;  %v5676_v22 = vsel %vm1122_vm7, %v5604_v19, %v1130_v40  ;;  %v1109_v44 = vpop.xlane.xlu0 %1108 }
 0x466   : > { %v4439_v61 = vsel %vm1163_vm8, 1.0, %v5010_v14  ;;  %v4440_v41 = vsel %vm1164_vm9, 1.0, %v5010_v14  ;;  %vm1123_vm10 = vcmp.ge.f32.partialorder %v1109_v44, 128.0  ;;  %v1146_v37 = vor.u32 16777215, %v5676_v22 }
 0x467   : > { %1211 = vadd.xlane.f32.xlu1 %v1210_v21  ;;  %v1213_v26 = vadd.f32 %v4440_v41, %v4439_v61  ;;  %v5682_v55 = vsel %vm1123_vm10, %v5610_v49, %v1131_v59  ;;  %v1239_v39 = vor.u32 16777216, %v5650_v53  ;;  %v1240_v61 = vor.u32 16777216, %v5658_v2 }
 0x468   : > { %v1154_v54 = vxor.u32 2147483648, %v1146_v37  ;;  %v1147_v43 = vor.u32 16777215, %v5682_v55 }
 0x469   : > { %1214 = vadd.xlane.f32.xlu0 %v1213_v26  ;;  %v1241_v26 = vor.u32 16777216, %v5664_v34 }
 0x46a   : > { %vm1165_vm11 = vcmp.le.s32.totalorder %v5172_v31, %v1154_v54  ;;  %vm1166_vm12 = vcmp.le.s32.totalorder %v5174_v32, %v1154_v54  ;;  %v1155_v19 = vxor.u32 2147483648, %v1147_v43  ;;  %v1112_v0 = vpop.xlane.xlu1 %1111 }
 0x46b   : > { %v4441_v10 = vsel %vm1165_vm11, 1.0, %v5010_v14  ;;  %v4442_v56 = vsel %vm1166_vm12, 1.0, %v5010_v14  ;;  %vm1124_vm13 = vcmp.ge.f32.partialorder %v1112_v0, 128.0  ;;  %v1115_v49 = vpop.xlane.xlu0 %1114 }
 0x46c   : > { %v1216_v33 = vadd.f32 %v4442_v56, %v4441_v10  ;;  %vm1167_vm14 = vcmp.le.s32.totalorder %v5187_v45, %v1155_v19  ;;  %vm1168_vm15 = vcmp.le.s32.totalorder %v5190_v48, %v1155_v19  ;;  %v5694_v3 = vsel %vm1124_vm13, %v5620_v18, %v1132_v57 }
 0x46d   : > { %vm1125_vm0 = vcmp.ge.f32.partialorder %v1115_v49, 128.0  ;;  %v4443_v46 = vsel %vm1167_vm14, 1.0, %v5010_v14  ;;  %v4444_v47 = vsel %vm1168_vm15, 1.0, %v5010_v14  ;;  %v1148_v11 = vor.u32 16777215, %v5694_v3 }
 0x46e   : > { %v5699_v7 = vsel %vm1125_vm0, %v5628_v23, %v1133_v25  ;;  %1217 = vadd.xlane.f32.xlu1 %v1216_v33  ;;  %v1219_v50 = vadd.f32 %v4444_v47, %v4443_v46  ;;  %v1118_v16 = vpop.xlane.xlu1 %1117  ;;  %v1242_v56 = vor.u32 16777216, %v5676_v22 }
 0x46f   : > { %v1149_v63 = vor.u32 16777215, %v5699_v7  ;;  %vm1126_vm1 = vcmp.ge.f32.partialorder %v1118_v16, 128.0  ;;  %v1156_v18 = vxor.u32 2147483648, %v1148_v11 }
 0x470   : > { %1220 = vadd.xlane.f32.xlu0 %v1219_v50  ;;  %v5705_v1 = vsel %vm1126_vm1, %v5633_v36, %v1134_v6 }
 0x471   : > { %v1157_v24 = vxor.u32 2147483648, %v1149_v63  ;;  %vm1169_vm2 = vcmp.le.s32.totalorder %v5195_v51, %v1156_v18  ;;  %vm1170_vm3 = vcmp.le.s32.totalorder %v5197_v52, %v1156_v18  ;;  %v1150_v23 = vor.u32 16777215, %v5705_v1 }
 0x472   : > { %v4445_v15 = vsel %vm1169_vm2, 1.0, %v5010_v14  ;;  %v4446_v42 = vsel %vm1170_vm3, 1.0, %v5010_v14 }
 0x473   : > { %vm1171_vm4 = vcmp.le.s32.totalorder %v5207_v60, %v1157_v24  ;;  %vm1172_vm5 = vcmp.le.s32.totalorder %v5210_v62, %v1157_v24  ;;  %v1222_v13 = vadd.f32 %v4446_v42, %v4445_v15  ;;  %v1158_v27 = vxor.u32 2147483648, %v1150_v23 }
 0x474   : > { %v4447_v28 = vsel %vm1171_vm4, 1.0, %v5010_v14  ;;  %v4448_v36 = vsel %vm1172_vm5, 1.0, %v5010_v14  ;;  %v1244_v42 = vor.u32 16777216, %v5694_v3 }
 0x475   : > { %v1225_v35 = vadd.f32 %v4448_v36, %v4447_v28  ;;  %1223 = vadd.xlane.f32.xlu1 %v1222_v13  ;;  %vm1173_vm6 = vcmp.le.s32.totalorder %v5216_v4, %v1158_v27  ;;  %vm1174_vm7 = vcmp.le.s32.totalorder %v5218_v5, %v1158_v27  ;;  %v1245_v13 = vor.u32 16777216, %v5699_v7 }
 0x476   : > { %v4449_v38 = vsel %vm1173_vm6, 1.0, %v5010_v14  ;;  %v4450_v40 = vsel %vm1174_vm7, 1.0, %v5010_v14 }
 0x477   : > { %1226 = vadd.xlane.f32.xlu0 %v1225_v35  ;;  %v1228_v58 = vadd.f32 %v4450_v40, %v4449_v38 }
 0x479   : > { %1229 = vadd.xlane.f32.xlu1 %v1228_v58 }
 0x4ef   : > { %v1209_v20 = vpop.xlane.xlu0 %1208 }
 0x4f0   : > { %vm1231_vm8 = vcmp.ge.f32.partialorder %v1209_v20, 128.0 }
 0x4f1   : > { %v5722_v21 = vsel %vm1231_vm8, %v5650_v53, %v1239_v39 }
 0x4f2   : > { %v1255_v59 = vor.u32 8388607, %v5722_v21 }
 0x4f4   : > { %v1263_v44 = vxor.u32 2147483648, %v1255_v59  ;;  %v1212_v41 = vpop.xlane.xlu1 %1211 }
 0x4f5   : > { %vm1232_vm9 = vcmp.ge.f32.partialorder %v1212_v41, 128.0 }
 0x4f6   : > { %vm1271_vm10 = vcmp.le.s32.totalorder %v5144_v8, %v1263_v44  ;;  %vm1272_vm11 = vcmp.le.s32.totalorder %v5146_v9, %v1263_v44  ;;  %v5730_v37 = vsel %vm1232_vm9, %v5658_v2, %v1240_v61  ;;  %v1215_v54 = vpop.xlane.xlu0 %1214  ;;  %v1246_v44 = vor.u32 16777216, %v5705_v1 }
 0x4f7   : > { %v4451_v53 = vsel %vm1271_vm10, 1.0, %v5010_v14  ;;  %v4452_v43 = vsel %vm1272_vm11, 1.0, %v5010_v14  ;;  %vm1233_vm12 = vcmp.ge.f32.partialorder %v1215_v54, 128.0  ;;  %v1256_v57 = vor.u32 8388607, %v5730_v37 }
 0x4f8   : > { %v1319_v19 = vadd.f32 %v4452_v43, %v4451_v53  ;;  %v5736_v25 = vsel %vm1233_vm12, %v5664_v34, %v1241_v26  ;;  %v1243_v34 = vor.u32 16777216, %v5682_v55 }
 0x4f9   : > { %v1264_v0 = vxor.u32 2147483648, %v1256_v57  ;;  %v1257_v10 = vor.u32 8388607, %v5736_v25 }
 0x4fa   : > { %1320 = vadd.xlane.f32.xlu0 %v1319_v19 }
 0x4fb   : > { %vm1273_vm13 = vcmp.le.s32.totalorder %v5166_v29, %v1264_v0  ;;  %vm1274_vm14 = vcmp.le.s32.totalorder %v5168_v30, %v1264_v0  ;;  %v1265_v2 = vxor.u32 2147483648, %v1257_v10  ;;  %v1218_v49 = vpop.xlane.xlu1 %1217 }
 0x4fc   : > { %v4453_v33 = vsel %vm1273_vm13, 1.0, %v5010_v14  ;;  %v4454_v46 = vsel %vm1274_vm14, 1.0, %v5010_v14  ;;  %vm1234_vm15 = vcmp.ge.f32.partialorder %v1218_v49, 128.0 }
 0x4fd   : > { %v1322_v47 = vadd.f32 %v4454_v46, %v4453_v33  ;;  %vm1275_vm0 = vcmp.le.s32.totalorder %v5151_v12, %v1265_v2  ;;  %vm1276_vm1 = vcmp.le.s32.totalorder %v5156_v17, %v1265_v2  ;;  %v5748_v50 = vsel %vm1234_vm15, %v5676_v22, %v1242_v56  ;;  %v1221_v11 = vpop.xlane.xlu0 %1220 }
 0x4fe   : > { %v4455_v6 = vsel %vm1275_vm0, 1.0, %v5010_v14  ;;  %v4456_v16 = vsel %vm1276_vm1, 1.0, %v5010_v14  ;;  %vm1235_vm2 = vcmp.ge.f32.partialorder %v1221_v11, 128.0  ;;  %v1258_v18 = vor.u32 8388607, %v5748_v50 }
 0x4ff   : > { %1323 = vadd.xlane.f32.xlu1 %v1322_v47  ;;  %v1325_v63 = vadd.f32 %v4456_v16, %v4455_v6  ;;  %v5754_v24 = vsel %vm1235_vm2, %v5682_v55, %v1243_v34  ;;  %v1351_v33 = vor.u32 8388608, %v5722_v21  ;;  %v1352_v6 = vor.u32 8388608, %v5730_v37 }
 0x500   : > { %v1266_v23 = vxor.u32 2147483648, %v1258_v18  ;;  %v1259_v15 = vor.u32 8388607, %v5754_v24 }
 0x501   : > { %1326 = vadd.xlane.f32.xlu0 %v1325_v63  ;;  %v1353_v63 = vor.u32 8388608, %v5736_v25 }
 0x502   : > { %vm1277_vm3 = vcmp.le.s32.totalorder %v5172_v31, %v1266_v23  ;;  %vm1278_vm4 = vcmp.le.s32.totalorder %v5174_v32, %v1266_v23  ;;  %v1267_v22 = vxor.u32 2147483648, %v1259_v15  ;;  %v1224_v28 = vpop.xlane.xlu1 %1223 }
 0x503   : > { %v4457_v36 = vsel %vm1277_vm3, 1.0, %v5010_v14  ;;  %v4458_v27 = vsel %vm1278_vm4, 1.0, %v5010_v14  ;;  %vm1236_vm5 = vcmp.ge.f32.partialorder %v1224_v28, 128.0 }
 0x504   : > { %v1227_v55 = vpop.xlane.xlu0 %1226  ;;  %v1328_v35 = vadd.f32 %v4458_v27, %v4457_v36  ;;  %vm1279_vm6 = vcmp.le.s32.totalorder %v5187_v45, %v1267_v22  ;;  %vm1280_vm7 = vcmp.le.s32.totalorder %v5190_v48, %v1267_v22  ;;  %v5766_v38 = vsel %vm1236_vm5, %v5694_v3, %v1244_v42 }
 0x505   : > { %vm1237_vm8 = vcmp.ge.f32.partialorder %v1227_v55, 128.0  ;;  %v4459_v40 = vsel %vm1279_vm6, 1.0, %v5010_v14  ;;  %v4460_v58 = vsel %vm1280_vm7, 1.0, %v5010_v14  ;;  %v1260_v59 = vor.u32 8388607, %v5766_v38 }
 0x506   : > { %v5771_v39 = vsel %vm1237_vm8, %v5699_v7, %v1245_v13  ;;  %1329 = vadd.xlane.f32.xlu1 %v1328_v35  ;;  %v1331_v20 = vadd.f32 %v4460_v58, %v4459_v40  ;;  %v1230_v61 = vpop.xlane.xlu1 %1229  ;;  %v1354_v27 = vor.u32 8388608, %v5748_v50 }
 0x507   : > { %v1261_v41 = vor.u32 8388607, %v5771_v39  ;;  %vm1238_vm9 = vcmp.ge.f32.partialorder %v1230_v61, 128.0  ;;  %v1268_v3 = vxor.u32 2147483648, %v1260_v59 }
 0x508   : > { %1332 = vadd.xlane.f32.xlu0 %v1331_v20  ;;  %v5777_v26 = vsel %vm1238_vm9, %v5705_v1, %v1246_v44 }
 0x509   : > { %v1269_v54 = vxor.u32 2147483648, %v1261_v41  ;;  %vm1281_vm10 = vcmp.le.s32.totalorder %v5195_v51, %v1268_v3  ;;  %vm1282_vm11 = vcmp.le.s32.totalorder %v5197_v52, %v1268_v3  ;;  %v1262_v7 = vor.u32 8388607, %v5777_v26 }
 0x50a   : > { %v4461_v53 = vsel %vm1281_vm10, 1.0, %v5010_v14  ;;  %v4462_v43 = vsel %vm1282_vm11, 1.0, %v5010_v14 }
 0x50b   : > { %vm1283_vm12 = vcmp.le.s32.totalorder %v5207_v60, %v1269_v54  ;;  %vm1284_vm13 = vcmp.le.s32.totalorder %v5210_v62, %v1269_v54  ;;  %v1334_v19 = vadd.f32 %v4462_v43, %v4461_v53  ;;  %v1270_v0 = vxor.u32 2147483648, %v1262_v7 }
 0x50c   : > { %v4463_v57 = vsel %vm1283_vm12, 1.0, %v5010_v14  ;;  %v4464_v1 = vsel %vm1284_vm13, 1.0, %v5010_v14  ;;  %v1356_v43 = vor.u32 8388608, %v5766_v38 }
 0x50d   : > { %v1337_v10 = vadd.f32 %v4464_v1, %v4463_v57  ;;  %1335 = vadd.xlane.f32.xlu1 %v1334_v19  ;;  %vm1285_vm14 = vcmp.le.s32.totalorder %v5216_v4, %v1270_v0  ;;  %vm1286_vm15 = vcmp.le.s32.totalorder %v5218_v5, %v1270_v0  ;;  %v1357_v19 = vor.u32 8388608, %v5771_v39 }
 0x50e   : > { %v4465_v2 = vsel %vm1285_vm14, 1.0, %v5010_v14  ;;  %v4466_v56 = vsel %vm1286_vm15, 1.0, %v5010_v14 }
 0x50f   : > { %1338 = vadd.xlane.f32.xlu0 %v1337_v10  ;;  %v1340_v49 = vadd.f32 %v4466_v56, %v4465_v2 }
 0x511   : > { %1341 = vadd.xlane.f32.xlu1 %v1340_v49 }
 0x587   : > { %v1321_v46 = vpop.xlane.xlu0 %1320 }
 0x588   : > { %vm1343_vm0 = vcmp.ge.f32.partialorder %v1321_v46, 128.0 }
 0x589   : > { %v5794_v47 = vsel %vm1343_vm0, %v5722_v21, %v1351_v33 }
 0x58a   : > { %v1367_v34 = vor.u32 4194303, %v5794_v47 }
 0x58c   : > { %v1375_v11 = vxor.u32 2147483648, %v1367_v34  ;;  %v1324_v16 = vpop.xlane.xlu1 %1323 }
 0x58d   : > { %vm1344_vm1 = vcmp.ge.f32.partialorder %v1324_v16, 128.0 }
 0x58e   : > { %vm1383_vm2 = vcmp.le.s32.totalorder %v5144_v8, %v1375_v11  ;;  %vm1384_vm3 = vcmp.le.s32.totalorder %v5146_v9, %v1375_v11  ;;  %v5802_v18 = vsel %vm1344_vm1, %v5730_v37, %v1352_v6  ;;  %v1327_v23 = vpop.xlane.xlu0 %1326  ;;  %v1358_v11 = vor.u32 8388608, %v5777_v26 }
 0x58f   : > { %v4467_v21 = vsel %vm1383_vm2, 1.0, %v5010_v14  ;;  %v4468_v15 = vsel %vm1384_vm3, 1.0, %v5010_v14  ;;  %vm1345_vm4 = vcmp.ge.f32.partialorder %v1327_v23, 128.0  ;;  %v1368_v42 = vor.u32 4194303, %v5802_v18 }
 0x590   : > { %v1431_v22 = vadd.f32 %v4468_v15, %v4467_v21  ;;  %v5808_v13 = vsel %vm1345_vm4, %v5736_v25, %v1353_v63  ;;  %v1355_v25 = vor.u32 8388608, %v5754_v24 }
 0x591   : > { %v1376_v28 = vxor.u32 2147483648, %v1368_v42  ;;  %v1369_v36 = vor.u32 4194303, %v5808_v13 }
 0x592   : > { %1432 = vadd.xlane.f32.xlu0 %v1431_v22 }
 0x593   : > { %vm1385_vm5 = vcmp.le.s32.totalorder %v5166_v29, %v1376_v28  ;;  %vm1386_vm6 = vcmp.le.s32.totalorder %v5168_v30, %v1376_v28  ;;  %v1377_v37 = vxor.u32 2147483648, %v1369_v36  ;;  %v1330_v55 = vpop.xlane.xlu1 %1329 }
 0x594   : > { %v4469_v35 = vsel %vm1385_vm5, 1.0, %v5010_v14  ;;  %v4470_v40 = vsel %vm1386_vm6, 1.0, %v5010_v14  ;;  %vm1346_vm7 = vcmp.ge.f32.partialorder %v1330_v55, 128.0 }
 0x595   : > { %v1434_v58 = vadd.f32 %v4470_v40, %v4469_v35  ;;  %vm1387_vm8 = vcmp.le.s32.totalorder %v5151_v12, %v1377_v37  ;;  %vm1388_vm9 = vcmp.le.s32.totalorder %v5156_v17, %v1377_v37  ;;  %v5820_v20 = vsel %vm1346_vm7, %v5748_v50, %v1354_v27  ;;  %v1333_v59 = vpop.xlane.xlu0 %1332 }
 0x596   : > { %v4471_v44 = vsel %vm1387_vm8, 1.0, %v5010_v14  ;;  %v4472_v61 = vsel %vm1388_vm9, 1.0, %v5010_v14  ;;  %vm1347_vm10 = vcmp.ge.f32.partialorder %v1333_v59, 128.0  ;;  %v1370_v3 = vor.u32 4194303, %v5820_v20 }
 0x597   : > { %1435 = vadd.xlane.f32.xlu1 %v1434_v58  ;;  %v1437_v41 = vadd.f32 %v4472_v61, %v4471_v44  ;;  %v5826_v54 = vsel %vm1347_vm10, %v5754_v24, %v1355_v25  ;;  %v1463_v35 = vor.u32 4194304, %v5794_v47  ;;  %v1464_v44 = vor.u32 4194304, %v5802_v18 }
 0x598   : > { %v1378_v7 = vxor.u32 2147483648, %v1370_v3  ;;  %v1371_v53 = vor.u32 4194303, %v5826_v54 }
 0x599   : > { %1438 = vadd.xlane.f32.xlu0 %v1437_v41  ;;  %v1465_v41 = vor.u32 4194304, %v5808_v13 }
 0x59a   : > { %vm1389_vm11 = vcmp.le.s32.totalorder %v5172_v31, %v1378_v7  ;;  %vm1390_vm12 = vcmp.le.s32.totalorder %v5174_v32, %v1378_v7  ;;  %v1379_v50 = vxor.u32 2147483648, %v1371_v53  ;;  %v1336_v57 = vpop.xlane.xlu1 %1335 }
 0x59b   : > { %v4473_v1 = vsel %vm1389_vm11, 1.0, %v5010_v14  ;;  %v4474_v0 = vsel %vm1390_vm12, 1.0, %v5010_v14  ;;  %vm1348_vm13 = vcmp.ge.f32.partialorder %v1336_v57, 128.0 }
 0x59c   : > { %v1339_v24 = vpop.xlane.xlu0 %1338  ;;  %v1440_v10 = vadd.f32 %v4474_v0, %v4473_v1  ;;  %vm1391_vm14 = vcmp.le.s32.totalorder %v5187_v45, %v1379_v50  ;;  %vm1392_vm15 = vcmp.le.s32.totalorder %v5190_v48, %v1379_v50  ;;  %v5838_v2 = vsel %vm1348_vm13, %v5766_v38, %v1356_v43 }
 0x59d   : > { %vm1349_vm0 = vcmp.ge.f32.partialorder %v1339_v24, 128.0  ;;  %v4475_v56 = vsel %vm1391_vm14, 1.0, %v5010_v14  ;;  %v4476_v49 = vsel %vm1392_vm15, 1.0, %v5010_v14  ;;  %v1372_v34 = vor.u32 4194303, %v5838_v2 }
 0x59e   : > { %v5843_v33 = vsel %vm1349_vm0, %v5771_v39, %v1357_v19  ;;  %1441 = vadd.xlane.f32.xlu1 %v1440_v10  ;;  %v1443_v46 = vadd.f32 %v4476_v49, %v4475_v56  ;;  %v1342_v6 = vpop.xlane.xlu1 %1341  ;;  %v1466_v0 = vor.u32 4194304, %v5820_v20 }
 0x59f   : > { %v1373_v16 = vor.u32 4194303, %v5843_v33  ;;  %vm1350_vm1 = vcmp.ge.f32.partialorder %v1342_v6, 128.0  ;;  %v1380_v38 = vxor.u32 2147483648, %v1372_v34 }
 0x5a0   : > { %1444 = vadd.xlane.f32.xlu0 %v1443_v46  ;;  %v5849_v63 = vsel %vm1350_vm1, %v5777_v26, %v1358_v11 }
 0x5a1   : > { %v1381_v23 = vxor.u32 2147483648, %v1373_v16  ;;  %vm1393_vm2 = vcmp.le.s32.totalorder %v5195_v51, %v1380_v38  ;;  %vm1394_vm3 = vcmp.le.s32.totalorder %v5197_v52, %v1380_v38  ;;  %v1374_v39 = vor.u32 4194303, %v5849_v63 }
 0x5a2   : > { %v4477_v21 = vsel %vm1393_vm2, 1.0, %v5010_v14  ;;  %v4478_v15 = vsel %vm1394_vm3, 1.0, %v5010_v14 }
 0x5a3   : > { %vm1395_vm4 = vcmp.le.s32.totalorder %v5207_v60, %v1381_v23  ;;  %vm1396_vm5 = vcmp.le.s32.totalorder %v5210_v62, %v1381_v23  ;;  %v1446_v22 = vadd.f32 %v4478_v15, %v4477_v21  ;;  %v1382_v28 = vxor.u32 2147483648, %v1374_v39 }
 0x5a4   : > { %v4479_v42 = vsel %vm1395_vm4, 1.0, %v5010_v14  ;;  %v4480_v26 = vsel %vm1396_vm5, 1.0, %v5010_v14  ;;  %v1468_v15 = vor.u32 4194304, %v5838_v2 }
 0x5a5   : > { %v1449_v36 = vadd.f32 %v4480_v26, %v4479_v42  ;;  %1447 = vadd.xlane.f32.xlu1 %v1446_v22  ;;  %vm1397_vm6 = vcmp.le.s32.totalorder %v5216_v4, %v1382_v28  ;;  %vm1398_vm7 = vcmp.le.s32.totalorder %v5218_v5, %v1382_v28  ;;  %v1469_v22 = vor.u32 4194304, %v5843_v33 }
 0x5a6   : > { %v4481_v37 = vsel %vm1397_vm6, 1.0, %v5010_v14  ;;  %v4482_v27 = vsel %vm1398_vm7, 1.0, %v5010_v14 }
 0x5a7   : > { %1450 = vadd.xlane.f32.xlu0 %v1449_v36  ;;  %v1452_v55 = vadd.f32 %v4482_v27, %v4481_v37 }
 0x5a9   : > { %1453 = vadd.xlane.f32.xlu1 %v1452_v55 }
 0x61f   : > { %v1433_v40 = vpop.xlane.xlu0 %1432 }
 0x620   : > { %vm1455_vm8 = vcmp.ge.f32.partialorder %v1433_v40, 128.0 }
 0x621   : > { %v5866_v58 = vsel %vm1455_vm8, %v5794_v47, %v1463_v35 }
 0x622   : > { %v1479_v25 = vor.u32 2097151, %v5866_v58 }
 0x624   : > { %v1487_v59 = vxor.u32 2147483648, %v1479_v25  ;;  %v1436_v61 = vpop.xlane.xlu1 %1435 }
 0x625   : > { %vm1456_vm9 = vcmp.ge.f32.partialorder %v1436_v61, 128.0 }
 0x626   : > { %vm1495_vm10 = vcmp.le.s32.totalorder %v5144_v8, %v1487_v59  ;;  %vm1496_vm11 = vcmp.le.s32.totalorder %v5146_v9, %v1487_v59  ;;  %v5874_v3 = vsel %vm1456_vm9, %v5802_v18, %v1464_v44  ;;  %v1439_v7 = vpop.xlane.xlu0 %1438  ;;  %v1470_v59 = vor.u32 4194304, %v5849_v63 }
 0x627   : > { %v4483_v47 = vsel %vm1495_vm10, 1.0, %v5010_v14  ;;  %v4484_v53 = vsel %vm1496_vm11, 1.0, %v5010_v14  ;;  %vm1457_vm12 = vcmp.ge.f32.partialorder %v1439_v7, 128.0  ;;  %v1480_v43 = vor.u32 2097151, %v5874_v3 }
 0x628   : > { %v1543_v50 = vadd.f32 %v4484_v53, %v4483_v47  ;;  %v5880_v19 = vsel %vm1457_vm12, %v5808_v13, %v1465_v41  ;;  %v1467_v13 = vor.u32 4194304, %v5826_v54 }
 0x629   : > { %v1488_v57 = vxor.u32 2147483648, %v1480_v43  ;;  %v1481_v1 = vor.u32 2097151, %v5880_v19 }
 0x62a   : > { %1544 = vadd.xlane.f32.xlu0 %v1543_v50 }
 0x62b   : > { %vm1497_vm13 = vcmp.le.s32.totalorder %v5166_v29, %v1488_v57  ;;  %vm1498_vm14 = vcmp.le.s32.totalorder %v5168_v30, %v1488_v57  ;;  %v1489_v18 = vxor.u32 2147483648, %v1481_v1  ;;  %v1442_v24 = vpop.xlane.xlu1 %1441 }
 0x62c   : > { %v4485_v10 = vsel %vm1497_vm13, 1.0, %v5010_v14  ;;  %v4486_v56 = vsel %vm1498_vm14, 1.0, %v5010_v14  ;;  %vm1458_vm15 = vcmp.ge.f32.partialorder %v1442_v24, 128.0 }
 0x62d   : > { %v1546_v49 = vadd.f32 %v4486_v56, %v4485_v10  ;;  %vm1499_vm0 = vcmp.le.s32.totalorder %v5151_v12, %v1489_v18  ;;  %vm1500_vm1 = vcmp.le.s32.totalorder %v5156_v17, %v1489_v18  ;;  %v5892_v46 = vsel %vm1458_vm15, %v5820_v20, %v1466_v0  ;;  %v1445_v34 = vpop.xlane.xlu0 %1444 }
 0x62e   : > { %v4487_v11 = vsel %vm1499_vm0, 1.0, %v5010_v14  ;;  %v4488_v6 = vsel %vm1500_vm1, 1.0, %v5010_v14  ;;  %vm1459_vm2 = vcmp.ge.f32.partialorder %v1445_v34, 128.0  ;;  %v1482_v38 = vor.u32 2097151, %v5892_v46 }
 0x62f   : > { %1547 = vadd.xlane.f32.xlu1 %v1546_v49  ;;  %v1549_v16 = vadd.f32 %v4488_v6, %v4487_v11  ;;  %v5898_v23 = vsel %vm1459_vm2, %v5826_v54, %v1467_v13  ;;  %v1575_v10 = vor.u32 2097152, %v5866_v58  ;;  %v1576_v11 = vor.u32 2097152, %v5874_v3 }
 0x630   : > { %v1490_v39 = vxor.u32 2147483648, %v1482_v38  ;;  %v1483_v21 = vor.u32 2097151, %v5898_v23 }
 0x631   : > { %1550 = vadd.xlane.f32.xlu0 %v1549_v16  ;;  %v1577_v16 = vor.u32 2097152, %v5880_v19 }
 0x632   : > { %vm1501_vm3 = vcmp.le.s32.totalorder %v5172_v31, %v1490_v39  ;;  %vm1502_vm4 = vcmp.le.s32.totalorder %v5174_v32, %v1490_v39  ;;  %v1491_v20 = vxor.u32 2147483648, %v1483_v21  ;;  %v1448_v42 = vpop.xlane.xlu1 %1447 }
 0x633   : > { %v4489_v26 = vsel %vm1501_vm3, 1.0, %v5010_v14  ;;  %v4490_v28 = vsel %vm1502_vm4, 1.0, %v5010_v14  ;;  %vm1460_vm5 = vcmp.ge.f32.partialorder %v1448_v42, 128.0 }
 0x634   : > { %v1451_v54 = vpop.xlane.xlu0 %1450  ;;  %v1552_v36 = vadd.f32 %v4490_v28, %v4489_v26  ;;  %vm1503_vm6 = vcmp.le.s32.totalorder %v5187_v45, %v1491_v20  ;;  %vm1504_vm7 = vcmp.le.s32.totalorder %v5190_v48, %v1491_v20  ;;  %v5910_v37 = vsel %vm1460_vm5, %v5838_v2, %v1468_v15 }
 0x635   : > { %vm1461_vm8 = vcmp.ge.f32.partialorder %v1451_v54, 128.0  ;;  %v4491_v27 = vsel %vm1503_vm6, 1.0, %v5010_v14  ;;  %v4492_v55 = vsel %vm1504_vm7, 1.0, %v5010_v14  ;;  %v1484_v25 = vor.u32 2097151, %v5910_v37 }
 0x636   : > { %v5915_v35 = vsel %vm1461_vm8, %v5843_v33, %v1469_v22  ;;  %1553 = vadd.xlane.f32.xlu1 %v1552_v36  ;;  %v1555_v40 = vadd.f32 %v4492_v55, %v4491_v27  ;;  %v1454_v44 = vpop.xlane.xlu1 %1453  ;;  %v1578_v28 = vor.u32 2097152, %v5892_v46 }
 0x637   : > { %v1485_v61 = vor.u32 2097151, %v5915_v35  ;;  %vm1462_vm9 = vcmp.ge.f32.partialorder %v1454_v44, 128.0  ;;  %v1492_v2 = vxor.u32 2147483648, %v1484_v25 }
 0x638   : > { %1556 = vadd.xlane.f32.xlu0 %v1555_v40  ;;  %v5921_v41 = vsel %vm1462_vm9, %v5849_v63, %v1470_v59 }
 0x639   : > { %v1493_v7 = vxor.u32 2147483648, %v1485_v61  ;;  %vm1505_vm10 = vcmp.le.s32.totalorder %v5195_v51, %v1492_v2  ;;  %vm1506_vm11 = vcmp.le.s32.totalorder %v5197_v52, %v1492_v2  ;;  %v1486_v33 = vor.u32 2097151, %v5921_v41 }
 0x63a   : > { %v4493_v47 = vsel %vm1505_vm10, 1.0, %v5010_v14  ;;  %v4494_v53 = vsel %vm1506_vm11, 1.0, %v5010_v14 }
 0x63b   : > { %vm1507_vm12 = vcmp.le.s32.totalorder %v5207_v60, %v1493_v7  ;;  %vm1508_vm13 = vcmp.le.s32.totalorder %v5210_v62, %v1493_v7  ;;  %v1558_v50 = vadd.f32 %v4494_v53, %v4493_v47  ;;  %v1494_v57 = vxor.u32 2147483648, %v1486_v33 }
 0x63c   : > { %v4495_v43 = vsel %vm1507_vm12, 1.0, %v5010_v14  ;;  %v4496_v63 = vsel %vm1508_vm13, 1.0, %v5010_v14  ;;  %v1580_v53 = vor.u32 2097152, %v5910_v37 }
 0x63d   : > { %v1561_v1 = vadd.f32 %v4496_v63, %v4495_v43  ;;  %1559 = vadd.xlane.f32.xlu1 %v1558_v50  ;;  %vm1509_vm14 = vcmp.le.s32.totalorder %v5216_v4, %v1494_v57  ;;  %vm1510_vm15 = vcmp.le.s32.totalorder %v5218_v5, %v1494_v57  ;;  %v1581_v50 = vor.u32 2097152, %v5915_v35 }
 0x63e   : > { %v4497_v18 = vsel %vm1509_vm14, 1.0, %v5010_v14  ;;  %v4498_v0 = vsel %vm1510_vm15, 1.0, %v5010_v14 }
 0x63f   : > { %1562 = vadd.xlane.f32.xlu0 %v1561_v1  ;;  %v1564_v24 = vadd.f32 %v4498_v0, %v4497_v18 }
 0x641   : > { %1565 = vadd.xlane.f32.xlu1 %v1564_v24 }
 0x6b7   : > { %v1545_v56 = vpop.xlane.xlu0 %1544 }
 0x6b8   : > { %vm1567_vm0 = vcmp.ge.f32.partialorder %v1545_v56, 128.0 }
 0x6b9   : > { %v5938_v49 = vsel %vm1567_vm0, %v5866_v58, %v1575_v10 }
 0x6ba   : > { %v1591_v13 = vor.u32 1048575, %v5938_v49 }
 0x6bc   : > { %v1599_v34 = vxor.u32 2147483648, %v1591_v13  ;;  %v1548_v6 = vpop.xlane.xlu1 %1547 }
 0x6bd   : > { %vm1568_vm1 = vcmp.ge.f32.partialorder %v1548_v6, 128.0 }
 0x6be   : > { %vm1607_vm2 = vcmp.le.s32.totalorder %v5144_v8, %v1599_v34  ;;  %vm1608_vm3 = vcmp.le.s32.totalorder %v5146_v9, %v1599_v34  ;;  %v5946_v38 = vsel %vm1568_vm1, %v5874_v3, %v1576_v11  ;;  %v1551_v39 = vpop.xlane.xlu0 %1550  ;;  %v1582_v34 = vor.u32 2097152, %v5921_v41 }
 0x6bf   : > { %v4499_v58 = vsel %vm1607_vm2, 1.0, %v5010_v14  ;;  %v4500_v21 = vsel %vm1608_vm3, 1.0, %v5010_v14  ;;  %vm1569_vm4 = vcmp.ge.f32.partialorder %v1551_v39, 128.0  ;;  %v1592_v15 = vor.u32 1048575, %v5946_v38 }
 0x6c0   : > { %v1655_v20 = vadd.f32 %v4500_v21, %v4499_v58  ;;  %v5952_v22 = vsel %vm1569_vm4, %v5880_v19, %v1577_v16  ;;  %v1579_v19 = vor.u32 2097152, %v5898_v23 }
 0x6c1   : > { %v1600_v42 = vxor.u32 2147483648, %v1592_v15  ;;  %v1593_v26 = vor.u32 1048575, %v5952_v22 }
 0x6c2   : > { %1656 = vadd.xlane.f32.xlu0 %v1655_v20 }
 0x6c3   : > { %vm1609_vm5 = vcmp.le.s32.totalorder %v5166_v29, %v1600_v42  ;;  %vm1610_vm6 = vcmp.le.s32.totalorder %v5168_v30, %v1600_v42  ;;  %v1601_v3 = vxor.u32 2147483648, %v1593_v26  ;;  %v1554_v54 = vpop.xlane.xlu1 %1553 }
 0x6c4   : > { %v4501_v36 = vsel %vm1609_vm5, 1.0, %v5010_v14  ;;  %v4502_v27 = vsel %vm1610_vm6, 1.0, %v5010_v14  ;;  %vm1570_vm7 = vcmp.ge.f32.partialorder %v1554_v54, 128.0 }
 0x6c5   : > { %v1658_v55 = vadd.f32 %v4502_v27, %v4501_v36  ;;  %vm1611_vm8 = vcmp.le.s32.totalorder %v5151_v12, %v1601_v3  ;;  %vm1612_vm9 = vcmp.le.s32.totalorder %v5156_v17, %v1601_v3  ;;  %v5964_v40 = vsel %vm1570_vm7, %v5892_v46, %v1578_v28  ;;  %v1557_v25 = vpop.xlane.xlu0 %1556 }
 0x6c6   : > { %v4503_v59 = vsel %vm1611_vm8, 1.0, %v5010_v14  ;;  %v4504_v44 = vsel %vm1612_vm9, 1.0, %v5010_v14  ;;  %vm1571_vm10 = vcmp.ge.f32.partialorder %v1557_v25, 128.0  ;;  %v1594_v2 = vor.u32 1048575, %v5964_v40 }
 0x6c7   : > { %1659 = vadd.xlane.f32.xlu1 %v1658_v55  ;;  %v1661_v61 = vadd.f32 %v4504_v44, %v4503_v59  ;;  %v5970_v7 = vsel %vm1571_vm10, %v5898_v23, %v1579_v19  ;;  %v1687_v36 = vor.u32 1048576, %v5938_v49  ;;  %v1688_v59 = vor.u32 1048576, %v5946_v38 }
 0x6c8   : > { %v1602_v33 = vxor.u32 2147483648, %v1594_v2  ;;  %v1595_v47 = vor.u32 1048575, %v5970_v7 }
 0x6c9   : > { %1662 = vadd.xlane.f32.xlu0 %v1661_v61  ;;  %v1689_v61 = vor.u32 1048576, %v5952_v22 }
 0x6ca   : > { %vm1613_vm11 = vcmp.le.s32.totalorder %v5172_v31, %v1602_v33  ;;  %vm1614_vm12 = vcmp.le.s32.totalorder %v5174_v32, %v1602_v33  ;;  %v1603_v46 = vxor.u32 2147483648, %v1595_v47  ;;  %v1560_v43 = vpop.xlane.xlu1 %1559 }
 0x6cb   : > { %v4505_v63 = vsel %vm1613_vm11, 1.0, %v5010_v14  ;;  %v4506_v57 = vsel %vm1614_vm12, 1.0, %v5010_v14  ;;  %vm1572_vm13 = vcmp.ge.f32.partialorder %v1560_v43, 128.0 }
 0x6cc   : > { %v1563_v23 = vpop.xlane.xlu0 %1562  ;;  %v1664_v1 = vadd.f32 %v4506_v57, %v4505_v63  ;;  %vm1615_vm14 = vcmp.le.s32.totalorder %v5187_v45, %v1603_v46  ;;  %vm1616_vm15 = vcmp.le.s32.totalorder %v5190_v48, %v1603_v46  ;;  %v5982_v18 = vsel %vm1572_vm13, %v5910_v37, %v1580_v53 }
 0x6cd   : > { %vm1573_vm0 = vcmp.ge.f32.partialorder %v1563_v23, 128.0  ;;  %v4507_v0 = vsel %vm1615_vm14, 1.0, %v5010_v14  ;;  %v4508_v24 = vsel %vm1616_vm15, 1.0, %v5010_v14  ;;  %v1596_v13 = vor.u32 1048575, %v5982_v18 }
 0x6ce   : > { %v5987_v10 = vsel %vm1573_vm0, %v5915_v35, %v1581_v50  ;;  %1665 = vadd.xlane.f32.xlu1 %v1664_v1  ;;  %v1667_v56 = vadd.f32 %v4508_v24, %v4507_v0  ;;  %v1566_v11 = vpop.xlane.xlu1 %1565 }
 0x6cf   : > { %v1597_v6 = vor.u32 1048575, %v5987_v10  ;;  %vm1574_vm1 = vcmp.ge.f32.partialorder %v1566_v11, 128.0  ;;  %v1604_v37 = vxor.u32 2147483648, %v1596_v13 }
 0x6d0   : > { %1668 = vadd.xlane.f32.xlu0 %v1667_v56  ;;  %v5993_v16 = vsel %vm1574_vm1, %v5921_v41, %v1582_v34 }
 0x6d1   : > { %v1605_v39 = vxor.u32 2147483648, %v1597_v6  ;;  %vm1617_vm2 = vcmp.le.s32.totalorder %v5195_v51, %v1604_v37  ;;  %vm1618_vm3 = vcmp.le.s32.totalorder %v5197_v52, %v1604_v37  ;;  %v1598_v35 = vor.u32 1048575, %v5993_v16 }
 0x6d2   : > { %v4509_v58 = vsel %vm1617_vm2, 1.0, %v5010_v14  ;;  %v4510_v21 = vsel %vm1618_vm3, 1.0, %v5010_v14 }
 0x6d3   : > { %vm1619_vm4 = vcmp.le.s32.totalorder %v5207_v60, %v1605_v39  ;;  %vm1620_vm5 = vcmp.le.s32.totalorder %v5210_v62, %v1605_v39  ;;  %v1670_v20 = vadd.f32 %v4510_v21, %v4509_v58  ;;  %v1606_v42 = vxor.u32 2147483648, %v1598_v35 }
 0x6d4   : > { %v4511_v15 = vsel %vm1619_vm4, 1.0, %v5010_v14  ;;  %v4512_v41 = vsel %vm1620_vm5, 1.0, %v5010_v14 }
 0x6d5   : > { %v1673_v26 = vadd.f32 %v4512_v41, %v4511_v15  ;;  %1671 = vadd.xlane.f32.xlu1 %v1670_v20  ;;  %vm1621_vm6 = vcmp.le.s32.totalorder %v5216_v4, %v1606_v42  ;;  %vm1622_vm7 = vcmp.le.s32.totalorder %v5218_v5, %v1606_v42  ;;  %v1693_v20 = vor.u32 1048576, %v5987_v10 }
 0x6d6   : > { %v4513_v3 = vsel %vm1621_vm6, 1.0, %v5010_v14  ;;  %v4514_v28 = vsel %vm1622_vm7, 1.0, %v5010_v14 }
 0x6d7   : > { %1674 = vadd.xlane.f32.xlu0 %v1673_v26  ;;  %v1676_v54 = vadd.f32 %v4514_v28, %v4513_v3 }
 0x6d9   : > { %1677 = vadd.xlane.f32.xlu1 %v1676_v54 }
 0x74f   : > { %v1657_v27 = vpop.xlane.xlu0 %1656 }
 0x750   : > { %vm1679_vm8 = vcmp.ge.f32.partialorder %v1657_v27, 128.0 }
 0x751   : > { %v6010_v55 = vsel %vm1679_vm8, %v5938_v49, %v1687_v36 }
 0x752   : > { %v1703_v19 = vor.u32 524287, %v6010_v55 }
 0x754   : > { %v1711_v25 = vxor.u32 2147483648, %v1703_v19  ;;  %v1660_v44 = vpop.xlane.xlu1 %1659 }
 0x755   : > { %vm1680_vm9 = vcmp.ge.f32.partialorder %v1660_v44, 128.0 }
 0x756   : > { %vm1719_vm10 = vcmp.le.s32.totalorder %v5144_v8, %v1711_v25  ;;  %vm1720_vm11 = vcmp.le.s32.totalorder %v5146_v9, %v1711_v25  ;;  %v6018_v2 = vsel %vm1680_vm9, %v5946_v38, %v1688_v59  ;;  %v1663_v33 = vpop.xlane.xlu0 %1662  ;;  %v1690_v38 = vor.u32 1048576, %v5964_v40 }
 0x757   : > { %v4515_v49 = vsel %vm1719_vm10, 1.0, %v5010_v14  ;;  %v4516_v47 = vsel %vm1720_vm11, 1.0, %v5010_v14  ;;  %vm1681_vm12 = vcmp.ge.f32.partialorder %v1663_v33, 128.0  ;;  %v1704_v53 = vor.u32 524287, %v6018_v2 }
 0x758   : > { %v1767_v46 = vadd.f32 %v4516_v47, %v4515_v49  ;;  %v6024_v50 = vsel %vm1681_vm12, %v5952_v22, %v1689_v61  ;;  %v1691_v22 = vor.u32 1048576, %v5970_v7  ;;  %v1694_v25 = vor.u32 1048576, %v5993_v16 }
 0x759   : > { %v1705_v43 = vor.u32 524287, %v6024_v50  ;;  %v1712_v63 = vxor.u32 2147483648, %v1704_v53 }
 0x75a   : > { %1768 = vadd.xlane.f32.xlu0 %v1767_v46 }
 0x75b   : > { %v1713_v57 = vxor.u32 2147483648, %v1705_v43  ;;  %vm1721_vm13 = vcmp.le.s32.totalorder %v5166_v29, %v1712_v63  ;;  %vm1722_vm14 = vcmp.le.s32.totalorder %v5168_v30, %v1712_v63  ;;  %v1666_v23 = vpop.xlane.xlu1 %1665 }
 0x75c   : > { %v4517_v1 = vsel %vm1721_vm13, 1.0, %v5010_v14  ;;  %v4518_v0 = vsel %vm1722_vm14, 1.0, %v5010_v14  ;;  %vm1682_vm15 = vcmp.ge.f32.partialorder %v1666_v23, 128.0 }
 0x75d   : > { %v1770_v24 = vadd.f32 %v4518_v0, %v4517_v1  ;;  %vm1723_vm0 = vcmp.le.s32.totalorder %v5151_v12, %v1713_v57  ;;  %vm1724_vm1 = vcmp.le.s32.totalorder %v5156_v17, %v1713_v57  ;;  %v6036_v56 = vsel %vm1682_vm15, %v5964_v40, %v1690_v38  ;;  %v1669_v13 = vpop.xlane.xlu0 %1668 }
 0x75e   : > { %v4519_v34 = vsel %vm1723_vm0, 1.0, %v5010_v14  ;;  %v4520_v11 = vsel %vm1724_vm1, 1.0, %v5010_v14  ;;  %v1706_v6 = vor.u32 524287, %v6036_v56  ;;  %vm1683_vm2 = vcmp.ge.f32.partialorder %v1669_v13, 128.0 }
 0x75f   : > { %1771 = vadd.xlane.f32.xlu1 %v1770_v24  ;;  %v1773_v37 = vadd.f32 %v4520_v11, %v4519_v34  ;;  %v6042_v39 = vsel %vm1683_vm2, %v5970_v7, %v1691_v22  ;;  %v1692_v40 = vor.u32 1048576, %v5982_v18  ;;  %v1799_v1 = vor.u32 524288, %v6010_v55 }
 0x760   : > { %v1714_v35 = vxor.u32 2147483648, %v1706_v6  ;;  %v1707_v58 = vor.u32 524287, %v6042_v39  ;;  %v1800_v34 = vor.u32 524288, %v6018_v2  ;;  %v1801_v6 = vor.u32 524288, %v6024_v50 }
 0x761   : > { %1774 = vadd.xlane.f32.xlu0 %v1773_v37 }
 0x762   : > { %v1715_v21 = vxor.u32 2147483648, %v1707_v58  ;;  %vm1725_vm3 = vcmp.le.s32.totalorder %v5172_v31, %v1714_v35  ;;  %vm1726_vm4 = vcmp.le.s32.totalorder %v5174_v32, %v1714_v35  ;;  %v1672_v15 = vpop.xlane.xlu1 %1671 }
 0x763   : > { %v4521_v41 = vsel %vm1725_vm3, 1.0, %v5010_v14  ;;  %v4522_v42 = vsel %vm1726_vm4, 1.0, %v5010_v14  ;;  %vm1684_vm5 = vcmp.ge.f32.partialorder %v1672_v15, 128.0 }
 0x764   : > { %v1675_v7 = vpop.xlane.xlu0 %1674  ;;  %v1776_v26 = vadd.f32 %v4522_v42, %v4521_v41  ;;  %vm1727_vm6 = vcmp.le.s32.totalorder %v5187_v45, %v1715_v21  ;;  %vm1728_vm7 = vcmp.le.s32.totalorder %v5190_v48, %v1715_v21  ;;  %v6054_v3 = vsel %vm1684_vm5, %v5982_v18, %v1692_v40 }
 0x765   : > { %vm1685_vm8 = vcmp.ge.f32.partialorder %v1675_v7, 128.0  ;;  %v4523_v28 = vsel %vm1727_vm6, 1.0, %v5010_v14  ;;  %v4524_v54 = vsel %vm1728_vm7, 1.0, %v5010_v14  ;;  %v1708_v36 = vor.u32 524287, %v6054_v3 }
 0x766   : > { %v6060_v27 = vsel %vm1685_vm8, %v5987_v10, %v1693_v20  ;;  %1777 = vadd.xlane.f32.xlu1 %v1776_v26  ;;  %v1779_v19 = vadd.f32 %v4524_v54, %v4523_v28  ;;  %v1678_v44 = vpop.xlane.xlu1 %1677 }
 0x767   : > { %v1709_v59 = vor.u32 524287, %v6060_v27  ;;  %v1716_v61 = vxor.u32 2147483648, %v1708_v36  ;;  %vm1686_vm9 = vcmp.ge.f32.partialorder %v1678_v44, 128.0 }
 0x768   : > { %1780 = vadd.xlane.f32.xlu0 %v1779_v19  ;;  %v6065_v33 = vsel %vm1686_vm9, %v5993_v16, %v1694_v25 }
 0x769   : > { %v1717_v18 = vxor.u32 2147483648, %v1709_v59  ;;  %v1710_v49 = vor.u32 524287, %v6065_v33  ;;  %vm1729_vm10 = vcmp.le.s32.totalorder %v5195_v51, %v1716_v61  ;;  %vm1730_vm11 = vcmp.le.s32.totalorder %v5197_v52, %v1716_v61 }
 0x76a   : > { %v4525_v10 = vsel %vm1729_vm10, 1.0, %v5010_v14  ;;  %v4526_v47 = vsel %vm1730_vm11, 1.0, %v5010_v14 }
 0x76b   : > { %vm1731_vm12 = vcmp.le.s32.totalorder %v5207_v60, %v1717_v18  ;;  %vm1732_vm13 = vcmp.le.s32.totalorder %v5210_v62, %v1717_v18  ;;  %v1718_v46 = vxor.u32 2147483648, %v1710_v49  ;;  %v1782_v53 = vadd.f32 %v4526_v47, %v4525_v10 }
 0x76c   : > { %v4527_v43 = vsel %vm1731_vm12, 1.0, %v5010_v14  ;;  %v4528_v16 = vsel %vm1732_vm13, 1.0, %v5010_v14 }
 0x76d   : > { %v1785_v63 = vadd.f32 %v4528_v16, %v4527_v43  ;;  %1783 = vadd.xlane.f32.xlu1 %v1782_v53  ;;  %vm1733_vm14 = vcmp.le.s32.totalorder %v5216_v4, %v1718_v46  ;;  %vm1734_vm15 = vcmp.le.s32.totalorder %v5218_v5, %v1718_v46  ;;  %v1805_v46 = vor.u32 524288, %v6060_v27 }
 0x76e   : > { %v4529_v57 = vsel %vm1733_vm14, 1.0, %v5010_v14  ;;  %v4530_v38 = vsel %vm1734_vm15, 1.0, %v5010_v14 }
 0x76f   : > { %1786 = vadd.xlane.f32.xlu0 %v1785_v63  ;;  %v1788_v23 = vadd.f32 %v4530_v38, %v4529_v57 }
 0x771   : > { %1789 = vadd.xlane.f32.xlu1 %v1788_v23 }
 0x7e7   : > { %v1769_v0 = vpop.xlane.xlu0 %1768 }
 0x7e8   : > { %vm1791_vm0 = vcmp.ge.f32.partialorder %v1769_v0, 128.0 }
 0x7e9   : > { %v6082_v24 = vsel %vm1791_vm0, %v6010_v55, %v1799_v1 }
 0x7ea   : > { %v1815_v22 = vor.u32 262143, %v6082_v24 }
 0x7ec   : > { %v1823_v13 = vxor.u32 2147483648, %v1815_v22  ;;  %v1772_v11 = vpop.xlane.xlu1 %1771 }
 0x7ed   : > { %vm1792_vm1 = vcmp.ge.f32.partialorder %v1772_v11, 128.0 }
 0x7ee   : > { %vm1831_vm2 = vcmp.le.s32.totalorder %v5144_v8, %v1823_v13  ;;  %vm1832_vm3 = vcmp.le.s32.totalorder %v5146_v9, %v1823_v13  ;;  %v6090_v37 = vsel %vm1792_vm1, %v6018_v2, %v1800_v34  ;;  %v1775_v35 = vpop.xlane.xlu0 %1774  ;;  %v1802_v2 = vor.u32 524288, %v6036_v56 }
 0x7ef   : > { %v4531_v55 = vsel %vm1831_vm2, 1.0, %v5010_v14  ;;  %v4532_v58 = vsel %vm1832_vm3, 1.0, %v5010_v14  ;;  %v1816_v21 = vor.u32 262143, %v6090_v37  ;;  %vm1793_vm4 = vcmp.ge.f32.partialorder %v1775_v35, 128.0 }
 0x7f0   : > { %v1879_v40 = vadd.f32 %v4532_v58, %v4531_v55  ;;  %v6096_v20 = vsel %vm1793_vm4, %v6024_v50, %v1801_v6  ;;  %v1803_v50 = vor.u32 524288, %v6042_v39  ;;  %v1806_v13 = vor.u32 524288, %v6065_v33 }
 0x7f1   : > { %v1824_v15 = vxor.u32 2147483648, %v1816_v21  ;;  %v1817_v41 = vor.u32 262143, %v6096_v20 }
 0x7f2   : > { %1880 = vadd.xlane.f32.xlu0 %v1879_v40 }
 0x7f3   : > { %v1825_v42 = vxor.u32 2147483648, %v1817_v41  ;;  %vm1833_vm5 = vcmp.le.s32.totalorder %v5166_v29, %v1824_v15  ;;  %vm1834_vm6 = vcmp.le.s32.totalorder %v5168_v30, %v1824_v15  ;;  %v1778_v7 = vpop.xlane.xlu1 %1777 }
 0x7f4   : > { %v4533_v26 = vsel %vm1833_vm5, 1.0, %v5010_v14  ;;  %v4534_v28 = vsel %vm1834_vm6, 1.0, %v5010_v14  ;;  %vm1794_vm7 = vcmp.ge.f32.partialorder %v1778_v7, 128.0 }
 0x7f5   : > { %v1882_v54 = vadd.f32 %v4534_v28, %v4533_v26  ;;  %vm1835_vm8 = vcmp.le.s32.totalorder %v5151_v12, %v1825_v42  ;;  %vm1836_vm9 = vcmp.le.s32.totalorder %v5156_v17, %v1825_v42  ;;  %v6108_v36 = vsel %vm1794_vm7, %v6036_v56, %v1802_v2  ;;  %v1781_v19 = vpop.xlane.xlu0 %1780 }
 0x7f6   : > { %v4535_v25 = vsel %vm1835_vm8, 1.0, %v5010_v14  ;;  %v4536_v59 = vsel %vm1836_vm9, 1.0, %v5010_v14  ;;  %v1818_v44 = vor.u32 262143, %v6108_v36  ;;  %vm1795_vm10 = vcmp.ge.f32.partialorder %v1781_v19, 128.0 }
 0x7f7   : > { %1883 = vadd.xlane.f32.xlu1 %v1882_v54  ;;  %v1885_v61 = vadd.f32 %v4536_v59, %v4535_v25  ;;  %v6114_v18 = vsel %vm1795_vm10, %v6042_v39, %v1803_v50  ;;  %v1804_v56 = vor.u32 524288, %v6054_v3  ;;  %v1911_v26 = vor.u32 262144, %v6082_v24 }
 0x7f8   : > { %v1826_v49 = vxor.u32 2147483648, %v1818_v44  ;;  %v1819_v10 = vor.u32 262143, %v6114_v18  ;;  %v1912_v25 = vor.u32 262144, %v6090_v37  ;;  %v1913_v44 = vor.u32 262144, %v6096_v20 }
 0x7f9   : > { %1886 = vadd.xlane.f32.xlu0 %v1885_v61 }
 0x7fa   : > { %v1827_v47 = vxor.u32 2147483648, %v1819_v10  ;;  %vm1837_vm11 = vcmp.le.s32.totalorder %v5172_v31, %v1826_v49  ;;  %vm1838_vm12 = vcmp.le.s32.totalorder %v5174_v32, %v1826_v49  ;;  %v1784_v53 = vpop.xlane.xlu1 %1783 }
 0x7fb   : > { %v4537_v43 = vsel %vm1837_vm11, 1.0, %v5010_v14  ;;  %v4538_v16 = vsel %vm1838_vm12, 1.0, %v5010_v14  ;;  %vm1796_vm13 = vcmp.ge.f32.partialorder %v1784_v53, 128.0 }
 0x7fc   : > { %v1787_v39 = vpop.xlane.xlu0 %1786  ;;  %v1888_v63 = vadd.f32 %v4538_v16, %v4537_v43  ;;  %vm1839_vm14 = vcmp.le.s32.totalorder %v5187_v45, %v1827_v47  ;;  %vm1840_vm15 = vcmp.le.s32.totalorder %v5190_v48, %v1827_v47  ;;  %v6126_v57 = vsel %vm1796_vm13, %v6054_v3, %v1804_v56 }
 0x7fd   : > { %vm1797_vm0 = vcmp.ge.f32.partialorder %v1787_v39, 128.0  ;;  %v4539_v38 = vsel %vm1839_vm14, 1.0, %v5010_v14  ;;  %v4540_v23 = vsel %vm1840_vm15, 1.0, %v5010_v14  ;;  %v1820_v1 = vor.u32 262143, %v6126_v57 }
 0x7fe   : > { %v6132_v0 = vsel %vm1797_vm0, %v6060_v27, %v1805_v46  ;;  %1889 = vadd.xlane.f32.xlu1 %v1888_v63  ;;  %v1891_v22 = vadd.f32 %v4540_v23, %v4539_v38  ;;  %v1790_v11 = vpop.xlane.xlu1 %1789 }
 0x7ff   : > { %v1821_v34 = vor.u32 262143, %v6132_v0  ;;  %v1828_v6 = vxor.u32 2147483648, %v1820_v1  ;;  %vm1798_vm1 = vcmp.ge.f32.partialorder %v1790_v11, 128.0 }
 0x800   : > { %1892 = vadd.xlane.f32.xlu0 %v1891_v22  ;;  %v6137_v35 = vsel %vm1798_vm1, %v6065_v33, %v1806_v13 }
 0x801   : > { %v1829_v3 = vxor.u32 2147483648, %v1821_v34  ;;  %v1822_v55 = vor.u32 262143, %v6137_v35  ;;  %vm1841_vm2 = vcmp.le.s32.totalorder %v5195_v51, %v1828_v6  ;;  %vm1842_vm3 = vcmp.le.s32.totalorder %v5197_v52, %v1828_v6 }
 0x802   : > { %v4541_v27 = vsel %vm1841_vm2, 1.0, %v5010_v14  ;;  %v4542_v58 = vsel %vm1842_vm3, 1.0, %v5010_v14 }
 0x803   : > { %vm1843_vm4 = vcmp.le.s32.totalorder %v5207_v60, %v1829_v3  ;;  %vm1844_vm5 = vcmp.le.s32.totalorder %v5210_v62, %v1829_v3  ;;  %v1830_v21 = vxor.u32 2147483648, %v1822_v55  ;;  %v1894_v40 = vadd.f32 %v4542_v58, %v4541_v27 }
 0x804   : > { %v4543_v15 = vsel %vm1843_vm4, 1.0, %v5010_v14  ;;  %v4544_v33 = vsel %vm1844_vm5, 1.0, %v5010_v14 }
 0x805   : > { %v1897_v41 = vadd.f32 %v4544_v33, %v4543_v15  ;;  %1895 = vadd.xlane.f32.xlu1 %v1894_v40  ;;  %vm1845_vm6 = vcmp.le.s32.totalorder %v5216_v4, %v1830_v21  ;;  %vm1846_vm7 = vcmp.le.s32.totalorder %v5218_v5, %v1830_v21  ;;  %v1917_v21 = vor.u32 262144, %v6132_v0 }
 0x806   : > { %v4545_v42 = vsel %vm1845_vm6, 1.0, %v5010_v14  ;;  %v4546_v2 = vsel %vm1846_vm7, 1.0, %v5010_v14 }
 0x807   : > { %1898 = vadd.xlane.f32.xlu0 %v1897_v41  ;;  %v1900_v7 = vadd.f32 %v4546_v2, %v4545_v42 }
 0x809   : > { %1901 = vadd.xlane.f32.xlu1 %v1900_v7 }
 0x87f   : > { %v1881_v28 = vpop.xlane.xlu0 %1880 }
 0x880   : > { %vm1903_vm8 = vcmp.ge.f32.partialorder %v1881_v28, 128.0 }
 0x881   : > { %v6154_v54 = vsel %vm1903_vm8, %v6082_v24, %v1911_v26 }
 0x882   : > { %v1927_v50 = vor.u32 131071, %v6154_v54 }
 0x884   : > { %v1935_v19 = vxor.u32 2147483648, %v1927_v50  ;;  %v1884_v59 = vpop.xlane.xlu1 %1883 }
 0x885   : > { %vm1904_vm9 = vcmp.ge.f32.partialorder %v1884_v59, 128.0 }
 0x886   : > { %vm1943_vm10 = vcmp.le.s32.totalorder %v5144_v8, %v1935_v19  ;;  %vm1944_vm11 = vcmp.le.s32.totalorder %v5146_v9, %v1935_v19  ;;  %v6162_v61 = vsel %vm1904_vm9, %v6090_v37, %v1912_v25  ;;  %v1887_v49 = vpop.xlane.xlu0 %1886  ;;  %v1914_v37 = vor.u32 262144, %v6108_v36 }
 0x887   : > { %v4547_v24 = vsel %vm1943_vm10, 1.0, %v5010_v14  ;;  %v4548_v10 = vsel %vm1944_vm11, 1.0, %v5010_v14  ;;  %v1928_v47 = vor.u32 131071, %v6162_v61  ;;  %vm1905_vm12 = vcmp.ge.f32.partialorder %v1887_v49, 128.0 }
 0x888   : > { %v1991_v56 = vadd.f32 %v4548_v10, %v4547_v24  ;;  %v6168_v46 = vsel %vm1905_vm12, %v6096_v20, %v1913_v44  ;;  %v1915_v20 = vor.u32 262144, %v6114_v18  ;;  %v1918_v19 = vor.u32 262144, %v6137_v35 }
 0x889   : > { %v1936_v53 = vxor.u32 2147483648, %v1928_v47  ;;  %v1929_v43 = vor.u32 131071, %v6168_v46 }
 0x88a   : > { %1992 = vadd.xlane.f32.xlu0 %v1991_v56 }
 0x88b   : > { %v1937_v16 = vxor.u32 2147483648, %v1929_v43  ;;  %vm1945_vm13 = vcmp.le.s32.totalorder %v5166_v29, %v1936_v53  ;;  %vm1946_vm14 = vcmp.le.s32.totalorder %v5168_v30, %v1936_v53  ;;  %v1890_v39 = vpop.xlane.xlu1 %1889 }
 0x88c   : > { %v4549_v63 = vsel %vm1945_vm13, 1.0, %v5010_v14  ;;  %v4550_v38 = vsel %vm1946_vm14, 1.0, %v5010_v14  ;;  %vm1906_vm15 = vcmp.ge.f32.partialorder %v1890_v39, 128.0 }
 0x88d   : > { %v1994_v23 = vadd.f32 %v4550_v38, %v4549_v63  ;;  %vm1947_vm0 = vcmp.le.s32.totalorder %v5151_v12, %v1937_v16  ;;  %vm1948_vm1 = vcmp.le.s32.totalorder %v5156_v17, %v1937_v16  ;;  %v6180_v1 = vsel %vm1906_vm15, %v6108_v36, %v1914_v37  ;;  %v1893_v22 = vpop.xlane.xlu0 %1892 }
 0x88e   : > { %v4551_v13 = vsel %vm1947_vm0, 1.0, %v5010_v14  ;;  %v4552_v34 = vsel %vm1948_vm1, 1.0, %v5010_v14  ;;  %v1930_v11 = vor.u32 131071, %v6180_v1  ;;  %vm1907_vm2 = vcmp.ge.f32.partialorder %v1893_v22, 128.0 }
 0x88f   : > { %1995 = vadd.xlane.f32.xlu1 %v1994_v23  ;;  %v1997_v6 = vadd.f32 %v4552_v34, %v4551_v13  ;;  %v6186_v3 = vsel %vm1907_vm2, %v6114_v18, %v1915_v20  ;;  %v1916_v36 = vor.u32 262144, %v6126_v57  ;;  %v2023_v63 = vor.u32 131072, %v6154_v54 }
 0x890   : > { %v1938_v55 = vxor.u32 2147483648, %v1930_v11  ;;  %v1931_v27 = vor.u32 131071, %v6186_v3  ;;  %v2024_v13 = vor.u32 131072, %v6162_v61  ;;  %v2025_v11 = vor.u32 131072, %v6168_v46 }
 0x891   : > { %1998 = vadd.xlane.f32.xlu0 %v1997_v6 }
 0x892   : > { %v1939_v58 = vxor.u32 2147483648, %v1931_v27  ;;  %vm1949_vm3 = vcmp.le.s32.totalorder %v5172_v31, %v1938_v55  ;;  %vm1950_vm4 = vcmp.le.s32.totalorder %v5174_v32, %v1938_v55  ;;  %v1896_v40 = vpop.xlane.xlu1 %1895 }
 0x893   : > { %v4553_v15 = vsel %vm1949_vm3, 1.0, %v5010_v14  ;;  %v4554_v33 = vsel %vm1950_vm4, 1.0, %v5010_v14  ;;  %vm1908_vm5 = vcmp.ge.f32.partialorder %v1896_v40, 128.0 }
 0x894   : > { %v1899_v18 = vpop.xlane.xlu0 %1898  ;;  %v2000_v41 = vadd.f32 %v4554_v33, %v4553_v15  ;;  %vm1951_vm6 = vcmp.le.s32.totalorder %v5187_v45, %v1939_v58  ;;  %vm1952_vm7 = vcmp.le.s32.totalorder %v5190_v48, %v1939_v58  ;;  %v6198_v42 = vsel %vm1908_vm5, %v6126_v57, %v1916_v36 }
 0x895   : > { %vm1909_vm8 = vcmp.ge.f32.partialorder %v1899_v18, 128.0  ;;  %v4555_v2 = vsel %vm1951_vm6, 1.0, %v5010_v14  ;;  %v4556_v7 = vsel %vm1952_vm7, 1.0, %v5010_v14  ;;  %v1932_v26 = vor.u32 131071, %v6198_v42 }
 0x896   : > { %v6204_v28 = vsel %vm1909_vm8, %v6132_v0, %v1917_v21  ;;  %2001 = vadd.xlane.f32.xlu1 %v2000_v41  ;;  %v2003_v50 = vadd.f32 %v4556_v7, %v4555_v2  ;;  %v1902_v59 = vpop.xlane.xlu1 %1901 }
 0x897   : > { %v1933_v25 = vor.u32 131071, %v6204_v28  ;;  %v1940_v44 = vxor.u32 2147483648, %v1932_v26  ;;  %vm1910_vm9 = vcmp.ge.f32.partialorder %v1902_v59, 128.0 }
 0x898   : > { %2004 = vadd.xlane.f32.xlu0 %v2003_v50  ;;  %v6209_v49 = vsel %vm1910_vm9, %v6137_v35, %v1918_v19 }
 0x899   : > { %v1941_v57 = vxor.u32 2147483648, %v1933_v25  ;;  %v1934_v24 = vor.u32 131071, %v6209_v49  ;;  %vm1953_vm10 = vcmp.le.s32.totalorder %v5195_v51, %v1940_v44  ;;  %vm1954_vm11 = vcmp.le.s32.totalorder %v5197_v52, %v1940_v44 }
 0x89a   : > { %v4557_v0 = vsel %vm1953_vm10, 1.0, %v5010_v14  ;;  %v4558_v10 = vsel %vm1954_vm11, 1.0, %v5010_v14 }
 0x89b   : > { %vm1955_vm12 = vcmp.le.s32.totalorder %v5207_v60, %v1941_v57  ;;  %vm1956_vm13 = vcmp.le.s32.totalorder %v5210_v62, %v1941_v57  ;;  %v1942_v47 = vxor.u32 2147483648, %v1934_v24  ;;  %v2006_v56 = vadd.f32 %v4558_v10, %v4557_v0 }
 0x89c   : > { %v4559_v53 = vsel %vm1955_vm12, 1.0, %v5010_v14  ;;  %v4560_v35 = vsel %vm1956_vm13, 1.0, %v5010_v14 }
 0x89d   : > { %v2009_v43 = vadd.f32 %v4560_v35, %v4559_v53  ;;  %2007 = vadd.xlane.f32.xlu1 %v2006_v56  ;;  %vm1957_vm14 = vcmp.le.s32.totalorder %v5216_v4, %v1942_v47  ;;  %vm1958_vm15 = vcmp.le.s32.totalorder %v5218_v5, %v1942_v47  ;;  %v2029_v47 = vor.u32 131072, %v6204_v28 }
 0x89e   : > { %v4561_v16 = vsel %vm1957_vm14, 1.0, %v5010_v14  ;;  %v4562_v37 = vsel %vm1958_vm15, 1.0, %v5010_v14 }
 0x89f   : > { %2010 = vadd.xlane.f32.xlu0 %v2009_v43  ;;  %v2012_v39 = vadd.f32 %v4562_v37, %v4561_v16 }
 0x8a1   : > { %2013 = vadd.xlane.f32.xlu1 %v2012_v39 }
 0x917   : > { %v1993_v38 = vpop.xlane.xlu0 %1992 }
 0x918   : > { %vm2015_vm0 = vcmp.ge.f32.partialorder %v1993_v38, 128.0 }
 0x919   : > { %v6226_v23 = vsel %vm2015_vm0, %v6154_v54, %v2023_v63 }
 0x91a   : > { %v2039_v20 = vor.u32 65535, %v6226_v23 }
 0x91c   : > { %v2047_v22 = vxor.u32 2147483648, %v2039_v20  ;;  %v1996_v34 = vpop.xlane.xlu1 %1995 }
 0x91d   : > { %vm2016_vm1 = vcmp.ge.f32.partialorder %v1996_v34, 128.0 }
 0x91e   : > { %vm2055_vm2 = vcmp.le.s32.totalorder %v5144_v8, %v2047_v22  ;;  %vm2056_vm3 = vcmp.le.s32.totalorder %v5146_v9, %v2047_v22  ;;  %v6234_v6 = vsel %vm2016_vm1, %v6162_v61, %v2024_v13  ;;  %v1999_v55 = vpop.xlane.xlu0 %1998  ;;  %v2026_v61 = vor.u32 131072, %v6180_v1 }
 0x91f   : > { %v4563_v54 = vsel %vm2055_vm2, 1.0, %v5010_v14  ;;  %v4564_v27 = vsel %vm2056_vm3, 1.0, %v5010_v14  ;;  %v2040_v58 = vor.u32 65535, %v6234_v6  ;;  %vm2017_vm4 = vcmp.ge.f32.partialorder %v1999_v55, 128.0 }
 0x920   : > { %v2103_v36 = vadd.f32 %v4564_v27, %v4563_v54  ;;  %v6240_v21 = vsel %vm2017_vm4, %v6168_v46, %v2025_v11  ;;  %v2027_v46 = vor.u32 131072, %v6186_v3  ;;  %v2030_v22 = vor.u32 131072, %v6209_v49 }
 0x921   : > { %v2048_v40 = vxor.u32 2147483648, %v2040_v58  ;;  %v2041_v15 = vor.u32 65535, %v6240_v21 }
 0x922   : > { %2104 = vadd.xlane.f32.xlu0 %v2103_v36 }
 0x923   : > { %v2049_v33 = vxor.u32 2147483648, %v2041_v15  ;;  %vm2057_vm5 = vcmp.le.s32.totalorder %v5166_v29, %v2048_v40  ;;  %vm2058_vm6 = vcmp.le.s32.totalorder %v5168_v30, %v2048_v40  ;;  %v2002_v18 = vpop.xlane.xlu1 %2001 }
 0x924   : > { %v4565_v41 = vsel %vm2057_vm5, 1.0, %v5010_v14  ;;  %v4566_v2 = vsel %vm2058_vm6, 1.0, %v5010_v14  ;;  %vm2018_vm7 = vcmp.ge.f32.partialorder %v2002_v18, 128.0 }
 0x925   : > { %v2106_v7 = vadd.f32 %v4566_v2, %v4565_v41  ;;  %vm2059_vm8 = vcmp.le.s32.totalorder %v5151_v12, %v2049_v33  ;;  %vm2060_vm9 = vcmp.le.s32.totalorder %v5156_v17, %v2049_v33  ;;  %v6252_v26 = vsel %vm2018_vm7, %v6180_v1, %v2026_v61  ;;  %v2005_v50 = vpop.xlane.xlu0 %2004 }
 0x926   : > { %v4567_v19 = vsel %vm2059_vm8, 1.0, %v5010_v14  ;;  %v4568_v25 = vsel %vm2060_vm9, 1.0, %v5010_v14  ;;  %v2042_v59 = vor.u32 65535, %v6252_v26  ;;  %vm2019_vm10 = vcmp.ge.f32.partialorder %v2005_v50, 128.0 }
 0x927   : > { %2107 = vadd.xlane.f32.xlu1 %v2106_v7  ;;  %v2109_v44 = vadd.f32 %v4568_v25, %v4567_v19  ;;  %v6258_v57 = vsel %vm2019_vm10, %v6186_v3, %v2027_v46  ;;  %v2028_v1 = vor.u32 131072, %v6198_v42  ;;  %v2135_v41 = vor.u32 65536, %v6226_v23 }
 0x928   : > { %v2050_v24 = vxor.u32 2147483648, %v2042_v59  ;;  %v2043_v0 = vor.u32 65535, %v6258_v57  ;;  %v2136_v19 = vor.u32 65536, %v6234_v6  ;;  %v2137_v59 = vor.u32 65536, %v6240_v21 }
 0x929   : > { %2110 = vadd.xlane.f32.xlu0 %v2109_v44 }
 0x92a   : > { %v2051_v10 = vxor.u32 2147483648, %v2043_v0  ;;  %vm2061_vm11 = vcmp.le.s32.totalorder %v5172_v31, %v2050_v24  ;;  %vm2062_vm12 = vcmp.le.s32.totalorder %v5174_v32, %v2050_v24  ;;  %v2008_v56 = vpop.xlane.xlu1 %2007 }
 0x92b   : > { %v4569_v53 = vsel %vm2061_vm11, 1.0, %v5010_v14  ;;  %v4570_v35 = vsel %vm2062_vm12, 1.0, %v5010_v14  ;;  %vm2020_vm13 = vcmp.ge.f32.partialorder %v2008_v56, 128.0 }
 0x92c   : > { %v2011_v3 = vpop.xlane.xlu0 %2010  ;;  %v2112_v43 = vadd.f32 %v4570_v35, %v4569_v53  ;;  %vm2063_vm14 = vcmp.le.s32.totalorder %v5187_v45, %v2051_v10  ;;  %vm2064_vm15 = vcmp.le.s32.totalorder %v5190_v48, %v2051_v10  ;;  %v6270_v16 = vsel %vm2020_vm13, %v6198_v42, %v2028_v1 }
 0x92d   : > { %vm2021_vm0 = vcmp.ge.f32.partialorder %v2011_v3, 128.0  ;;  %v4571_v37 = vsel %vm2063_vm14, 1.0, %v5010_v14  ;;  %v4572_v39 = vsel %vm2064_vm15, 1.0, %v5010_v14  ;;  %v2044_v63 = vor.u32 65535, %v6270_v16 }
 0x92e   : > { %v6276_v38 = vsel %vm2021_vm0, %v6204_v28, %v2029_v47  ;;  %2113 = vadd.xlane.f32.xlu1 %v2112_v43  ;;  %v2115_v20 = vadd.f32 %v4572_v39, %v4571_v37  ;;  %v2014_v34 = vpop.xlane.xlu1 %2013 }
 0x92f   : > { %v2045_v13 = vor.u32 65535, %v6276_v38  ;;  %v2052_v11 = vxor.u32 2147483648, %v2044_v63  ;;  %vm2022_vm1 = vcmp.ge.f32.partialorder %v2014_v34, 128.0 }
 0x930   : > { %2116 = vadd.xlane.f32.xlu0 %v2115_v20  ;;  %v6281_v55 = vsel %vm2022_vm1, %v6209_v49, %v2030_v22 }
 0x931   : > { %v2053_v42 = vxor.u32 2147483648, %v2045_v13  ;;  %v2046_v54 = vor.u32 65535, %v6281_v55  ;;  %vm2065_vm2 = vcmp.le.s32.totalorder %v5195_v51, %v2052_v11  ;;  %vm2066_vm3 = vcmp.le.s32.totalorder %v5197_v52, %v2052_v11 }
 0x932   : > { %v4573_v28 = vsel %vm2065_vm2, 1.0, %v5010_v14  ;;  %v4574_v27 = vsel %vm2066_vm3, 1.0, %v5010_v14 }
 0x933   : > { %vm2067_vm4 = vcmp.le.s32.totalorder %v5207_v60, %v2053_v42  ;;  %vm2068_vm5 = vcmp.le.s32.totalorder %v5210_v62, %v2053_v42  ;;  %v2054_v58 = vxor.u32 2147483648, %v2046_v54  ;;  %v2118_v36 = vadd.f32 %v4574_v27, %v4573_v28 }
 0x934   : > { %v4575_v40 = vsel %vm2067_vm4, 1.0, %v5010_v14  ;;  %v4576_v49 = vsel %vm2068_vm5, 1.0, %v5010_v14 }
 0x935   : > { %v2121_v15 = vadd.f32 %v4576_v49, %v4575_v40  ;;  %2119 = vadd.xlane.f32.xlu1 %v2118_v36  ;;  %vm2069_vm6 = vcmp.le.s32.totalorder %v5216_v4, %v2054_v58  ;;  %vm2070_vm7 = vcmp.le.s32.totalorder %v5218_v5, %v2054_v58  ;;  %v2141_v58 = vor.u32 65536, %v6276_v38 }
 0x936   : > { %v4577_v33 = vsel %vm2069_vm6, 1.0, %v5010_v14  ;;  %v4578_v61 = vsel %vm2070_vm7, 1.0, %v5010_v14 }
 0x937   : > { %2122 = vadd.xlane.f32.xlu0 %v2121_v15  ;;  %v2124_v18 = vadd.f32 %v4578_v61, %v4577_v33 }
 0x939   : > { %2125 = vadd.xlane.f32.xlu1 %v2124_v18 }
 0x9af   : > { %v2105_v2 = vpop.xlane.xlu0 %2104 }
 0x9b0   : > { %vm2127_vm8 = vcmp.ge.f32.partialorder %v2105_v2, 128.0 }
 0x9b1   : > { %v6298_v7 = vsel %vm2127_vm8, %v6226_v23, %v2135_v41 }
 0x9b2   : > { %v2151_v46 = vor.u32 32767, %v6298_v7 }
 0x9b4   : > { %v2159_v50 = vxor.u32 2147483648, %v2151_v46  ;;  %v2108_v25 = vpop.xlane.xlu1 %2107 }
 0x9b5   : > { %vm2128_vm9 = vcmp.ge.f32.partialorder %v2108_v25, 128.0 }
 0x9b6   : > { %vm2167_vm10 = vcmp.le.s32.totalorder %v5144_v8, %v2159_v50  ;;  %vm2168_vm11 = vcmp.le.s32.totalorder %v5146_v9, %v2159_v50  ;;  %v6306_v44 = vsel %vm2128_vm9, %v6234_v6, %v2136_v19  ;;  %v2111_v24 = vpop.xlane.xlu0 %2110  ;;  %v2138_v6 = vor.u32 65536, %v6252_v26 }
 0x9b7   : > { %v4579_v23 = vsel %vm2167_vm10, 1.0, %v5010_v14  ;;  %v4580_v0 = vsel %vm2168_vm11, 1.0, %v5010_v14  ;;  %v2152_v10 = vor.u32 32767, %v6306_v44  ;;  %vm2129_vm12 = vcmp.ge.f32.partialorder %v2111_v24, 128.0 }
 0x9b8   : > { %v2215_v1 = vadd.f32 %v4580_v0, %v4579_v23  ;;  %v6312_v47 = vsel %vm2129_vm12, %v6240_v21, %v2137_v59  ;;  %v2139_v21 = vor.u32 65536, %v6258_v57  ;;  %v2142_v50 = vor.u32 65536, %v6281_v55 }
 0x9b9   : > { %v2160_v56 = vxor.u32 2147483648, %v2152_v10  ;;  %v2153_v53 = vor.u32 32767, %v6312_v47 }
 0x9ba   : > { %2216 = vadd.xlane.f32.xlu0 %v2215_v1 }
 0x9bb   : > { %v2161_v35 = vxor.u32 2147483648, %v2153_v53  ;;  %vm2169_vm13 = vcmp.le.s32.totalorder %v5166_v29, %v2160_v56  ;;  %vm2170_vm14 = vcmp.le.s32.totalorder %v5168_v30, %v2160_v56  ;;  %v2114_v3 = vpop.xlane.xlu1 %2113 }
 0x9bc   : > { %v4581_v43 = vsel %vm2169_vm13, 1.0, %v5010_v14  ;;  %v4582_v37 = vsel %vm2170_vm14, 1.0, %v5010_v14  ;;  %vm2130_vm15 = vcmp.ge.f32.partialorder %v2114_v3, 128.0 }
 0x9bd   : > { %v2218_v39 = vadd.f32 %v4582_v37, %v4581_v43  ;;  %vm2171_vm0 = vcmp.le.s32.totalorder %v5151_v12, %v2161_v35  ;;  %vm2172_vm1 = vcmp.le.s32.totalorder %v5156_v17, %v2161_v35  ;;  %v6324_v63 = vsel %vm2130_vm15, %v6252_v26, %v2138_v6  ;;  %v2117_v20 = vpop.xlane.xlu0 %2116 }
 0x9be   : > { %v4583_v22 = vsel %vm2171_vm0, 1.0, %v5010_v14  ;;  %v4584_v13 = vsel %vm2172_vm1, 1.0, %v5010_v14  ;;  %v2154_v34 = vor.u32 32767, %v6324_v63  ;;  %vm2131_vm2 = vcmp.ge.f32.partialorder %v2117_v20, 128.0 }
 0x9bf   : > { %2219 = vadd.xlane.f32.xlu1 %v2218_v39  ;;  %v2221_v11 = vadd.f32 %v4584_v13, %v4583_v22  ;;  %v6330_v42 = vsel %vm2131_vm2, %v6258_v57, %v2139_v21  ;;  %v2140_v26 = vor.u32 65536, %v6270_v16  ;;  %v2247_v43 = vor.u32 32768, %v6298_v7 }
 0x9c0   : > { %v2162_v54 = vxor.u32 2147483648, %v2154_v34  ;;  %v2155_v28 = vor.u32 32767, %v6330_v42  ;;  %v2248_v22 = vor.u32 32768, %v6306_v44  ;;  %v2249_v34 = vor.u32 32768, %v6312_v47 }
 0x9c1   : > { %2222 = vadd.xlane.f32.xlu0 %v2221_v11 }
 0x9c2   : > { %v2163_v27 = vxor.u32 2147483648, %v2155_v28  ;;  %vm2173_vm3 = vcmp.le.s32.totalorder %v5172_v31, %v2162_v54  ;;  %vm2174_vm4 = vcmp.le.s32.totalorder %v5174_v32, %v2162_v54  ;;  %v2120_v36 = vpop.xlane.xlu1 %2119 }
 0x9c3   : > { %v4585_v40 = vsel %vm2173_vm3, 1.0, %v5010_v14  ;;  %v4586_v49 = vsel %vm2174_vm4, 1.0, %v5010_v14  ;;  %vm2132_vm5 = vcmp.ge.f32.partialorder %v2120_v36, 128.0 }
 0x9c4   : > { %v2123_v57 = vpop.xlane.xlu0 %2122  ;;  %v2224_v15 = vadd.f32 %v4586_v49, %v4585_v40  ;;  %vm2175_vm6 = vcmp.le.s32.totalorder %v5187_v45, %v2163_v27  ;;  %vm2176_vm7 = vcmp.le.s32.totalorder %v5190_v48, %v2163_v27  ;;  %v6342_v33 = vsel %vm2132_vm5, %v6270_v16, %v2140_v26 }
 0x9c5   : > { %vm2133_vm8 = vcmp.ge.f32.partialorder %v2123_v57, 128.0  ;;  %v4587_v61 = vsel %vm2175_vm6, 1.0, %v5010_v14  ;;  %v4588_v18 = vsel %vm2176_vm7, 1.0, %v5010_v14  ;;  %v2156_v41 = vor.u32 32767, %v6342_v33 }
 0x9c6   : > { %v6348_v2 = vsel %vm2133_vm8, %v6276_v38, %v2141_v58  ;;  %2225 = vadd.xlane.f32.xlu1 %v2224_v15  ;;  %v2227_v46 = vadd.f32 %v4588_v18, %v4587_v61  ;;  %v2126_v25 = vpop.xlane.xlu1 %2125 }
 0x9c7   : > { %v2157_v19 = vor.u32 32767, %v6348_v2  ;;  %v2164_v59 = vxor.u32 2147483648, %v2156_v41  ;;  %vm2134_vm9 = vcmp.ge.f32.partialorder %v2126_v25, 128.0 }
 0x9c8   : > { %2228 = vadd.xlane.f32.xlu0 %v2227_v46  ;;  %v6353_v24 = vsel %vm2134_vm9, %v6281_v55, %v2142_v50 }
 0x9c9   : > { %v2165_v16 = vxor.u32 2147483648, %v2157_v19  ;;  %v2158_v23 = vor.u32 32767, %v6353_v24  ;;  %vm2177_vm10 = vcmp.le.s32.totalorder %v5195_v51, %v2164_v59  ;;  %vm2178_vm11 = vcmp.le.s32.totalorder %v5197_v52, %v2164_v59 }
 0x9ca   : > { %v4589_v38 = vsel %vm2177_vm10, 1.0, %v5010_v14  ;;  %v4590_v0 = vsel %vm2178_vm11, 1.0, %v5010_v14 }
 0x9cb   : > { %vm2179_vm12 = vcmp.le.s32.totalorder %v5207_v60, %v2165_v16  ;;  %vm2180_vm13 = vcmp.le.s32.totalorder %v5210_v62, %v2165_v16  ;;  %v2166_v10 = vxor.u32 2147483648, %v2158_v23  ;;  %v2230_v1 = vadd.f32 %v4590_v0, %v4589_v38 }
 0x9cc   : > { %v4591_v56 = vsel %vm2179_vm12, 1.0, %v5010_v14  ;;  %v4592_v55 = vsel %vm2180_vm13, 1.0, %v5010_v14 }
 0x9cd   : > { %v2233_v53 = vadd.f32 %v4592_v55, %v4591_v56  ;;  %2231 = vadd.xlane.f32.xlu1 %v2230_v1  ;;  %vm2181_vm14 = vcmp.le.s32.totalorder %v5216_v4, %v2166_v10  ;;  %vm2182_vm15 = vcmp.le.s32.totalorder %v5218_v5, %v2166_v10  ;;  %v2253_v10 = vor.u32 32768, %v6348_v2 }
 0x9ce   : > { %v4593_v35 = vsel %vm2181_vm14, 1.0, %v5010_v14  ;;  %v4594_v6 = vsel %vm2182_vm15, 1.0, %v5010_v14 }
 0x9cf   : > { %2234 = vadd.xlane.f32.xlu0 %v2233_v53  ;;  %v2236_v3 = vadd.f32 %v4594_v6, %v4593_v35 }
 0x9d1   : > { %2237 = vadd.xlane.f32.xlu1 %v2236_v3 }
 0xa47   : > { %v2217_v37 = vpop.xlane.xlu0 %2216 }
 0xa48   : > { %vm2239_vm0 = vcmp.ge.f32.partialorder %v2217_v37, 128.0 }
 0xa49   : > { %v6370_v39 = vsel %vm2239_vm0, %v6298_v7, %v2247_v43 }
 0xa4a   : > { %v2263_v21 = vor.u32 16383, %v6370_v39 }
 0xa4c   : > { %v2271_v20 = vxor.u32 2147483648, %v2263_v21  ;;  %v2220_v13 = vpop.xlane.xlu1 %2219 }
 0xa4d   : > { %vm2240_vm1 = vcmp.ge.f32.partialorder %v2220_v13, 128.0 }
 0xa4e   : > { %vm2279_vm2 = vcmp.le.s32.totalorder %v5144_v8, %v2271_v20  ;;  %vm2280_vm3 = vcmp.le.s32.totalorder %v5146_v9, %v2271_v20  ;;  %v6378_v11 = vsel %vm2240_vm1, %v6306_v44, %v2248_v22  ;;  %v2223_v54 = vpop.xlane.xlu0 %2222  ;;  %v2250_v44 = vor.u32 32768, %v6324_v63 }
 0xa4f   : > { %v4595_v7 = vsel %vm2279_vm2, 1.0, %v5010_v14  ;;  %v4596_v28 = vsel %vm2280_vm3, 1.0, %v5010_v14  ;;  %v2264_v27 = vor.u32 16383, %v6378_v11  ;;  %vm2241_vm4 = vcmp.ge.f32.partialorder %v2223_v54, 128.0 }
 0xa50   : > { %v2327_v26 = vadd.f32 %v4596_v28, %v4595_v7  ;;  %v6384_v58 = vsel %vm2241_vm4, %v6312_v47, %v2249_v34  ;;  %v2251_v47 = vor.u32 32768, %v6330_v42  ;;  %v2254_v20 = vor.u32 32768, %v6353_v24 }
 0xa51   : > { %v2272_v36 = vxor.u32 2147483648, %v2264_v27  ;;  %v2265_v40 = vor.u32 16383, %v6384_v58 }
 0xa52   : > { %2328 = vadd.xlane.f32.xlu0 %v2327_v26 }
 0xa53   : > { %v2273_v49 = vxor.u32 2147483648, %v2265_v40  ;;  %vm2281_vm5 = vcmp.le.s32.totalorder %v5166_v29, %v2272_v36  ;;  %vm2282_vm6 = vcmp.le.s32.totalorder %v5168_v30, %v2272_v36  ;;  %v2226_v57 = vpop.xlane.xlu1 %2225 }
 0xa54   : > { %v4597_v15 = vsel %vm2281_vm5, 1.0, %v5010_v14  ;;  %v4598_v61 = vsel %vm2282_vm6, 1.0, %v5010_v14  ;;  %vm2242_vm7 = vcmp.ge.f32.partialorder %v2226_v57, 128.0 }
 0xa55   : > { %v2330_v18 = vadd.f32 %v4598_v61, %v4597_v15  ;;  %vm2283_vm8 = vcmp.le.s32.totalorder %v5151_v12, %v2273_v49  ;;  %vm2284_vm9 = vcmp.le.s32.totalorder %v5156_v17, %v2273_v49  ;;  %v6396_v41 = vsel %vm2242_vm7, %v6324_v63, %v2250_v44  ;;  %v2229_v46 = vpop.xlane.xlu0 %2228 }
 0xa56   : > { %v4599_v50 = vsel %vm2283_vm8, 1.0, %v5010_v14  ;;  %v4600_v19 = vsel %vm2284_vm9, 1.0, %v5010_v14  ;;  %v2266_v25 = vor.u32 16383, %v6396_v41  ;;  %vm2243_vm10 = vcmp.ge.f32.partialorder %v2229_v46, 128.0 }
 0xa57   : > { %2331 = vadd.xlane.f32.xlu1 %v2330_v18  ;;  %v2333_v59 = vadd.f32 %v4600_v19, %v4599_v50  ;;  %v6402_v16 = vsel %vm2243_vm10, %v6330_v42, %v2251_v47  ;;  %v2252_v63 = vor.u32 32768, %v6342_v33  ;;  %v2359_v15 = vor.u32 16384, %v6370_v39 }
 0xa58   : > { %v2274_v23 = vxor.u32 2147483648, %v2266_v25  ;;  %v2267_v38 = vor.u32 16383, %v6402_v16  ;;  %v2360_v50 = vor.u32 16384, %v6378_v11  ;;  %v2361_v25 = vor.u32 16384, %v6384_v58 }
 0xa59   : > { %2334 = vadd.xlane.f32.xlu0 %v2333_v59 }
 0xa5a   : > { %v2275_v0 = vxor.u32 2147483648, %v2267_v38  ;;  %vm2285_vm11 = vcmp.le.s32.totalorder %v5172_v31, %v2274_v23  ;;  %vm2286_vm12 = vcmp.le.s32.totalorder %v5174_v32, %v2274_v23  ;;  %v2232_v1 = vpop.xlane.xlu1 %2231 }
 0xa5b   : > { %v4601_v56 = vsel %vm2285_vm11, 1.0, %v5010_v14  ;;  %v4602_v55 = vsel %vm2286_vm12, 1.0, %v5010_v14  ;;  %vm2244_vm13 = vcmp.ge.f32.partialorder %v2232_v1, 128.0 }
 0xa5c   : > { %v2235_v42 = vpop.xlane.xlu0 %2234  ;;  %v2336_v53 = vadd.f32 %v4602_v55, %v4601_v56  ;;  %vm2287_vm14 = vcmp.le.s32.totalorder %v5187_v45, %v2275_v0  ;;  %vm2288_vm15 = vcmp.le.s32.totalorder %v5190_v48, %v2275_v0  ;;  %v6414_v35 = vsel %vm2244_vm13, %v6342_v33, %v2252_v63 }
 0xa5d   : > { %vm2245_vm0 = vcmp.ge.f32.partialorder %v2235_v42, 128.0  ;;  %v4603_v6 = vsel %vm2287_vm14, 1.0, %v5010_v14  ;;  %v4604_v3 = vsel %vm2288_vm15, 1.0, %v5010_v14  ;;  %v2268_v43 = vor.u32 16383, %v6414_v35 }
 0xa5e   : > { %v6420_v37 = vsel %vm2245_vm0, %v6348_v2, %v2253_v10  ;;  %2337 = vadd.xlane.f32.xlu1 %v2336_v53  ;;  %v2339_v21 = vadd.f32 %v4604_v3, %v4603_v6  ;;  %v2238_v13 = vpop.xlane.xlu1 %2237 }
 0xa5f   : > { %v2269_v22 = vor.u32 16383, %v6420_v37  ;;  %v2276_v34 = vxor.u32 2147483648, %v2268_v43  ;;  %vm2246_vm1 = vcmp.ge.f32.partialorder %v2238_v13, 128.0 }
 0xa60   : > { %2340 = vadd.xlane.f32.xlu0 %v2339_v21  ;;  %v6425_v54 = vsel %vm2246_vm1, %v6353_v24, %v2254_v20 }
 0xa61   : > { %v2277_v33 = vxor.u32 2147483648, %v2269_v22  ;;  %v2270_v7 = vor.u32 16383, %v6425_v54  ;;  %vm2289_vm2 = vcmp.le.s32.totalorder %v5195_v51, %v2276_v34  ;;  %vm2290_vm3 = vcmp.le.s32.totalorder %v5197_v52, %v2276_v34 }
 0xa62   : > { %v4605_v2 = vsel %vm2289_vm2, 1.0, %v5010_v14  ;;  %v4606_v28 = vsel %vm2290_vm3, 1.0, %v5010_v14 }
 0xa63   : > { %vm2291_vm4 = vcmp.le.s32.totalorder %v5207_v60, %v2277_v33  ;;  %vm2292_vm5 = vcmp.le.s32.totalorder %v5210_v62, %v2277_v33  ;;  %v2278_v27 = vxor.u32 2147483648, %v2270_v7  ;;  %v2342_v26 = vadd.f32 %v4606_v28, %v4605_v2 }
 0xa64   : > { %v4607_v36 = vsel %vm2291_vm4, 1.0, %v5010_v14  ;;  %v4608_v24 = vsel %vm2292_vm5, 1.0, %v5010_v14 }
 0xa65   : > { %v2345_v40 = vadd.f32 %v4608_v24, %v4607_v36  ;;  %2343 = vadd.xlane.f32.xlu1 %v2342_v26  ;;  %vm2293_vm6 = vcmp.le.s32.totalorder %v5216_v4, %v2278_v27  ;;  %vm2294_vm7 = vcmp.le.s32.totalorder %v5218_v5, %v2278_v27  ;;  %v2365_v27 = vor.u32 16384, %v6420_v37 }
 0xa66   : > { %v4609_v49 = vsel %vm2293_vm6, 1.0, %v5010_v14  ;;  %v4610_v44 = vsel %vm2294_vm7, 1.0, %v5010_v14 }
 0xa67   : > { %2346 = vadd.xlane.f32.xlu0 %v2345_v40  ;;  %v2348_v57 = vadd.f32 %v4610_v44, %v4609_v49 }
 0xa69   : > { %2349 = vadd.xlane.f32.xlu1 %v2348_v57 }
 0xadf   : > { %v2329_v61 = vpop.xlane.xlu0 %2328 }
 0xae0   : > { %vm2351_vm8 = vcmp.ge.f32.partialorder %v2329_v61, 128.0 }
 0xae1   : > { %v6442_v18 = vsel %vm2351_vm8, %v6370_v39, %v2359_v15 }
 0xae2   : > { %v2375_v47 = vor.u32 8191, %v6442_v18 }
 0xae4   : > { %v2383_v46 = vxor.u32 2147483648, %v2375_v47  ;;  %v2332_v19 = vpop.xlane.xlu1 %2331 }
 0xae5   : > { %vm2352_vm9 = vcmp.ge.f32.partialorder %v2332_v19, 128.0 }
 0xae6   : > { %vm2391_vm10 = vcmp.le.s32.totalorder %v5144_v8, %v2383_v46  ;;  %vm2392_vm11 = vcmp.le.s32.totalorder %v5146_v9, %v2383_v46  ;;  %v6450_v59 = vsel %vm2352_vm9, %v6378_v11, %v2360_v50  ;;  %v2335_v23 = vpop.xlane.xlu0 %2334  ;;  %v2362_v11 = vor.u32 16384, %v6396_v41 }
 0xae7   : > { %v4611_v39 = vsel %vm2391_vm10, 1.0, %v5010_v14  ;;  %v4612_v38 = vsel %vm2392_vm11, 1.0, %v5010_v14  ;;  %v2376_v0 = vor.u32 8191, %v6450_v59  ;;  %vm2353_vm12 = vcmp.ge.f32.partialorder %v2335_v23, 128.0 }
 0xae8   : > { %v2439_v63 = vadd.f32 %v4612_v38, %v4611_v39  ;;  %v6456_v10 = vsel %vm2353_vm12, %v6384_v58, %v2361_v25  ;;  %v2363_v58 = vor.u32 16384, %v6402_v16  ;;  %v2366_v46 = vor.u32 16384, %v6425_v54 }
 0xae9   : > { %v2384_v1 = vxor.u32 2147483648, %v2376_v0  ;;  %v2377_v56 = vor.u32 8191, %v6456_v10 }
 0xaea   : > { %2440 = vadd.xlane.f32.xlu0 %v2439_v63 }
 0xaeb   : > { %v2385_v55 = vxor.u32 2147483648, %v2377_v56  ;;  %vm2393_vm13 = vcmp.le.s32.totalorder %v5166_v29, %v2384_v1  ;;  %vm2394_vm14 = vcmp.le.s32.totalorder %v5168_v30, %v2384_v1  ;;  %v2338_v42 = vpop.xlane.xlu1 %2337 }
 0xaec   : > { %v4613_v53 = vsel %vm2393_vm13, 1.0, %v5010_v14  ;;  %v4614_v6 = vsel %vm2394_vm14, 1.0, %v5010_v14  ;;  %vm2354_vm15 = vcmp.ge.f32.partialorder %v2338_v42, 128.0 }
 0xaed   : > { %v2442_v3 = vadd.f32 %v4614_v6, %v4613_v53  ;;  %vm2395_vm0 = vcmp.le.s32.totalorder %v5151_v12, %v2385_v55  ;;  %vm2396_vm1 = vcmp.le.s32.totalorder %v5156_v17, %v2385_v55  ;;  %v6468_v43 = vsel %vm2354_vm15, %v6396_v41, %v2362_v11  ;;  %v2341_v21 = vpop.xlane.xlu0 %2340 }
 0xaee   : > { %v4615_v20 = vsel %vm2395_vm0, 1.0, %v5010_v14  ;;  %v4616_v22 = vsel %vm2396_vm1, 1.0, %v5010_v14  ;;  %v2378_v13 = vor.u32 8191, %v6468_v43  ;;  %vm2355_vm2 = vcmp.ge.f32.partialorder %v2341_v21, 128.0 }
 0xaef   : > { %2443 = vadd.xlane.f32.xlu1 %v2442_v3  ;;  %v2445_v34 = vadd.f32 %v4616_v22, %v4615_v20  ;;  %v6474_v33 = vsel %vm2355_vm2, %v6402_v16, %v2363_v58  ;;  %v2364_v41 = vor.u32 16384, %v6414_v35  ;;  %v2471_v53 = vor.u32 8192, %v6442_v18 }
 0xaf0   : > { %v2386_v7 = vxor.u32 2147483648, %v2378_v13  ;;  %v2379_v2 = vor.u32 8191, %v6474_v33  ;;  %v2472_v20 = vor.u32 8192, %v6450_v59  ;;  %v2473_v13 = vor.u32 8192, %v6456_v10 }
 0xaf1   : > { %2446 = vadd.xlane.f32.xlu0 %v2445_v34 }
 0xaf2   : > { %v2387_v28 = vxor.u32 2147483648, %v2379_v2  ;;  %vm2397_vm3 = vcmp.le.s32.totalorder %v5172_v31, %v2386_v7  ;;  %vm2398_vm4 = vcmp.le.s32.totalorder %v5174_v32, %v2386_v7  ;;  %v2344_v26 = vpop.xlane.xlu1 %2343 }
 0xaf3   : > { %v4617_v36 = vsel %vm2397_vm3, 1.0, %v5010_v14  ;;  %v4618_v24 = vsel %vm2398_vm4, 1.0, %v5010_v14  ;;  %vm2356_vm5 = vcmp.ge.f32.partialorder %v2344_v26, 128.0 }
 0xaf4   : > { %v2347_v16 = vpop.xlane.xlu0 %2346  ;;  %v2448_v40 = vadd.f32 %v4618_v24, %v4617_v36  ;;  %vm2399_vm6 = vcmp.le.s32.totalorder %v5187_v45, %v2387_v28  ;;  %vm2400_vm7 = vcmp.le.s32.totalorder %v5190_v48, %v2387_v28  ;;  %v6486_v49 = vsel %vm2356_vm5, %v6414_v35, %v2364_v41 }
 0xaf5   : > { %vm2357_vm8 = vcmp.ge.f32.partialorder %v2347_v16, 128.0  ;;  %v4619_v44 = vsel %vm2399_vm6, 1.0, %v5010_v14  ;;  %v4620_v57 = vsel %vm2400_vm7, 1.0, %v5010_v14  ;;  %v2380_v15 = vor.u32 8191, %v6486_v49 }
 0xaf6   : > { %v6492_v61 = vsel %vm2357_vm8, %v6420_v37, %v2365_v27  ;;  %2449 = vadd.xlane.f32.xlu1 %v2448_v40  ;;  %v2451_v47 = vadd.f32 %v4620_v57, %v4619_v44  ;;  %v2350_v19 = vpop.xlane.xlu1 %2349 }
 0xaf7   : > { %v2381_v50 = vor.u32 8191, %v6492_v61  ;;  %v2388_v25 = vxor.u32 2147483648, %v2380_v15  ;;  %vm2358_vm9 = vcmp.ge.f32.partialorder %v2350_v19, 128.0 }
 0xaf8   : > { %2452 = vadd.xlane.f32.xlu0 %v2451_v47  ;;  %v6497_v23 = vsel %vm2358_vm9, %v6425_v54, %v2366_v46 }
 0xaf9   : > { %v2389_v35 = vxor.u32 2147483648, %v2381_v50  ;;  %v2382_v39 = vor.u32 8191, %v6497_v23  ;;  %vm2401_vm10 = vcmp.le.s32.totalorder %v5195_v51, %v2388_v25  ;;  %vm2402_vm11 = vcmp.le.s32.totalorder %v5197_v52, %v2388_v25 }
 0xafa   : > { %v4621_v37 = vsel %vm2401_vm10, 1.0, %v5010_v14  ;;  %v4622_v38 = vsel %vm2402_vm11, 1.0, %v5010_v14 }
 0xafb   : > { %vm2403_vm12 = vcmp.le.s32.totalorder %v5207_v60, %v2389_v35  ;;  %vm2404_vm13 = vcmp.le.s32.totalorder %v5210_v62, %v2389_v35  ;;  %v2390_v0 = vxor.u32 2147483648, %v2382_v39  ;;  %v2454_v63 = vadd.f32 %v4622_v38, %v4621_v37 }
 0xafc   : > { %v4623_v1 = vsel %vm2403_vm12, 1.0, %v5010_v14  ;;  %v4624_v54 = vsel %vm2404_vm13, 1.0, %v5010_v14 }
 0xafd   : > { %v2457_v56 = vadd.f32 %v4624_v54, %v4623_v1  ;;  %2455 = vadd.xlane.f32.xlu1 %v2454_v63  ;;  %vm2405_vm14 = vcmp.le.s32.totalorder %v5216_v4, %v2390_v0  ;;  %vm2406_vm15 = vcmp.le.s32.totalorder %v5218_v5, %v2390_v0  ;;  %v2477_v0 = vor.u32 8192, %v6492_v61 }
 0xafe   : > { %v4625_v55 = vsel %vm2405_vm14, 1.0, %v5010_v14  ;;  %v4626_v11 = vsel %vm2406_vm15, 1.0, %v5010_v14 }
 0xaff   : > { %2458 = vadd.xlane.f32.xlu0 %v2457_v56  ;;  %v2460_v42 = vadd.f32 %v4626_v11, %v4625_v55 }
 0xb01   : > { %2461 = vadd.xlane.f32.xlu1 %v2460_v42 }
 0xb77   : > { %v2441_v6 = vpop.xlane.xlu0 %2440 }
 0xb78   : > { %vm2463_vm0 = vcmp.ge.f32.partialorder %v2441_v6, 128.0 }
 0xb79   : > { %v6514_v3 = vsel %vm2463_vm0, %v6442_v18, %v2471_v53 }
 0xb7a   : > { %v2487_v58 = vor.u32 4095, %v6514_v3 }
 0xb7c   : > { %v2495_v21 = vxor.u32 2147483648, %v2487_v58  ;;  %v2444_v22 = vpop.xlane.xlu1 %2443 }
 0xb7d   : > { %vm2464_vm1 = vcmp.ge.f32.partialorder %v2444_v22, 128.0 }
 0xb7e   : > { %vm2503_vm2 = vcmp.le.s32.totalorder %v5144_v8, %v2495_v21  ;;  %vm2504_vm3 = vcmp.le.s32.totalorder %v5146_v9, %v2495_v21  ;;  %v6522_v34 = vsel %vm2464_vm1, %v6450_v59, %v2472_v20  ;;  %v2447_v7 = vpop.xlane.xlu0 %2446  ;;  %v2474_v59 = vor.u32 8192, %v6468_v43 }
 0xb7f   : > { %v4627_v18 = vsel %vm2503_vm2, 1.0, %v5010_v14  ;;  %v4628_v2 = vsel %vm2504_vm3, 1.0, %v5010_v14  ;;  %v2488_v28 = vor.u32 4095, %v6522_v34  ;;  %vm2465_vm4 = vcmp.ge.f32.partialorder %v2447_v7, 128.0 }
 0xb80   : > { %v2551_v41 = vadd.f32 %v4628_v2, %v4627_v18  ;;  %v6528_v27 = vsel %vm2465_vm4, %v6456_v10, %v2473_v13  ;;  %v2475_v10 = vor.u32 8192, %v6474_v33  ;;  %v2478_v21 = vor.u32 8192, %v6497_v23 }
 0xb81   : > { %v2496_v26 = vxor.u32 2147483648, %v2488_v28  ;;  %v2489_v36 = vor.u32 4095, %v6528_v27 }
 0xb82   : > { %2552 = vadd.xlane.f32.xlu0 %v2551_v41 }
 0xb83   : > { %v2497_v24 = vxor.u32 2147483648, %v2489_v36  ;;  %vm2505_vm5 = vcmp.le.s32.totalorder %v5166_v29, %v2496_v26  ;;  %vm2506_vm6 = vcmp.le.s32.totalorder %v5168_v30, %v2496_v26  ;;  %v2450_v16 = vpop.xlane.xlu1 %2449 }
 0xb84   : > { %v4629_v40 = vsel %vm2505_vm5, 1.0, %v5010_v14  ;;  %v4630_v44 = vsel %vm2506_vm6, 1.0, %v5010_v14  ;;  %vm2466_vm7 = vcmp.ge.f32.partialorder %v2450_v16, 128.0 }
 0xb85   : > { %v2554_v57 = vadd.f32 %v4630_v44, %v4629_v40  ;;  %vm2507_vm8 = vcmp.le.s32.totalorder %v5151_v12, %v2497_v24  ;;  %vm2508_vm9 = vcmp.le.s32.totalorder %v5156_v17, %v2497_v24  ;;  %v6540_v15 = vsel %vm2466_vm7, %v6468_v43, %v2474_v59  ;;  %v2453_v47 = vpop.xlane.xlu0 %2452 }
 0xb86   : > { %v4631_v46 = vsel %vm2507_vm8, 1.0, %v5010_v14  ;;  %v4632_v50 = vsel %vm2508_vm9, 1.0, %v5010_v14  ;;  %v2490_v19 = vor.u32 4095, %v6540_v15  ;;  %vm2467_vm10 = vcmp.ge.f32.partialorder %v2453_v47, 128.0 }
 0xb87   : > { %2555 = vadd.xlane.f32.xlu1 %v2554_v57  ;;  %v2557_v25 = vadd.f32 %v4632_v50, %v4631_v46  ;;  %v6546_v35 = vsel %vm2467_vm10, %v6474_v33, %v2475_v10  ;;  %v2476_v43 = vor.u32 8192, %v6486_v49  ;;  %v2583_v40 = vor.u32 4096, %v6514_v3 }
 0xb88   : > { %v2498_v39 = vxor.u32 2147483648, %v2490_v19  ;;  %v2491_v37 = vor.u32 4095, %v6546_v35  ;;  %v2584_v46 = vor.u32 4096, %v6522_v34  ;;  %v2585_v19 = vor.u32 4096, %v6528_v27 }
 0xb89   : > { %2558 = vadd.xlane.f32.xlu0 %v2557_v25 }
 0xb8a   : > { %v2499_v38 = vxor.u32 2147483648, %v2491_v37  ;;  %vm2509_vm11 = vcmp.le.s32.totalorder %v5172_v31, %v2498_v39  ;;  %vm2510_vm12 = vcmp.le.s32.totalorder %v5174_v32, %v2498_v39  ;;  %v2456_v63 = vpop.xlane.xlu1 %2455 }
 0xb8b   : > { %v4633_v1 = vsel %vm2509_vm11, 1.0, %v5010_v14  ;;  %v4634_v54 = vsel %vm2510_vm12, 1.0, %v5010_v14  ;;  %vm2468_vm13 = vcmp.ge.f32.partialorder %v2456_v63, 128.0 }
 0xb8c   : > { %v2459_v33 = vpop.xlane.xlu0 %2458  ;;  %v2560_v56 = vadd.f32 %v4634_v54, %v4633_v1  ;;  %vm2511_vm14 = vcmp.le.s32.totalorder %v5187_v45, %v2499_v38  ;;  %vm2512_vm15 = vcmp.le.s32.totalorder %v5190_v48, %v2499_v38  ;;  %v6558_v55 = vsel %vm2468_vm13, %v6486_v49, %v2476_v43 }
 0xb8d   : > { %vm2469_vm0 = vcmp.ge.f32.partialorder %v2459_v33, 128.0  ;;  %v4635_v11 = vsel %vm2511_vm14, 1.0, %v5010_v14  ;;  %v4636_v42 = vsel %vm2512_vm15, 1.0, %v5010_v14  ;;  %v2492_v53 = vor.u32 4095, %v6558_v55 }
 0xb8e   : > { %v6564_v6 = vsel %vm2469_vm0, %v6492_v61, %v2477_v0  ;;  %2561 = vadd.xlane.f32.xlu1 %v2560_v56  ;;  %v2563_v58 = vadd.f32 %v4636_v42, %v4635_v11  ;;  %v2462_v22 = vpop.xlane.xlu1 %2461 }
 0xb8f   : > { %v2493_v20 = vor.u32 4095, %v6564_v6  ;;  %v2500_v13 = vxor.u32 2147483648, %v2492_v53  ;;  %vm2470_vm1 = vcmp.ge.f32.partialorder %v2462_v22, 128.0 }
 0xb90   : > { %2564 = vadd.xlane.f32.xlu0 %v2563_v58  ;;  %v6569_v7 = vsel %vm2470_vm1, %v6497_v23, %v2478_v21 }
 0xb91   : > { %v2501_v49 = vxor.u32 2147483648, %v2493_v20  ;;  %v2494_v18 = vor.u32 4095, %v6569_v7  ;;  %vm2513_vm2 = vcmp.le.s32.totalorder %v5195_v51, %v2500_v13  ;;  %vm2514_vm3 = vcmp.le.s32.totalorder %v5197_v52, %v2500_v13 }
 0xb92   : > { %v4637_v61 = vsel %vm2513_vm2, 1.0, %v5010_v14  ;;  %v4638_v2 = vsel %vm2514_vm3, 1.0, %v5010_v14 }
 0xb93   : > { %vm2515_vm4 = vcmp.le.s32.totalorder %v5207_v60, %v2501_v49  ;;  %vm2516_vm5 = vcmp.le.s32.totalorder %v5210_v62, %v2501_v49  ;;  %v2502_v28 = vxor.u32 2147483648, %v2494_v18  ;;  %v2566_v41 = vadd.f32 %v4638_v2, %v4637_v61 }
 0xb94   : > { %v4639_v26 = vsel %vm2515_vm4, 1.0, %v5010_v14  ;;  %v4640_v23 = vsel %vm2516_vm5, 1.0, %v5010_v14 }
 0xb95   : > { %v2569_v36 = vadd.f32 %v4640_v23, %v4639_v26  ;;  %2567 = vadd.xlane.f32.xlu1 %v2566_v41  ;;  %vm2517_vm6 = vcmp.le.s32.totalorder %v5216_v4, %v2502_v28  ;;  %vm2518_vm7 = vcmp.le.s32.totalorder %v5218_v5, %v2502_v28  ;;  %v2589_v28 = vor.u32 4096, %v6564_v6 }
 0xb96   : > { %v4641_v24 = vsel %vm2517_vm6, 1.0, %v5010_v14  ;;  %v4642_v59 = vsel %vm2518_vm7, 1.0, %v5010_v14 }
 0xb97   : > { %2570 = vadd.xlane.f32.xlu0 %v2569_v36  ;;  %v2572_v16 = vadd.f32 %v4642_v59, %v4641_v24 }
 0xb99   : > { %2573 = vadd.xlane.f32.xlu1 %v2572_v16 }
 0xc0f   : > { %v2553_v44 = vpop.xlane.xlu0 %2552 }
 0xc10   : > { %vm2575_vm8 = vcmp.ge.f32.partialorder %v2553_v44, 128.0 }
 0xc11   : > { %v6586_v57 = vsel %vm2575_vm8, %v6514_v3, %v2583_v40 }
 0xc12   : > { %v2599_v10 = vor.u32 2047, %v6586_v57 }
 0xc14   : > { %v2607_v47 = vxor.u32 2147483648, %v2599_v10  ;;  %v2556_v50 = vpop.xlane.xlu1 %2555 }
 0xc15   : > { %vm2576_vm9 = vcmp.ge.f32.partialorder %v2556_v50, 128.0 }
 0xc16   : > { %vm2615_vm10 = vcmp.le.s32.totalorder %v5144_v8, %v2607_v47  ;;  %vm2616_vm11 = vcmp.le.s32.totalorder %v5146_v9, %v2607_v47  ;;  %v6594_v25 = vsel %vm2576_vm9, %v6522_v34, %v2584_v46  ;;  %v2559_v39 = vpop.xlane.xlu0 %2558  ;;  %v2586_v34 = vor.u32 4096, %v6540_v15 }
 0xc17   : > { %v4643_v3 = vsel %vm2615_vm10, 1.0, %v5010_v14  ;;  %v4644_v37 = vsel %vm2616_vm11, 1.0, %v5010_v14  ;;  %v2600_v38 = vor.u32 2047, %v6594_v25  ;;  %vm2577_vm12 = vcmp.ge.f32.partialorder %v2559_v39, 128.0 }
 0xc18   : > { %v2663_v43 = vadd.f32 %v4644_v37, %v4643_v3  ;;  %v6600_v0 = vsel %vm2577_vm12, %v6528_v27, %v2585_v19  ;;  %v2587_v27 = vor.u32 4096, %v6546_v35  ;;  %v2590_v47 = vor.u32 4096, %v6569_v7 }
 0xc19   : > { %v2608_v63 = vxor.u32 2147483648, %v2600_v38  ;;  %v2601_v1 = vor.u32 2047, %v6600_v0 }
 0xc1a   : > { %2664 = vadd.xlane.f32.xlu0 %v2663_v43 }
 0xc1b   : > { %v2609_v54 = vxor.u32 2147483648, %v2601_v1  ;;  %vm2617_vm13 = vcmp.le.s32.totalorder %v5166_v29, %v2608_v63  ;;  %vm2618_vm14 = vcmp.le.s32.totalorder %v5168_v30, %v2608_v63  ;;  %v2562_v33 = vpop.xlane.xlu1 %2561 }
 0xc1c   : > { %v4645_v56 = vsel %vm2617_vm13, 1.0, %v5010_v14  ;;  %v4646_v11 = vsel %vm2618_vm14, 1.0, %v5010_v14  ;;  %vm2578_vm15 = vcmp.ge.f32.partialorder %v2562_v33, 128.0 }
 0xc1d   : > { %v2666_v42 = vadd.f32 %v4646_v11, %v4645_v56  ;;  %vm2619_vm0 = vcmp.le.s32.totalorder %v5151_v12, %v2609_v54  ;;  %vm2620_vm1 = vcmp.le.s32.totalorder %v5156_v17, %v2609_v54  ;;  %v6612_v53 = vsel %vm2578_vm15, %v6540_v15, %v2586_v34  ;;  %v2565_v58 = vpop.xlane.xlu0 %2564 }
 0xc1e   : > { %v4647_v21 = vsel %vm2619_vm0, 1.0, %v5010_v14  ;;  %v4648_v20 = vsel %vm2620_vm1, 1.0, %v5010_v14  ;;  %v2602_v22 = vor.u32 2047, %v6612_v53  ;;  %vm2579_vm2 = vcmp.ge.f32.partialorder %v2565_v58, 128.0 }
 0xc1f   : > { %2667 = vadd.xlane.f32.xlu1 %v2666_v42  ;;  %v2669_v13 = vadd.f32 %v4648_v20, %v4647_v21  ;;  %v6618_v49 = vsel %vm2579_vm2, %v6546_v35, %v2587_v27  ;;  %v2588_v15 = vor.u32 4096, %v6558_v55  ;;  %v2695_v56 = vor.u32 2048, %v6586_v57 }
 0xc20   : > { %v2610_v18 = vxor.u32 2147483648, %v2602_v22  ;;  %v2603_v61 = vor.u32 2047, %v6618_v49  ;;  %v2696_v21 = vor.u32 2048, %v6594_v25  ;;  %v2697_v22 = vor.u32 2048, %v6600_v0 }
 0xc21   : > { %2670 = vadd.xlane.f32.xlu0 %v2669_v13 }
 0xc22   : > { %v2611_v2 = vxor.u32 2147483648, %v2603_v61  ;;  %vm2621_vm3 = vcmp.le.s32.totalorder %v5172_v31, %v2610_v18  ;;  %vm2622_vm4 = vcmp.le.s32.totalorder %v5174_v32, %v2610_v18  ;;  %v2568_v41 = vpop.xlane.xlu1 %2567 }
 0xc23   : > { %v4649_v26 = vsel %vm2621_vm3, 1.0, %v5010_v14  ;;  %v4650_v23 = vsel %vm2622_vm4, 1.0, %v5010_v14  ;;  %vm2580_vm5 = vcmp.ge.f32.partialorder %v2568_v41, 128.0 }
 0xc24   : > { %v2571_v35 = vpop.xlane.xlu0 %2570  ;;  %v2672_v36 = vadd.f32 %v4650_v23, %v4649_v26  ;;  %vm2623_vm6 = vcmp.le.s32.totalorder %v5187_v45, %v2611_v2  ;;  %vm2624_vm7 = vcmp.le.s32.totalorder %v5190_v48, %v2611_v2  ;;  %v6630_v24 = vsel %vm2580_vm5, %v6558_v55, %v2588_v15 }
 0xc25   : > { %vm2581_vm8 = vcmp.ge.f32.partialorder %v2571_v35, 128.0  ;;  %v4651_v59 = vsel %vm2623_vm6, 1.0, %v5010_v14  ;;  %v4652_v16 = vsel %vm2624_vm7, 1.0, %v5010_v14  ;;  %v2604_v40 = vor.u32 2047, %v6630_v24 }
 0xc26   : > { %v6636_v44 = vsel %vm2581_vm8, %v6564_v6, %v2589_v28  ;;  %2673 = vadd.xlane.f32.xlu1 %v2672_v36  ;;  %v2675_v10 = vadd.f32 %v4652_v16, %v4651_v59  ;;  %v2574_v50 = vpop.xlane.xlu1 %2573 }
 0xc27   : > { %v2605_v46 = vor.u32 2047, %v6636_v44  ;;  %v2612_v19 = vxor.u32 2147483648, %v2604_v40  ;;  %vm2582_vm9 = vcmp.ge.f32.partialorder %v2574_v50, 128.0 }
 0xc28   : > { %2676 = vadd.xlane.f32.xlu0 %v2675_v10  ;;  %v6641_v39 = vsel %vm2582_vm9, %v6569_v7, %v2590_v47 }
 0xc29   : > { %v2613_v55 = vxor.u32 2147483648, %v2605_v46  ;;  %v2606_v3 = vor.u32 2047, %v6641_v39  ;;  %vm2625_vm10 = vcmp.le.s32.totalorder %v5195_v51, %v2612_v19  ;;  %vm2626_vm11 = vcmp.le.s32.totalorder %v5197_v52, %v2612_v19 }
 0xc2a   : > { %v4653_v6 = vsel %vm2625_vm10, 1.0, %v5010_v14  ;;  %v4654_v37 = vsel %vm2626_vm11, 1.0, %v5010_v14 }
 0xc2b   : > { %vm2627_vm12 = vcmp.le.s32.totalorder %v5207_v60, %v2613_v55  ;;  %vm2628_vm13 = vcmp.le.s32.totalorder %v5210_v62, %v2613_v55  ;;  %v2614_v38 = vxor.u32 2147483648, %v2606_v3  ;;  %v2678_v43 = vadd.f32 %v4654_v37, %v4653_v6 }
 0xc2c   : > { %v4655_v63 = vsel %vm2627_vm12, 1.0, %v5010_v14  ;;  %v4656_v7 = vsel %vm2628_vm13, 1.0, %v5010_v14 }
 0xc2d   : > { %v2681_v1 = vadd.f32 %v4656_v7, %v4655_v63  ;;  %2679 = vadd.xlane.f32.xlu1 %v2678_v43  ;;  %vm2629_vm14 = vcmp.le.s32.totalorder %v5216_v4, %v2614_v38  ;;  %vm2630_vm15 = vcmp.le.s32.totalorder %v5218_v5, %v2614_v38  ;;  %v2701_v38 = vor.u32 2048, %v6636_v44 }
 0xc2e   : > { %v4657_v54 = vsel %vm2629_vm14, 1.0, %v5010_v14  ;;  %v4658_v34 = vsel %vm2630_vm15, 1.0, %v5010_v14 }
 0xc2f   : > { %2682 = vadd.xlane.f32.xlu0 %v2681_v1  ;;  %v2684_v33 = vadd.f32 %v4658_v34, %v4657_v54 }
 0xc31   : > { %2685 = vadd.xlane.f32.xlu1 %v2684_v33 }
 0xca7   : > { %v2665_v11 = vpop.xlane.xlu0 %2664 }
 0xca8   : > { %vm2687_vm0 = vcmp.ge.f32.partialorder %v2665_v11, 128.0 }
 0xca9   : > { %v6658_v42 = vsel %vm2687_vm0, %v6586_v57, %v2695_v56 }
 0xcaa   : > { %v2711_v27 = vor.u32 1023, %v6658_v42 }
 0xcac   : > { %v2719_v58 = vxor.u32 2147483648, %v2711_v27  ;;  %v2668_v20 = vpop.xlane.xlu1 %2667 }
 0xcad   : > { %vm2688_vm1 = vcmp.ge.f32.partialorder %v2668_v20, 128.0 }
 0xcae   : > { %vm2727_vm2 = vcmp.le.s32.totalorder %v5144_v8, %v2719_v58  ;;  %vm2728_vm3 = vcmp.le.s32.totalorder %v5146_v9, %v2719_v58  ;;  %v6666_v13 = vsel %vm2688_vm1, %v6594_v25, %v2696_v21  ;;  %v2671_v18 = vpop.xlane.xlu0 %2670  ;;  %v2698_v25 = vor.u32 2048, %v6612_v53 }
 0xcaf   : > { %v4659_v57 = vsel %vm2727_vm2, 1.0, %v5010_v14  ;;  %v4660_v61 = vsel %vm2728_vm3, 1.0, %v5010_v14  ;;  %v2712_v2 = vor.u32 1023, %v6666_v13  ;;  %vm2689_vm4 = vcmp.ge.f32.partialorder %v2671_v18, 128.0 }
 0xcb0   : > { %v2775_v15 = vadd.f32 %v4660_v61, %v4659_v57  ;;  %v6672_v28 = vsel %vm2689_vm4, %v6600_v0, %v2697_v22  ;;  %v2699_v0 = vor.u32 2048, %v6618_v49  ;;  %v2702_v58 = vor.u32 2048, %v6641_v39 }
 0xcb1   : > { %v2720_v41 = vxor.u32 2147483648, %v2712_v2  ;;  %v2713_v26 = vor.u32 1023, %v6672_v28 }
 0xcb2   : > { %2776 = vadd.xlane.f32.xlu0 %v2775_v15 }
 0xcb3   : > { %v2721_v23 = vxor.u32 2147483648, %v2713_v26  ;;  %vm2729_vm5 = vcmp.le.s32.totalorder %v5166_v29, %v2720_v41  ;;  %vm2730_vm6 = vcmp.le.s32.totalorder %v5168_v30, %v2720_v41  ;;  %v2674_v35 = vpop.xlane.xlu1 %2673 }
 0xcb4   : > { %v4661_v36 = vsel %vm2729_vm5, 1.0, %v5010_v14  ;;  %v4662_v59 = vsel %vm2730_vm6, 1.0, %v5010_v14  ;;  %vm2690_vm7 = vcmp.ge.f32.partialorder %v2674_v35, 128.0 }
 0xcb5   : > { %v2778_v16 = vadd.f32 %v4662_v59, %v4661_v36  ;;  %vm2731_vm8 = vcmp.le.s32.totalorder %v5151_v12, %v2721_v23  ;;  %vm2732_vm9 = vcmp.le.s32.totalorder %v5156_v17, %v2721_v23  ;;  %v6684_v40 = vsel %vm2690_vm7, %v6612_v53, %v2698_v25  ;;  %v2677_v10 = vpop.xlane.xlu0 %2676 }
 0xcb6   : > { %v4663_v47 = vsel %vm2731_vm8, 1.0, %v5010_v14  ;;  %v4664_v46 = vsel %vm2732_vm9, 1.0, %v5010_v14  ;;  %v2714_v50 = vor.u32 1023, %v6684_v40  ;;  %vm2691_vm10 = vcmp.ge.f32.partialorder %v2677_v10, 128.0 }
 0xcb7   : > { %2779 = vadd.xlane.f32.xlu1 %v2778_v16  ;;  %v2781_v19 = vadd.f32 %v4664_v46, %v4663_v47  ;;  %v6690_v55 = vsel %vm2691_vm10, %v6618_v49, %v2699_v0  ;;  %v2700_v53 = vor.u32 2048, %v6630_v24  ;;  %v2807_v36 = vor.u32 1024, %v6658_v42 }
 0xcb8   : > { %v2722_v3 = vxor.u32 2147483648, %v2714_v50  ;;  %v2715_v6 = vor.u32 1023, %v6690_v55  ;;  %v2808_v47 = vor.u32 1024, %v6666_v13  ;;  %v2809_v50 = vor.u32 1024, %v6672_v28 }
 0xcb9   : > { %2782 = vadd.xlane.f32.xlu0 %v2781_v19 }
 0xcba   : > { %v2723_v37 = vxor.u32 2147483648, %v2715_v6  ;;  %vm2733_vm11 = vcmp.le.s32.totalorder %v5172_v31, %v2722_v3  ;;  %vm2734_vm12 = vcmp.le.s32.totalorder %v5174_v32, %v2722_v3  ;;  %v2680_v43 = vpop.xlane.xlu1 %2679 }
 0xcbb   : > { %v4665_v63 = vsel %vm2733_vm11, 1.0, %v5010_v14  ;;  %v4666_v7 = vsel %vm2734_vm12, 1.0, %v5010_v14  ;;  %vm2692_vm13 = vcmp.ge.f32.partialorder %v2680_v43, 128.0 }
 0xcbc   : > { %v2683_v49 = vpop.xlane.xlu0 %2682  ;;  %v2784_v1 = vadd.f32 %v4666_v7, %v4665_v63  ;;  %vm2735_vm14 = vcmp.le.s32.totalorder %v5187_v45, %v2723_v37  ;;  %vm2736_vm15 = vcmp.le.s32.totalorder %v5190_v48, %v2723_v37  ;;  %v6702_v54 = vsel %vm2692_vm13, %v6630_v24, %v2700_v53 }
 0xcbd   : > { %vm2693_vm0 = vcmp.ge.f32.partialorder %v2683_v49, 128.0  ;;  %v4667_v34 = vsel %vm2735_vm14, 1.0, %v5010_v14  ;;  %v4668_v33 = vsel %vm2736_vm15, 1.0, %v5010_v14  ;;  %v2716_v56 = vor.u32 1023, %v6702_v54 }
 0xcbe   : > { %v6708_v11 = vsel %vm2693_vm0, %v6636_v44, %v2701_v38  ;;  %2785 = vadd.xlane.f32.xlu1 %v2784_v1  ;;  %v2787_v27 = vadd.f32 %v4668_v33, %v4667_v34  ;;  %v2686_v20 = vpop.xlane.xlu1 %2685 }
 0xcbf   : > { %v2717_v21 = vor.u32 1023, %v6708_v11  ;;  %v2724_v22 = vxor.u32 2147483648, %v2716_v56  ;;  %vm2694_vm1 = vcmp.ge.f32.partialorder %v2686_v20, 128.0 }
 0xcc0   : > { %2788 = vadd.xlane.f32.xlu0 %v2787_v27  ;;  %v6713_v18 = vsel %vm2694_vm1, %v6641_v39, %v2702_v58 }
 0xcc1   : > { %v2725_v24 = vxor.u32 2147483648, %v2717_v21  ;;  %v2718_v57 = vor.u32 1023, %v6713_v18  ;;  %vm2737_vm2 = vcmp.le.s32.totalorder %v5195_v51, %v2724_v22  ;;  %vm2738_vm3 = vcmp.le.s32.totalorder %v5197_v52, %v2724_v22 }
 0xcc2   : > { %v4669_v44 = vsel %vm2737_vm2, 1.0, %v5010_v14  ;;  %v4670_v61 = vsel %vm2738_vm3, 1.0, %v5010_v14 }
 0xcc3   : > { %vm2739_vm4 = vcmp.le.s32.totalorder %v5207_v60, %v2725_v24  ;;  %vm2740_vm5 = vcmp.le.s32.totalorder %v5210_v62, %v2725_v24  ;;  %v2726_v2 = vxor.u32 2147483648, %v2718_v57  ;;  %v2790_v15 = vadd.f32 %v4670_v61, %v4669_v44 }
 0xcc4   : > { %v4671_v41 = vsel %vm2739_vm4, 1.0, %v5010_v14  ;;  %v4672_v39 = vsel %vm2740_vm5, 1.0, %v5010_v14 }
 0xcc5   : > { %v2793_v26 = vadd.f32 %v4672_v39, %v4671_v41  ;;  %2791 = vadd.xlane.f32.xlu1 %v2790_v15  ;;  %vm2741_vm6 = vcmp.le.s32.totalorder %v5216_v4, %v2726_v2  ;;  %vm2742_vm7 = vcmp.le.s32.totalorder %v5218_v5, %v2726_v2  ;;  %v2813_v2 = vor.u32 1024, %v6708_v11 }
 0xcc6   : > { %v4673_v23 = vsel %vm2741_vm6, 1.0, %v5010_v14  ;;  %v4674_v25 = vsel %vm2742_vm7, 1.0, %v5010_v14 }
 0xcc7   : > { %2794 = vadd.xlane.f32.xlu0 %v2793_v26  ;;  %v2796_v35 = vadd.f32 %v4674_v25, %v4673_v23 }
 0xcc9   : > { %2797 = vadd.xlane.f32.xlu1 %v2796_v35 }
 0xd3f   : > { %v2777_v59 = vpop.xlane.xlu0 %2776 }
 0xd40   : > { %vm2799_vm8 = vcmp.ge.f32.partialorder %v2777_v59, 128.0 }
 0xd41   : > { %v6730_v16 = vsel %vm2799_vm8, %v6658_v42, %v2807_v36 }
 0xd42   : > { %v2823_v0 = vor.u32 511, %v6730_v16 }
 0xd44   : > { %v2831_v10 = vxor.u32 2147483648, %v2823_v0  ;;  %v2780_v46 = vpop.xlane.xlu1 %2779 }
 0xd45   : > { %vm2800_vm9 = vcmp.ge.f32.partialorder %v2780_v46, 128.0 }
 0xd46   : > { %vm2839_vm10 = vcmp.le.s32.totalorder %v5144_v8, %v2831_v10  ;;  %vm2840_vm11 = vcmp.le.s32.totalorder %v5146_v9, %v2831_v10  ;;  %v6738_v19 = vsel %vm2800_vm9, %v6666_v13, %v2808_v47  ;;  %v2783_v3 = vpop.xlane.xlu0 %2782  ;;  %v2810_v13 = vor.u32 1024, %v6684_v40 }
 0xd47   : > { %v4675_v42 = vsel %vm2839_vm10, 1.0, %v5010_v14  ;;  %v4676_v6 = vsel %vm2840_vm11, 1.0, %v5010_v14  ;;  %v2824_v37 = vor.u32 511, %v6738_v19  ;;  %vm2801_vm12 = vcmp.ge.f32.partialorder %v2783_v3, 128.0 }
 0xd48   : > { %v2887_v53 = vadd.f32 %v4676_v6, %v4675_v42  ;;  %v6744_v38 = vsel %vm2801_vm12, %v6672_v28, %v2809_v50  ;;  %v2811_v28 = vor.u32 1024, %v6690_v55  ;;  %v2814_v10 = vor.u32 1024, %v6713_v18 }
 0xd49   : > { %v2832_v43 = vxor.u32 2147483648, %v2824_v37  ;;  %v2825_v63 = vor.u32 511, %v6744_v38 }
 0xd4a   : > { %2888 = vadd.xlane.f32.xlu0 %v2887_v53 }
 0xd4b   : > { %v2833_v7 = vxor.u32 2147483648, %v2825_v63  ;;  %vm2841_vm13 = vcmp.le.s32.totalorder %v5166_v29, %v2832_v43  ;;  %vm2842_vm14 = vcmp.le.s32.totalorder %v5168_v30, %v2832_v43  ;;  %v2786_v49 = vpop.xlane.xlu1 %2785 }
 0xd4c   : > { %v4677_v1 = vsel %vm2841_vm13, 1.0, %v5010_v14  ;;  %v4678_v34 = vsel %vm2842_vm14, 1.0, %v5010_v14  ;;  %vm2802_vm15 = vcmp.ge.f32.partialorder %v2786_v49, 128.0 }
 0xd4d   : > { %v2890_v33 = vadd.f32 %v4678_v34, %v4677_v1  ;;  %vm2843_vm0 = vcmp.le.s32.totalorder %v5151_v12, %v2833_v7  ;;  %vm2844_vm1 = vcmp.le.s32.totalorder %v5156_v17, %v2833_v7  ;;  %v6756_v56 = vsel %vm2802_vm15, %v6684_v40, %v2810_v13  ;;  %v2789_v27 = vpop.xlane.xlu0 %2788 }
 0xd4e   : > { %v4679_v58 = vsel %vm2843_vm0, 1.0, %v5010_v14  ;;  %v4680_v21 = vsel %vm2844_vm1, 1.0, %v5010_v14  ;;  %v2826_v20 = vor.u32 511, %v6756_v56  ;;  %vm2803_vm2 = vcmp.ge.f32.partialorder %v2789_v27, 128.0 }
 0xd4f   : > { %2891 = vadd.xlane.f32.xlu1 %v2890_v33  ;;  %v2893_v22 = vadd.f32 %v4680_v21, %v4679_v58  ;;  %v6762_v24 = vsel %vm2803_vm2, %v6690_v55, %v2811_v28  ;;  %v2812_v40 = vor.u32 1024, %v6702_v54  ;;  %v2919_v1 = vor.u32 512, %v6730_v16 }
 0xd50   : > { %v2834_v57 = vxor.u32 2147483648, %v2826_v20  ;;  %v2827_v44 = vor.u32 511, %v6762_v24  ;;  %v2920_v58 = vor.u32 512, %v6738_v19  ;;  %v2921_v20 = vor.u32 512, %v6744_v38 }
 0xd51   : > { %2894 = vadd.xlane.f32.xlu0 %v2893_v22 }
 0xd52   : > { %v2835_v61 = vxor.u32 2147483648, %v2827_v44  ;;  %vm2845_vm3 = vcmp.le.s32.totalorder %v5172_v31, %v2834_v57  ;;  %vm2846_vm4 = vcmp.le.s32.totalorder %v5174_v32, %v2834_v57  ;;  %v2792_v15 = vpop.xlane.xlu1 %2791 }
 0xd53   : > { %v4681_v41 = vsel %vm2845_vm3, 1.0, %v5010_v14  ;;  %v4682_v39 = vsel %vm2846_vm4, 1.0, %v5010_v14  ;;  %vm2804_vm5 = vcmp.ge.f32.partialorder %v2792_v15, 128.0 }
 0xd54   : > { %v2795_v55 = vpop.xlane.xlu0 %2794  ;;  %v2896_v26 = vadd.f32 %v4682_v39, %v4681_v41  ;;  %vm2847_vm6 = vcmp.le.s32.totalorder %v5187_v45, %v2835_v61  ;;  %vm2848_vm7 = vcmp.le.s32.totalorder %v5190_v48, %v2835_v61  ;;  %v6774_v23 = vsel %vm2804_vm5, %v6702_v54, %v2812_v40 }
 0xd55   : > { %vm2805_vm8 = vcmp.ge.f32.partialorder %v2795_v55, 128.0  ;;  %v4683_v25 = vsel %vm2847_vm6, 1.0, %v5010_v14  ;;  %v4684_v35 = vsel %vm2848_vm7, 1.0, %v5010_v14  ;;  %v2828_v36 = vor.u32 511, %v6774_v23 }
 0xd56   : > { %v6780_v59 = vsel %vm2805_vm8, %v6708_v11, %v2813_v2  ;;  %2897 = vadd.xlane.f32.xlu1 %v2896_v26  ;;  %v2899_v0 = vadd.f32 %v4684_v35, %v4683_v25  ;;  %v2798_v46 = vpop.xlane.xlu1 %2797 }
 0xd57   : > { %v2829_v47 = vor.u32 511, %v6780_v59  ;;  %v2836_v50 = vxor.u32 2147483648, %v2828_v36  ;;  %vm2806_vm9 = vcmp.ge.f32.partialorder %v2798_v46, 128.0 }
 0xd58   : > { %2900 = vadd.xlane.f32.xlu0 %v2899_v0  ;;  %v6785_v3 = vsel %vm2806_vm9, %v6713_v18, %v2814_v10 }
 0xd59   : > { %v2837_v54 = vxor.u32 2147483648, %v2829_v47  ;;  %v2830_v42 = vor.u32 511, %v6785_v3  ;;  %vm2849_vm10 = vcmp.le.s32.totalorder %v5195_v51, %v2836_v50  ;;  %vm2850_vm11 = vcmp.le.s32.totalorder %v5197_v52, %v2836_v50 }
 0xd5a   : > { %v4685_v11 = vsel %vm2849_vm10, 1.0, %v5010_v14  ;;  %v4686_v6 = vsel %vm2850_vm11, 1.0, %v5010_v14 }
 0xd5b   : > { %vm2851_vm12 = vcmp.le.s32.totalorder %v5207_v60, %v2837_v54  ;;  %vm2852_vm13 = vcmp.le.s32.totalorder %v5210_v62, %v2837_v54  ;;  %v2838_v37 = vxor.u32 2147483648, %v2830_v42  ;;  %v2902_v53 = vadd.f32 %v4686_v6, %v4685_v11 }
 0xd5c   : > { %v4687_v43 = vsel %vm2851_vm12, 1.0, %v5010_v14  ;;  %v4688_v18 = vsel %vm2852_vm13, 1.0, %v5010_v14 }
 0xd5d   : > { %v2905_v63 = vadd.f32 %v4688_v18, %v4687_v43  ;;  %2903 = vadd.xlane.f32.xlu1 %v2902_v53  ;;  %vm2853_vm14 = vcmp.le.s32.totalorder %v5216_v4, %v2838_v37  ;;  %vm2854_vm15 = vcmp.le.s32.totalorder %v5218_v5, %v2838_v37  ;;  %v2925_v37 = vor.u32 512, %v6780_v59 }
 0xd5e   : > { %v4689_v7 = vsel %vm2853_vm14, 1.0, %v5010_v14  ;;  %v4690_v13 = vsel %vm2854_vm15, 1.0, %v5010_v14 }
 0xd5f   : > { %2906 = vadd.xlane.f32.xlu0 %v2905_v63  ;;  %v2908_v49 = vadd.f32 %v4690_v13, %v4689_v7 }
 0xd61   : > { %2909 = vadd.xlane.f32.xlu1 %v2908_v49 }
 0xdd7   : > { %v2889_v34 = vpop.xlane.xlu0 %2888 }
 0xdd8   : > { %vm2911_vm0 = vcmp.ge.f32.partialorder %v2889_v34, 128.0 }
 0xdd9   : > { %v6802_v33 = vsel %vm2911_vm0, %v6730_v16, %v2919_v1 }
 0xdda   : > { %v2935_v28 = vor.u32 255, %v6802_v33 }
 0xddc   : > { %v2943_v27 = vxor.u32 2147483648, %v2935_v28  ;;  %v2892_v21 = vpop.xlane.xlu1 %2891 }
 0xddd   : > { %vm2912_vm1 = vcmp.ge.f32.partialorder %v2892_v21, 128.0 }
 0xdde   : > { %vm2951_vm2 = vcmp.le.s32.totalorder %v5144_v8, %v2943_v27  ;;  %vm2952_vm3 = vcmp.le.s32.totalorder %v5146_v9, %v2943_v27  ;;  %v6810_v22 = vsel %vm2912_vm1, %v6738_v19, %v2920_v58  ;;  %v2895_v57 = vpop.xlane.xlu0 %2894  ;;  %v2922_v19 = vor.u32 512, %v6756_v56 }
 0xddf   : > { %v4691_v16 = vsel %vm2951_vm2, 1.0, %v5010_v14  ;;  %v4692_v44 = vsel %vm2952_vm3, 1.0, %v5010_v14  ;;  %v2936_v61 = vor.u32 255, %v6810_v22  ;;  %vm2913_vm4 = vcmp.ge.f32.partialorder %v2895_v57, 128.0 }
 0xde0   : > { %v2999_v40 = vadd.f32 %v4692_v44, %v4691_v16  ;;  %v6816_v2 = vsel %vm2913_vm4, %v6744_v38, %v2921_v20  ;;  %v2923_v38 = vor.u32 512, %v6762_v24  ;;  %v2926_v27 = vor.u32 512, %v6785_v3 }
 0xde1   : > { %v2944_v15 = vxor.u32 2147483648, %v2936_v61  ;;  %v2937_v41 = vor.u32 255, %v6816_v2 }
 0xde2   : > { %3000 = vadd.xlane.f32.xlu0 %v2999_v40 }
 0xde3   : > { %v2945_v39 = vxor.u32 2147483648, %v2937_v41  ;;  %vm2953_vm5 = vcmp.le.s32.totalorder %v5166_v29, %v2944_v15  ;;  %vm2954_vm6 = vcmp.le.s32.totalorder %v5168_v30, %v2944_v15  ;;  %v2898_v55 = vpop.xlane.xlu1 %2897 }
 0xde4   : > { %v4693_v26 = vsel %vm2953_vm5, 1.0, %v5010_v14  ;;  %v4694_v25 = vsel %vm2954_vm6, 1.0, %v5010_v14  ;;  %vm2914_vm7 = vcmp.ge.f32.partialorder %v2898_v55, 128.0 }
 0xde5   : > { %v3002_v35 = vadd.f32 %v4694_v25, %v4693_v26  ;;  %vm2955_vm8 = vcmp.le.s32.totalorder %v5151_v12, %v2945_v39  ;;  %vm2956_vm9 = vcmp.le.s32.totalorder %v5156_v17, %v2945_v39  ;;  %v6828_v36 = vsel %vm2914_vm7, %v6756_v56, %v2922_v19  ;;  %v2901_v0 = vpop.xlane.xlu0 %2900 }
 0xde6   : > { %v4695_v10 = vsel %vm2955_vm8, 1.0, %v5010_v14  ;;  %v4696_v47 = vsel %vm2956_vm9, 1.0, %v5010_v14  ;;  %v2938_v46 = vor.u32 255, %v6828_v36  ;;  %vm2915_vm10 = vcmp.ge.f32.partialorder %v2901_v0, 128.0 }
 0xde7   : > { %3003 = vadd.xlane.f32.xlu1 %v3002_v35  ;;  %v3005_v50 = vadd.f32 %v4696_v47, %v4695_v10  ;;  %v6834_v54 = vsel %vm2915_vm10, %v6762_v24, %v2923_v38  ;;  %v2924_v56 = vor.u32 512, %v6774_v23  ;;  %v3031_v26 = vor.u32 256, %v6802_v33 }
 0xde8   : > { %v2946_v42 = vxor.u32 2147483648, %v2938_v46  ;;  %v2939_v11 = vor.u32 255, %v6834_v54  ;;  %v3032_v10 = vor.u32 256, %v6810_v22  ;;  %v3033_v46 = vor.u32 256, %v6816_v2 }
 0xde9   : > { %3006 = vadd.xlane.f32.xlu0 %v3005_v50 }
 0xdea   : > { %v2947_v6 = vxor.u32 2147483648, %v2939_v11  ;;  %vm2957_vm11 = vcmp.le.s32.totalorder %v5172_v31, %v2946_v42  ;;  %vm2958_vm12 = vcmp.le.s32.totalorder %v5174_v32, %v2946_v42  ;;  %v2904_v53 = vpop.xlane.xlu1 %2903 }
 0xdeb   : > { %v4697_v43 = vsel %vm2957_vm11, 1.0, %v5010_v14  ;;  %v4698_v18 = vsel %vm2958_vm12, 1.0, %v5010_v14  ;;  %vm2916_vm13 = vcmp.ge.f32.partialorder %v2904_v53, 128.0 }
 0xdec   : > { %v2907_v24 = vpop.xlane.xlu0 %2906  ;;  %v3008_v63 = vadd.f32 %v4698_v18, %v4697_v43  ;;  %vm2959_vm14 = vcmp.le.s32.totalorder %v5187_v45, %v2947_v6  ;;  %vm2960_vm15 = vcmp.le.s32.totalorder %v5190_v48, %v2947_v6  ;;  %v6846_v7 = vsel %vm2916_vm13, %v6774_v23, %v2924_v56 }
 0xded   : > { %vm2917_vm0 = vcmp.ge.f32.partialorder %v2907_v24, 128.0  ;;  %v4699_v13 = vsel %vm2959_vm14, 1.0, %v5010_v14  ;;  %v4700_v49 = vsel %vm2960_vm15, 1.0, %v5010_v14  ;;  %v2940_v1 = vor.u32 255, %v6846_v7 }
 0xdee   : > { %v6852_v34 = vsel %vm2917_vm0, %v6780_v59, %v2925_v37  ;;  %3009 = vadd.xlane.f32.xlu1 %v3008_v63  ;;  %v3011_v28 = vadd.f32 %v4700_v49, %v4699_v13  ;;  %v2910_v21 = vpop.xlane.xlu1 %2909 }
 0xdef   : > { %v2941_v58 = vor.u32 255, %v6852_v34  ;;  %v2948_v20 = vxor.u32 2147483648, %v2940_v1  ;;  %vm2918_vm1 = vcmp.ge.f32.partialorder %v2910_v21, 128.0 }
 0xdf0   : > { %3012 = vadd.xlane.f32.xlu0 %v3011_v28  ;;  %v6857_v57 = vsel %vm2918_vm1, %v6785_v3, %v2926_v27 }
 0xdf1   : > { %v2949_v23 = vxor.u32 2147483648, %v2941_v58  ;;  %v2942_v16 = vor.u32 255, %v6857_v57  ;;  %vm2961_vm2 = vcmp.le.s32.totalorder %v5195_v51, %v2948_v20  ;;  %vm2962_vm3 = vcmp.le.s32.totalorder %v5197_v52, %v2948_v20 }
 0xdf2   : > { %v4701_v59 = vsel %vm2961_vm2, 1.0, %v5010_v14  ;;  %v4702_v44 = vsel %vm2962_vm3, 1.0, %v5010_v14 }
 0xdf3   : > { %vm2963_vm4 = vcmp.le.s32.totalorder %v5207_v60, %v2949_v23  ;;  %vm2964_vm5 = vcmp.le.s32.totalorder %v5210_v62, %v2949_v23  ;;  %v2950_v61 = vxor.u32 2147483648, %v2942_v16  ;;  %v3014_v40 = vadd.f32 %v4702_v44, %v4701_v59 }
 0xdf4   : > { %v4703_v15 = vsel %vm2963_vm4, 1.0, %v5010_v14  ;;  %v4704_v3 = vsel %vm2964_vm5, 1.0, %v5010_v14 }
 0xdf5   : > { %v3017_v41 = vadd.f32 %v4704_v3, %v4703_v15  ;;  %3015 = vadd.xlane.f32.xlu1 %v3014_v40  ;;  %vm2965_vm6 = vcmp.le.s32.totalorder %v5216_v4, %v2950_v61  ;;  %vm2966_vm7 = vcmp.le.s32.totalorder %v5218_v5, %v2950_v61  ;;  %v3037_v61 = vor.u32 256, %v6852_v34 }
 0xdf6   : > { %v4705_v39 = vsel %vm2965_vm6, 1.0, %v5010_v14  ;;  %v4706_v19 = vsel %vm2966_vm7, 1.0, %v5010_v14 }
 0xdf7   : > { %3018 = vadd.xlane.f32.xlu0 %v3017_v41  ;;  %v3020_v55 = vadd.f32 %v4706_v19, %v4705_v39 }
 0xdf9   : > { %3021 = vadd.xlane.f32.xlu1 %v3020_v55 }
 0xe6f   : > { %v3001_v25 = vpop.xlane.xlu0 %3000 }
 0xe70   : > { %vm3023_vm8 = vcmp.ge.f32.partialorder %v3001_v25, 128.0 }
 0xe71   : > { %v6874_v35 = vsel %vm3023_vm8, %v6802_v33, %v3031_v26 }
 0xe72   : > { %v3047_v38 = vor.u32 127, %v6874_v35 }
 0xe74   : > { %v3055_v0 = vxor.u32 2147483648, %v3047_v38  ;;  %v3004_v47 = vpop.xlane.xlu1 %3003 }
 0xe75   : > { %vm3024_vm9 = vcmp.ge.f32.partialorder %v3004_v47, 128.0 }
 0xe76   : > { %vm3063_vm10 = vcmp.le.s32.totalorder %v5144_v8, %v3055_v0  ;;  %vm3064_vm11 = vcmp.le.s32.totalorder %v5146_v9, %v3055_v0  ;;  %v6882_v50 = vsel %vm3024_vm9, %v6810_v22, %v3032_v10  ;;  %v3007_v42 = vpop.xlane.xlu0 %3006  ;;  %v3034_v22 = vor.u32 256, %v6828_v36 }
 0xe77   : > { %v4707_v33 = vsel %vm3063_vm10, 1.0, %v5010_v14  ;;  %v4708_v11 = vsel %vm3064_vm11, 1.0, %v5010_v14  ;;  %v3048_v6 = vor.u32 127, %v6882_v50  ;;  %vm3025_vm12 = vcmp.ge.f32.partialorder %v3007_v42, 128.0 }
 0xe78   : > { %v3111_v56 = vadd.f32 %v4708_v11, %v4707_v33  ;;  %v6888_v37 = vsel %vm3025_vm12, %v6816_v2, %v3033_v46  ;;  %v3035_v2 = vor.u32 256, %v6834_v54  ;;  %v3038_v0 = vor.u32 256, %v6857_v57 }
 0xe79   : > { %v3056_v53 = vxor.u32 2147483648, %v3048_v6  ;;  %v3049_v43 = vor.u32 127, %v6888_v37 }
 0xe7a   : > { %3112 = vadd.xlane.f32.xlu0 %v3111_v56 }
 0xe7b   : > { %v3057_v18 = vxor.u32 2147483648, %v3049_v43  ;;  %vm3065_vm13 = vcmp.le.s32.totalorder %v5166_v29, %v3056_v53  ;;  %vm3066_vm14 = vcmp.le.s32.totalorder %v5168_v30, %v3056_v53  ;;  %v3010_v24 = vpop.xlane.xlu1 %3009 }
 0xe7c   : > { %v4709_v63 = vsel %vm3065_vm13, 1.0, %v5010_v14  ;;  %v4710_v13 = vsel %vm3066_vm14, 1.0, %v5010_v14  ;;  %vm3026_vm15 = vcmp.ge.f32.partialorder %v3010_v24, 128.0 }
 0xe7d   : > { %v3114_v49 = vadd.f32 %v4710_v13, %v4709_v63  ;;  %vm3067_vm0 = vcmp.le.s32.totalorder %v5151_v12, %v3057_v18  ;;  %vm3068_vm1 = vcmp.le.s32.totalorder %v5156_v17, %v3057_v18  ;;  %v6900_v1 = vsel %vm3026_vm15, %v6828_v36, %v3034_v22  ;;  %v3013_v28 = vpop.xlane.xlu0 %3012 }
 0xe7e   : > { %v4711_v27 = vsel %vm3067_vm0, 1.0, %v5010_v14  ;;  %v4712_v58 = vsel %vm3068_vm1, 1.0, %v5010_v14  ;;  %v3050_v21 = vor.u32 127, %v6900_v1  ;;  %vm3027_vm2 = vcmp.ge.f32.partialorder %v3013_v28, 128.0 }
 0xe7f   : > { %3115 = vadd.xlane.f32.xlu1 %v3114_v49  ;;  %v3117_v20 = vadd.f32 %v4712_v58, %v4711_v27  ;;  %v6906_v23 = vsel %vm3027_vm2, %v6834_v54, %v3035_v2  ;;  %v3036_v36 = vor.u32 256, %v6846_v7  ;;  %v3143_v63 = vor.u32 128, %v6874_v35 }
 0xe80   : > { %v3058_v16 = vxor.u32 2147483648, %v3050_v21  ;;  %v3051_v59 = vor.u32 127, %v6906_v23  ;;  %v3144_v27 = vor.u32 128, %v6882_v50  ;;  %v3145_v21 = vor.u32 128, %v6888_v37 }
 0xe81   : > { %3118 = vadd.xlane.f32.xlu0 %v3117_v20 }
 0xe82   : > { %v3059_v44 = vxor.u32 2147483648, %v3051_v59  ;;  %vm3069_vm3 = vcmp.le.s32.totalorder %v5172_v31, %v3058_v16  ;;  %vm3070_vm4 = vcmp.le.s32.totalorder %v5174_v32, %v3058_v16  ;;  %v3016_v40 = vpop.xlane.xlu1 %3015 }
 0xe83   : > { %v4713_v15 = vsel %vm3069_vm3, 1.0, %v5010_v14  ;;  %v4714_v3 = vsel %vm3070_vm4, 1.0, %v5010_v14  ;;  %vm3028_vm5 = vcmp.ge.f32.partialorder %v3016_v40, 128.0 }
 0xe84   : > { %v3019_v54 = vpop.xlane.xlu0 %3018  ;;  %v3120_v41 = vadd.f32 %v4714_v3, %v4713_v15  ;;  %vm3071_vm6 = vcmp.le.s32.totalorder %v5187_v45, %v3059_v44  ;;  %vm3072_vm7 = vcmp.le.s32.totalorder %v5190_v48, %v3059_v44  ;;  %v6918_v39 = vsel %vm3028_vm5, %v6846_v7, %v3036_v36 }
 0xe85   : > { %vm3029_vm8 = vcmp.ge.f32.partialorder %v3019_v54, 128.0  ;;  %v4715_v19 = vsel %vm3071_vm6, 1.0, %v5010_v14  ;;  %v4716_v55 = vsel %vm3072_vm7, 1.0, %v5010_v14  ;;  %v3052_v26 = vor.u32 127, %v6918_v39 }
 0xe86   : > { %v6924_v25 = vsel %vm3029_vm8, %v6852_v34, %v3037_v61  ;;  %3121 = vadd.xlane.f32.xlu1 %v3120_v41  ;;  %v3123_v38 = vadd.f32 %v4716_v55, %v4715_v19  ;;  %v3022_v47 = vpop.xlane.xlu1 %3021 }
 0xe87   : > { %v3053_v10 = vor.u32 127, %v6924_v25  ;;  %v3060_v46 = vxor.u32 2147483648, %v3052_v26  ;;  %vm3030_vm9 = vcmp.ge.f32.partialorder %v3022_v47, 128.0 }
 0xe88   : > { %3124 = vadd.xlane.f32.xlu0 %v3123_v38  ;;  %v6929_v42 = vsel %vm3030_vm9, %v6857_v57, %v3038_v0 }
 0xe89   : > { %v3061_v7 = vxor.u32 2147483648, %v3053_v10  ;;  %v3054_v33 = vor.u32 127, %v6929_v42  ;;  %vm3073_vm10 = vcmp.le.s32.totalorder %v5195_v51, %v3060_v46  ;;  %vm3074_vm11 = vcmp.le.s32.totalorder %v5197_v52, %v3060_v46 }
 0xe8a   : > { %v4717_v34 = vsel %vm3073_vm10, 1.0, %v5010_v14  ;;  %v4718_v11 = vsel %vm3074_vm11, 1.0, %v5010_v14 }
 0xe8b   : > { %vm3075_vm12 = vcmp.le.s32.totalorder %v5207_v60, %v3061_v7  ;;  %vm3076_vm13 = vcmp.le.s32.totalorder %v5210_v62, %v3061_v7  ;;  %v3062_v6 = vxor.u32 2147483648, %v3054_v33  ;;  %v3126_v56 = vadd.f32 %v4718_v11, %v4717_v34 }
 0xe8c   : > { %v4719_v53 = vsel %vm3075_vm12, 1.0, %v5010_v14  ;;  %v4720_v57 = vsel %vm3076_vm13, 1.0, %v5010_v14 }
 0xe8d   : > { %v3129_v43 = vadd.f32 %v4720_v57, %v4719_v53  ;;  %3127 = vadd.xlane.f32.xlu1 %v3126_v56  ;;  %vm3077_vm14 = vcmp.le.s32.totalorder %v5216_v4, %v3062_v6  ;;  %vm3078_vm15 = vcmp.le.s32.totalorder %v5218_v5, %v3062_v6  ;;  %v3149_v6 = vor.u32 128, %v6924_v25 }
 0xe8e   : > { %v4721_v18 = vsel %vm3077_vm14, 1.0, %v5010_v14  ;;  %v4722_v22 = vsel %vm3078_vm15, 1.0, %v5010_v14 }
 0xe8f   : > { %3130 = vadd.xlane.f32.xlu0 %v3129_v43  ;;  %v3132_v24 = vadd.f32 %v4722_v22, %v4721_v18 }
 0xe91   : > { %3133 = vadd.xlane.f32.xlu1 %v3132_v24 }
 0xf07   : > { %v3113_v13 = vpop.xlane.xlu0 %3112 }
 0xf08   : > { %vm3135_vm0 = vcmp.ge.f32.partialorder %v3113_v13, 128.0 }
 0xf09   : > { %v6946_v49 = vsel %vm3135_vm0, %v6874_v35, %v3143_v63 }
 0xf0a   : > { %v3159_v2 = vor.u32 63, %v6946_v49 }
 0xf0c   : > { %v3167_v28 = vxor.u32 2147483648, %v3159_v2  ;;  %v3116_v58 = vpop.xlane.xlu1 %3115 }
 0xf0d   : > { %vm3136_vm1 = vcmp.ge.f32.partialorder %v3116_v58, 128.0 }
 0xf0e   : > { %vm3175_vm2 = vcmp.le.s32.totalorder %v5144_v8, %v3167_v28  ;;  %vm3176_vm3 = vcmp.le.s32.totalorder %v5146_v9, %v3167_v28  ;;  %v6954_v20 = vsel %vm3136_vm1, %v6882_v50, %v3144_v27  ;;  %v3119_v16 = vpop.xlane.xlu0 %3118  ;;  %v3146_v50 = vor.u32 128, %v6900_v1 }
 0xf0f   : > { %v4723_v35 = vsel %vm3175_vm2, 1.0, %v5010_v14  ;;  %v4724_v59 = vsel %vm3176_vm3, 1.0, %v5010_v14  ;;  %v3160_v44 = vor.u32 63, %v6954_v20  ;;  %vm3137_vm4 = vcmp.ge.f32.partialorder %v3119_v16, 128.0 }
 0xf10   : > { %v3223_v36 = vadd.f32 %v4724_v59, %v4723_v35  ;;  %v6960_v61 = vsel %vm3137_vm4, %v6888_v37, %v3145_v21  ;;  %v3147_v37 = vor.u32 128, %v6906_v23  ;;  %v3150_v28 = vor.u32 128, %v6929_v42 }
 0xf11   : > { %v3168_v40 = vxor.u32 2147483648, %v3160_v44  ;;  %v3161_v15 = vor.u32 63, %v6960_v61 }
 0xf12   : > { %3224 = vadd.xlane.f32.xlu0 %v3223_v36 }
 0xf13   : > { %v3169_v3 = vxor.u32 2147483648, %v3161_v15  ;;  %vm3177_vm5 = vcmp.le.s32.totalorder %v5166_v29, %v3168_v40  ;;  %vm3178_vm6 = vcmp.le.s32.totalorder %v5168_v30, %v3168_v40  ;;  %v3122_v54 = vpop.xlane.xlu1 %3121 }
 0xf14   : > { %v4725_v41 = vsel %vm3177_vm5, 1.0, %v5010_v14  ;;  %v4726_v19 = vsel %vm3178_vm6, 1.0, %v5010_v14  ;;  %vm3138_vm7 = vcmp.ge.f32.partialorder %v3122_v54, 128.0 }
 0xf15   : > { %v3226_v55 = vadd.f32 %v4726_v19, %v4725_v41  ;;  %vm3179_vm8 = vcmp.le.s32.totalorder %v5151_v12, %v3169_v3  ;;  %vm3180_vm9 = vcmp.le.s32.totalorder %v5156_v17, %v3169_v3  ;;  %v6972_v26 = vsel %vm3138_vm7, %v6900_v1, %v3146_v50  ;;  %v3125_v38 = vpop.xlane.xlu0 %3124 }
 0xf16   : > { %v4727_v0 = vsel %vm3179_vm8, 1.0, %v5010_v14  ;;  %v4728_v10 = vsel %vm3180_vm9, 1.0, %v5010_v14  ;;  %v3162_v47 = vor.u32 63, %v6972_v26  ;;  %vm3139_vm10 = vcmp.ge.f32.partialorder %v3125_v38, 128.0 }
 0xf17   : > { %3227 = vadd.xlane.f32.xlu1 %v3226_v55  ;;  %v3229_v46 = vadd.f32 %v4728_v10, %v4727_v0  ;;  %v6978_v7 = vsel %vm3139_vm10, %v6906_v23, %v3147_v37  ;;  %v3148_v1 = vor.u32 128, %v6918_v39  ;;  %v3255_v41 = vor.u32 64, %v6946_v49 }
 0xf18   : > { %v3170_v33 = vxor.u32 2147483648, %v3162_v47  ;;  %v3163_v34 = vor.u32 63, %v6978_v7  ;;  %v3256_v0 = vor.u32 64, %v6954_v20  ;;  %v3257_v47 = vor.u32 64, %v6960_v61 }
 0xf19   : > { %3230 = vadd.xlane.f32.xlu0 %v3229_v46 }
 0xf1a   : > { %v3171_v11 = vxor.u32 2147483648, %v3163_v34  ;;  %vm3181_vm11 = vcmp.le.s32.totalorder %v5172_v31, %v3170_v33  ;;  %vm3182_vm12 = vcmp.le.s32.totalorder %v5174_v32, %v3170_v33  ;;  %v3128_v56 = vpop.xlane.xlu1 %3127 }
 0xf1b   : > { %v4729_v53 = vsel %vm3181_vm11, 1.0, %v5010_v14  ;;  %v4730_v57 = vsel %vm3182_vm12, 1.0, %v5010_v14  ;;  %vm3140_vm13 = vcmp.ge.f32.partialorder %v3128_v56, 128.0 }
 0xf1c   : > { %v3131_v23 = vpop.xlane.xlu0 %3130  ;;  %v3232_v43 = vadd.f32 %v4730_v57, %v4729_v53  ;;  %vm3183_vm14 = vcmp.le.s32.totalorder %v5187_v45, %v3171_v11  ;;  %vm3184_vm15 = vcmp.le.s32.totalorder %v5190_v48, %v3171_v11  ;;  %v6990_v18 = vsel %vm3140_vm13, %v6918_v39, %v3148_v1 }
 0xf1d   : > { %vm3141_vm0 = vcmp.ge.f32.partialorder %v3131_v23, 128.0  ;;  %v4731_v22 = vsel %vm3183_vm14, 1.0, %v5010_v14  ;;  %v4732_v24 = vsel %vm3184_vm15, 1.0, %v5010_v14  ;;  %v3164_v63 = vor.u32 63, %v6990_v18 }
 0xf1e   : > { %v6996_v13 = vsel %vm3141_vm0, %v6924_v25, %v3149_v6  ;;  %3233 = vadd.xlane.f32.xlu1 %v3232_v43  ;;  %v3235_v2 = vadd.f32 %v4732_v24, %v4731_v22  ;;  %v3134_v58 = vpop.xlane.xlu1 %3133 }
 0xf1f   : > { %v3165_v27 = vor.u32 63, %v6996_v13  ;;  %v3172_v21 = vxor.u32 2147483648, %v3164_v63  ;;  %vm3142_vm1 = vcmp.ge.f32.partialorder %v3134_v58, 128.0 }
 0xf20   : > { %3236 = vadd.xlane.f32.xlu0 %v3235_v2  ;;  %v7001_v16 = vsel %vm3142_vm1, %v6929_v42, %v3150_v28 }
 0xf21   : > { %v3173_v39 = vxor.u32 2147483648, %v3165_v27  ;;  %v3166_v35 = vor.u32 63, %v7001_v16  ;;  %vm3185_vm2 = vcmp.le.s32.totalorder %v5195_v51, %v3172_v21  ;;  %vm3186_vm3 = vcmp.le.s32.totalorder %v5197_v52, %v3172_v21 }
 0xf22   : > { %v4733_v25 = vsel %vm3185_vm2, 1.0, %v5010_v14  ;;  %v4734_v59 = vsel %vm3186_vm3, 1.0, %v5010_v14 }
 0xf23   : > { %vm3187_vm4 = vcmp.le.s32.totalorder %v5207_v60, %v3173_v39  ;;  %vm3188_vm5 = vcmp.le.s32.totalorder %v5210_v62, %v3173_v39  ;;  %v3174_v44 = vxor.u32 2147483648, %v3166_v35  ;;  %v3238_v36 = vadd.f32 %v4734_v59, %v4733_v25 }
 0xf24   : > { %v4735_v40 = vsel %vm3187_vm4, 1.0, %v5010_v14  ;;  %v4736_v42 = vsel %vm3188_vm5, 1.0, %v5010_v14 }
 0xf25   : > { %v3241_v15 = vadd.f32 %v4736_v42, %v4735_v40  ;;  %3239 = vadd.xlane.f32.xlu1 %v3238_v36  ;;  %vm3189_vm6 = vcmp.le.s32.totalorder %v5216_v4, %v3174_v44  ;;  %vm3190_vm7 = vcmp.le.s32.totalorder %v5218_v5, %v3174_v44  ;;  %v3261_v44 = vor.u32 64, %v6996_v13 }
 0xf26   : > { %v4737_v3 = vsel %vm3189_vm6, 1.0, %v5010_v14  ;;  %v4738_v50 = vsel %vm3190_vm7, 1.0, %v5010_v14 }
 0xf27   : > { %3242 = vadd.xlane.f32.xlu0 %v3241_v15  ;;  %v3244_v54 = vadd.f32 %v4738_v50, %v4737_v3 }
 0xf29   : > { %3245 = vadd.xlane.f32.xlu1 %v3244_v54 }
 0xf9f   : > { %v3225_v19 = vpop.xlane.xlu0 %3224 }
 0xfa0   : > { %vm3247_vm8 = vcmp.ge.f32.partialorder %v3225_v19, 128.0 }
 0xfa1   : > { %v7018_v55 = vsel %vm3247_vm8, %v6946_v49, %v3255_v41 }
 0xfa2   : > { %v3271_v37 = vor.u32 31, %v7018_v55 }
 0xfa4   : > { %v3279_v38 = vxor.u32 2147483648, %v3271_v37  ;;  %v3228_v10 = vpop.xlane.xlu1 %3227 }
 0xfa5   : > { %vm3248_vm9 = vcmp.ge.f32.partialorder %v3228_v10, 128.0 }
 0xfa6   : > { %vm3287_vm10 = vcmp.le.s32.totalorder %v5144_v8, %v3279_v38  ;;  %vm3288_vm11 = vcmp.le.s32.totalorder %v5146_v9, %v3279_v38  ;;  %v7026_v46 = vsel %vm3248_vm9, %v6954_v20, %v3256_v0  ;;  %v3231_v33 = vpop.xlane.xlu0 %3230  ;;  %v3258_v20 = vor.u32 64, %v6972_v26 }
 0xfa7   : > { %v4739_v49 = vsel %vm3287_vm10, 1.0, %v5010_v14  ;;  %v4740_v34 = vsel %vm3288_vm11, 1.0, %v5010_v14  ;;  %v3272_v11 = vor.u32 31, %v7026_v46  ;;  %vm3249_vm12 = vcmp.ge.f32.partialorder %v3231_v33, 128.0 }
 0xfa8   : > { %v3335_v1 = vadd.f32 %v4740_v34, %v4739_v49  ;;  %v7032_v6 = vsel %vm3249_vm12, %v6960_v61, %v3257_v47  ;;  %v3259_v61 = vor.u32 64, %v6978_v7  ;;  %v3262_v38 = vor.u32 64, %v7001_v16 }
 0xfa9   : > { %v3280_v56 = vxor.u32 2147483648, %v3272_v11  ;;  %v3273_v53 = vor.u32 31, %v7032_v6 }
 0xfaa   : > { %3336 = vadd.xlane.f32.xlu0 %v3335_v1 }
 0xfab   : > { %v3281_v57 = vxor.u32 2147483648, %v3273_v53  ;;  %vm3289_vm13 = vcmp.le.s32.totalorder %v5166_v29, %v3280_v56  ;;  %vm3290_vm14 = vcmp.le.s32.totalorder %v5168_v30, %v3280_v56  ;;  %v3234_v23 = vpop.xlane.xlu1 %3233 }
 0xfac   : > { %v4741_v43 = vsel %vm3289_vm13, 1.0, %v5010_v14  ;;  %v4742_v22 = vsel %vm3290_vm14, 1.0, %v5010_v14  ;;  %vm3250_vm15 = vcmp.ge.f32.partialorder %v3234_v23, 128.0 }
 0xfad   : > { %v3338_v24 = vadd.f32 %v4742_v22, %v4741_v43  ;;  %vm3291_vm0 = vcmp.le.s32.totalorder %v5151_v12, %v3281_v57  ;;  %vm3292_vm1 = vcmp.le.s32.totalorder %v5156_v17, %v3281_v57  ;;  %v7044_v63 = vsel %vm3250_vm15, %v6972_v26, %v3258_v20  ;;  %v3237_v2 = vpop.xlane.xlu0 %3236 }
 0xfae   : > { %v4743_v28 = vsel %vm3291_vm0, 1.0, %v5010_v14  ;;  %v4744_v27 = vsel %vm3292_vm1, 1.0, %v5010_v14  ;;  %v3274_v58 = vor.u32 31, %v7044_v63  ;;  %vm3251_vm2 = vcmp.ge.f32.partialorder %v3237_v2, 128.0 }
 0xfaf   : > { %3339 = vadd.xlane.f32.xlu1 %v3338_v24  ;;  %v3341_v21 = vadd.f32 %v4744_v27, %v4743_v28  ;;  %v7050_v39 = vsel %vm3251_vm2, %v6978_v7, %v3259_v61  ;;  %v3260_v26 = vor.u32 64, %v6990_v18  ;;  %v3367_v43 = vor.u32 32, %v7018_v55 }
 0xfb0   : > { %v3282_v35 = vxor.u32 2147483648, %v3274_v58  ;;  %v3275_v25 = vor.u32 31, %v7050_v39  ;;  %v3368_v28 = vor.u32 32, %v7026_v46  ;;  %v3369_v58 = vor.u32 32, %v7032_v6 }
 0xfb1   : > { %3342 = vadd.xlane.f32.xlu0 %v3341_v21 }
 0xfb2   : > { %v3283_v59 = vxor.u32 2147483648, %v3275_v25  ;;  %vm3293_vm3 = vcmp.le.s32.totalorder %v5172_v31, %v3282_v35  ;;  %vm3294_vm4 = vcmp.le.s32.totalorder %v5174_v32, %v3282_v35  ;;  %v3240_v36 = vpop.xlane.xlu1 %3239 }
 0xfb3   : > { %v4745_v40 = vsel %vm3293_vm3, 1.0, %v5010_v14  ;;  %v4746_v42 = vsel %vm3294_vm4, 1.0, %v5010_v14  ;;  %vm3252_vm5 = vcmp.ge.f32.partialorder %v3240_v36, 128.0 }
 0xfb4   : > { %v3243_v7 = vpop.xlane.xlu0 %3242  ;;  %v3344_v15 = vadd.f32 %v4746_v42, %v4745_v40  ;;  %vm3295_vm6 = vcmp.le.s32.totalorder %v5187_v45, %v3283_v59  ;;  %vm3296_vm7 = vcmp.le.s32.totalorder %v5190_v48, %v3283_v59  ;;  %v7062_v3 = vsel %vm3252_vm5, %v6990_v18, %v3260_v26 }
 0xfb5   : > { %vm3253_vm8 = vcmp.ge.f32.partialorder %v3243_v7, 128.0  ;;  %v4747_v50 = vsel %vm3295_vm6, 1.0, %v5010_v14  ;;  %v4748_v54 = vsel %vm3296_vm7, 1.0, %v5010_v14  ;;  %v3276_v41 = vor.u32 31, %v7062_v3 }
 0xfb6   : > { %v7068_v19 = vsel %vm3253_vm8, %v6996_v13, %v3261_v44  ;;  %3345 = vadd.xlane.f32.xlu1 %v3344_v15  ;;  %v3347_v37 = vadd.f32 %v4748_v54, %v4747_v50  ;;  %v3246_v10 = vpop.xlane.xlu1 %3245 }
 0xfb7   : > { %v3277_v0 = vor.u32 31, %v7068_v19  ;;  %v3284_v47 = vxor.u32 2147483648, %v3276_v41  ;;  %vm3254_vm9 = vcmp.ge.f32.partialorder %v3246_v10, 128.0 }
 0xfb8   : > { %3348 = vadd.xlane.f32.xlu0 %v3347_v37  ;;  %v7073_v33 = vsel %vm3254_vm9, %v7001_v16, %v3262_v38 }
 0xfb9   : > { %v3285_v18 = vxor.u32 2147483648, %v3277_v0  ;;  %v3278_v49 = vor.u32 31, %v7073_v33  ;;  %vm3297_vm10 = vcmp.le.s32.totalorder %v5195_v51, %v3284_v47  ;;  %vm3298_vm11 = vcmp.le.s32.totalorder %v5197_v52, %v3284_v47 }
 0xfba   : > { %v4749_v13 = vsel %vm3297_vm10, 1.0, %v5010_v14  ;;  %v4750_v34 = vsel %vm3298_vm11, 1.0, %v5010_v14 }
 0xfbb   : > { %vm3299_vm12 = vcmp.le.s32.totalorder %v5207_v60, %v3285_v18  ;;  %vm3300_vm13 = vcmp.le.s32.totalorder %v5210_v62, %v3285_v18  ;;  %v3286_v11 = vxor.u32 2147483648, %v3278_v49  ;;  %v3350_v1 = vadd.f32 %v4750_v34, %v4749_v13 }
 0xfbc   : > { %v4751_v56 = vsel %vm3299_vm12, 1.0, %v5010_v14  ;;  %v4752_v16 = vsel %vm3300_vm13, 1.0, %v5010_v14 }
 0xfbd   : > { %v3353_v53 = vadd.f32 %v4752_v16, %v4751_v56  ;;  %3351 = vadd.xlane.f32.xlu1 %v3350_v1  ;;  %vm3301_vm14 = vcmp.le.s32.totalorder %v5216_v4, %v3286_v11  ;;  %vm3302_vm15 = vcmp.le.s32.totalorder %v5218_v5, %v3286_v11  ;;  %v3373_v11 = vor.u32 32, %v7068_v19 }
 0xfbe   : > { %v4753_v57 = vsel %vm3301_vm14, 1.0, %v5010_v14  ;;  %v4754_v20 = vsel %vm3302_vm15, 1.0, %v5010_v14 }
 0xfbf   : > { %3354 = vadd.xlane.f32.xlu0 %v3353_v53  ;;  %v3356_v23 = vadd.f32 %v4754_v20, %v4753_v57 }
 0xfc1   : > { %3357 = vadd.xlane.f32.xlu1 %v3356_v23 }
0x1037   : > { %v3337_v22 = vpop.xlane.xlu0 %3336 }
0x1038   : > { %vm3359_vm0 = vcmp.ge.f32.partialorder %v3337_v22, 128.0 }
0x1039   : > { %v7090_v24 = vsel %vm3359_vm0, %v7018_v55, %v3367_v43 }
0x103a   : > { %v3383_v61 = vor.u32 15, %v7090_v24 }
0x103c   : > { %v3391_v2 = vxor.u32 2147483648, %v3383_v61  ;;  %v3340_v27 = vpop.xlane.xlu1 %3339 }
0x103d   : > { %vm3360_vm1 = vcmp.ge.f32.partialorder %v3340_v27, 128.0 }
0x103e   : > { %vm3399_vm2 = vcmp.le.s32.totalorder %v5144_v8, %v3391_v2  ;;  %vm3400_vm3 = vcmp.le.s32.totalorder %v5146_v9, %v3391_v2  ;;  %v7098_v21 = vsel %vm3360_vm1, %v7026_v46, %v3368_v28  ;;  %v3343_v35 = vpop.xlane.xlu0 %3342  ;;  %v3370_v46 = vor.u32 32, %v7044_v63 }
0x103f   : > { %v4755_v55 = vsel %vm3399_vm2, 1.0, %v5010_v14  ;;  %v4756_v25 = vsel %vm3400_vm3, 1.0, %v5010_v14  ;;  %v3384_v59 = vor.u32 15, %v7098_v21  ;;  %vm3361_vm4 = vcmp.ge.f32.partialorder %v3343_v35, 128.0 }
0x1040   : > { %v3447_v26 = vadd.f32 %v4756_v25, %v4755_v55  ;;  %v7104_v44 = vsel %vm3361_vm4, %v7032_v6, %v3369_v58  ;;  %v3371_v6 = vor.u32 32, %v7050_v39  ;;  %v3374_v2 = vor.u32 32, %v7073_v33 }
0x1041   : > { %v3392_v36 = vxor.u32 2147483648, %v3384_v59  ;;  %v3385_v40 = vor.u32 15, %v7104_v44 }
0x1042   : > { %3448 = vadd.xlane.f32.xlu0 %v3447_v26 }
0x1043   : > { %v3393_v42 = vxor.u32 2147483648, %v3385_v40  ;;  %vm3401_vm5 = vcmp.le.s32.totalorder %v5166_v29, %v3392_v36  ;;  %vm3402_vm6 = vcmp.le.s32.totalorder %v5168_v30, %v3392_v36  ;;  %v3346_v7 = vpop.xlane.xlu1 %3345 }
0x1044   : > { %v4757_v15 = vsel %vm3401_vm5, 1.0, %v5010_v14  ;;  %v4758_v50 = vsel %vm3402_vm6, 1.0, %v5010_v14  ;;  %vm3362_vm7 = vcmp.ge.f32.partialorder %v3346_v7, 128.0 }
0x1045   : > { %v3450_v54 = vadd.f32 %v4758_v50, %v4757_v15  ;;  %vm3403_vm8 = vcmp.le.s32.totalorder %v5151_v12, %v3393_v42  ;;  %vm3404_vm9 = vcmp.le.s32.totalorder %v5156_v17, %v3393_v42  ;;  %v7116_v41 = vsel %vm3362_vm7, %v7044_v63, %v3370_v46  ;;  %v3349_v37 = vpop.xlane.xlu0 %3348 }
0x1046   : > { %v4759_v38 = vsel %vm3403_vm8, 1.0, %v5010_v14  ;;  %v4760_v0 = vsel %vm3404_vm9, 1.0, %v5010_v14  ;;  %v3386_v10 = vor.u32 15, %v7116_v41  ;;  %vm3363_vm10 = vcmp.ge.f32.partialorder %v3349_v37, 128.0 }
0x1047   : > { %3451 = vadd.xlane.f32.xlu1 %v3450_v54  ;;  %v3453_v47 = vadd.f32 %v4760_v0, %v4759_v38  ;;  %v7122_v18 = vsel %vm3363_vm10, %v7050_v39, %v3371_v6  ;;  %v3372_v63 = vor.u32 32, %v7062_v3  ;;  %v3479_v15 = vor.u32 16, %v7090_v24 }
0x1048   : > { %v3394_v49 = vxor.u32 2147483648, %v3386_v10  ;;  %v3387_v13 = vor.u32 15, %v7122_v18  ;;  %v3480_v38 = vor.u32 16, %v7098_v21  ;;  %v3481_v10 = vor.u32 16, %v7104_v44 }
0x1049   : > { %3454 = vadd.xlane.f32.xlu0 %v3453_v47 }
0x104a   : > { %v3395_v34 = vxor.u32 2147483648, %v3387_v13  ;;  %vm3405_vm11 = vcmp.le.s32.totalorder %v5172_v31, %v3394_v49  ;;  %vm3406_vm12 = vcmp.le.s32.totalorder %v5174_v32, %v3394_v49  ;;  %v3352_v1 = vpop.xlane.xlu1 %3351 }
0x104b   : > { %v4761_v56 = vsel %vm3405_vm11, 1.0, %v5010_v14  ;;  %v4762_v16 = vsel %vm3406_vm12, 1.0, %v5010_v14  ;;  %vm3364_vm13 = vcmp.ge.f32.partialorder %v3352_v1, 128.0 }
0x104c   : > { %v3355_v39 = vpop.xlane.xlu0 %3354  ;;  %v3456_v53 = vadd.f32 %v4762_v16, %v4761_v56  ;;  %vm3407_vm14 = vcmp.le.s32.totalorder %v5187_v45, %v3395_v34  ;;  %vm3408_vm15 = vcmp.le.s32.totalorder %v5190_v48, %v3395_v34  ;;  %v7134_v57 = vsel %vm3364_vm13, %v7062_v3, %v3372_v63 }
0x104d   : > { %vm3365_vm0 = vcmp.ge.f32.partialorder %v3355_v39, 128.0  ;;  %v4763_v20 = vsel %vm3407_vm14, 1.0, %v5010_v14  ;;  %v4764_v23 = vsel %vm3408_vm15, 1.0, %v5010_v14  ;;  %v3388_v43 = vor.u32 15, %v7134_v57 }
0x104e   : > { %v7140_v22 = vsel %vm3365_vm0, %v7068_v19, %v3373_v11  ;;  %3457 = vadd.xlane.f32.xlu1 %v3456_v53  ;;  %v3459_v61 = vadd.f32 %v4764_v23, %v4763_v20  ;;  %v3358_v27 = vpop.xlane.xlu1 %3357 }
0x104f   : > { %v3389_v28 = vor.u32 15, %v7140_v22  ;;  %v3396_v58 = vxor.u32 2147483648, %v3388_v43  ;;  %vm3366_vm1 = vcmp.ge.f32.partialorder %v3358_v27, 128.0 }
0x1050   : > { %3460 = vadd.xlane.f32.xlu0 %v3459_v61  ;;  %v7145_v35 = vsel %vm3366_vm1, %v7073_v33, %v3374_v2 }
0x1051   : > { %v3397_v3 = vxor.u32 2147483648, %v3389_v28  ;;  %v3390_v55 = vor.u32 15, %v7145_v35  ;;  %vm3409_vm2 = vcmp.le.s32.totalorder %v5195_v51, %v3396_v58  ;;  %vm3410_vm3 = vcmp.le.s32.totalorder %v5197_v52, %v3396_v58 }
0x1052   : > { %v4765_v19 = vsel %vm3409_vm2, 1.0, %v5010_v14  ;;  %v4766_v25 = vsel %vm3410_vm3, 1.0, %v5010_v14 }
0x1053   : > { %vm3411_vm4 = vcmp.le.s32.totalorder %v5207_v60, %v3397_v3  ;;  %vm3412_vm5 = vcmp.le.s32.totalorder %v5210_v62, %v3397_v3  ;;  %v3398_v59 = vxor.u32 2147483648, %v3390_v55  ;;  %v3462_v26 = vadd.f32 %v4766_v25, %v4765_v19 }
0x1054   : > { %v4767_v36 = vsel %vm3411_vm4, 1.0, %v5010_v14  ;;  %v4768_v33 = vsel %vm3412_vm5, 1.0, %v5010_v14 }
0x1055   : > { %v3465_v40 = vadd.f32 %v4768_v33, %v4767_v36  ;;  %3463 = vadd.xlane.f32.xlu1 %v3462_v26  ;;  %vm3413_vm6 = vcmp.le.s32.totalorder %v5216_v4, %v3398_v59  ;;  %vm3414_vm7 = vcmp.le.s32.totalorder %v5218_v5, %v3398_v59  ;;  %v3485_v59 = vor.u32 16, %v7140_v22 }
0x1056   : > { %v4769_v42 = vsel %vm3413_vm6, 1.0, %v5010_v14  ;;  %v4770_v46 = vsel %vm3414_vm7, 1.0, %v5010_v14 }
0x1057   : > { %3466 = vadd.xlane.f32.xlu0 %v3465_v40  ;;  %v3468_v7 = vadd.f32 %v4770_v46, %v4769_v42 }
0x1059   : > { %3469 = vadd.xlane.f32.xlu1 %v3468_v7 }
0x10cf   : > { %v3449_v50 = vpop.xlane.xlu0 %3448 }
0x10d0   : > { %vm3471_vm8 = vcmp.ge.f32.partialorder %v3449_v50, 128.0 }
0x10d1   : > { %v7162_v54 = vsel %vm3471_vm8, %v7090_v24, %v3479_v15 }
0x10d2   : > { %v3495_v6 = vor.u32 7, %v7162_v54 }
0x10d4   : > { %v3503_v37 = vxor.u32 2147483648, %v3495_v6  ;;  %v3452_v0 = vpop.xlane.xlu1 %3451 }
0x10d5   : > { %vm3472_vm9 = vcmp.ge.f32.partialorder %v3452_v0, 128.0 }
0x10d6   : > { %vm3511_vm10 = vcmp.le.s32.totalorder %v5144_v8, %v3503_v37  ;;  %vm3512_vm11 = vcmp.le.s32.totalorder %v5146_v9, %v3503_v37  ;;  %v7170_v47 = vsel %vm3472_vm9, %v7098_v21, %v3480_v38  ;;  %v3455_v49 = vpop.xlane.xlu0 %3454  ;;  %v3482_v21 = vor.u32 16, %v7116_v41 }
0x10d7   : > { %v4771_v24 = vsel %vm3511_vm10, 1.0, %v5010_v14  ;;  %v4772_v13 = vsel %vm3512_vm11, 1.0, %v5010_v14  ;;  %v3496_v34 = vor.u32 7, %v7170_v47  ;;  %vm3473_vm12 = vcmp.ge.f32.partialorder %v3455_v49, 128.0 }
0x10d8   : > { %v3559_v63 = vadd.f32 %v4772_v13, %v4771_v24  ;;  %v7176_v11 = vsel %vm3473_vm12, %v7104_v44, %v3481_v10  ;;  %v3483_v44 = vor.u32 16, %v7122_v18  ;;  %v3486_v37 = vor.u32 16, %v7145_v35 }
0x10d9   : > { %v3504_v1 = vxor.u32 2147483648, %v3496_v34  ;;  %v3497_v56 = vor.u32 7, %v7176_v11 }
0x10da   : > { %3560 = vadd.xlane.f32.xlu0 %v3559_v63 }
0x10db   : > { %v3505_v16 = vxor.u32 2147483648, %v3497_v56  ;;  %vm3513_vm13 = vcmp.le.s32.totalorder %v5166_v29, %v3504_v1  ;;  %vm3514_vm14 = vcmp.le.s32.totalorder %v5168_v30, %v3504_v1  ;;  %v3458_v39 = vpop.xlane.xlu1 %3457 }
0x10dc   : > { %v4773_v53 = vsel %vm3513_vm13, 1.0, %v5010_v14  ;;  %v4774_v20 = vsel %vm3514_vm14, 1.0, %v5010_v14  ;;  %vm3474_vm15 = vcmp.ge.f32.partialorder %v3458_v39, 128.0 }
0x10dd   : > { %v3562_v23 = vadd.f32 %v4774_v20, %v4773_v53  ;;  %vm3515_vm0 = vcmp.le.s32.totalorder %v5151_v12, %v3505_v16  ;;  %vm3516_vm1 = vcmp.le.s32.totalorder %v5156_v17, %v3505_v16  ;;  %v7188_v43 = vsel %vm3474_vm15, %v7116_v41, %v3482_v21  ;;  %v3461_v61 = vpop.xlane.xlu0 %3460 }
0x10de   : > { %v4775_v2 = vsel %vm3515_vm0, 1.0, %v5010_v14  ;;  %v4776_v28 = vsel %vm3516_vm1, 1.0, %v5010_v14  ;;  %v3498_v27 = vor.u32 7, %v7188_v43  ;;  %vm3475_vm2 = vcmp.ge.f32.partialorder %v3461_v61, 128.0 }
0x10df   : > { %3563 = vadd.xlane.f32.xlu1 %v3562_v23  ;;  %v3565_v58 = vadd.f32 %v4776_v28, %v4775_v2  ;;  %v7194_v3 = vsel %vm3475_vm2, %v7122_v18, %v3483_v44  ;;  %v3484_v41 = vor.u32 16, %v7134_v57  ;;  %v3591_v53 = vor.u32 8, %v7162_v54 }
0x10e0   : > { %v3506_v55 = vxor.u32 2147483648, %v3498_v27  ;;  %v3499_v19 = vor.u32 7, %v7194_v3  ;;  %v3592_v2 = vor.u32 8, %v7170_v47  ;;  %v3593_v27 = vor.u32 8, %v7176_v11 }
0x10e1   : > { %3566 = vadd.xlane.f32.xlu0 %v3565_v58 }
0x10e2   : > { %v3507_v25 = vxor.u32 2147483648, %v3499_v19  ;;  %vm3517_vm3 = vcmp.le.s32.totalorder %v5172_v31, %v3506_v55  ;;  %vm3518_vm4 = vcmp.le.s32.totalorder %v5174_v32, %v3506_v55  ;;  %v3464_v26 = vpop.xlane.xlu1 %3463 }
0x10e3   : > { %v4777_v36 = vsel %vm3517_vm3, 1.0, %v5010_v14  ;;  %v4778_v33 = vsel %vm3518_vm4, 1.0, %v5010_v14  ;;  %vm3476_vm5 = vcmp.ge.f32.partialorder %v3464_v26, 128.0 }
0x10e4   : > { %v3467_v18 = vpop.xlane.xlu0 %3466  ;;  %v3568_v40 = vadd.f32 %v4778_v33, %v4777_v36  ;;  %vm3519_vm6 = vcmp.le.s32.totalorder %v5187_v45, %v3507_v25  ;;  %vm3520_vm7 = vcmp.le.s32.totalorder %v5190_v48, %v3507_v25  ;;  %v7206_v42 = vsel %vm3476_vm5, %v7134_v57, %v3484_v41 }
0x10e5   : > { %vm3477_vm8 = vcmp.ge.f32.partialorder %v3467_v18, 128.0  ;;  %v4779_v46 = vsel %vm3519_vm6, 1.0, %v5010_v14  ;;  %v4780_v7 = vsel %vm3520_vm7, 1.0, %v5010_v14  ;;  %v3500_v15 = vor.u32 7, %v7206_v42 }
0x10e6   : > { %v7212_v50 = vsel %vm3477_vm8, %v7140_v22, %v3485_v59  ;;  %3569 = vadd.xlane.f32.xlu1 %v3568_v40  ;;  %v3571_v6 = vadd.f32 %v4780_v7, %v4779_v46  ;;  %v3470_v0 = vpop.xlane.xlu1 %3469 }
0x10e7   : > { %v3501_v38 = vor.u32 7, %v7212_v50  ;;  %v3508_v10 = vxor.u32 2147483648, %v3500_v15  ;;  %vm3478_vm9 = vcmp.ge.f32.partialorder %v3470_v0, 128.0 }
0x10e8   : > { %3572 = vadd.xlane.f32.xlu0 %v3571_v6  ;;  %v7217_v49 = vsel %vm3478_vm9, %v7145_v35, %v3486_v37 }
0x10e9   : > { %v3509_v57 = vxor.u32 2147483648, %v3501_v38  ;;  %v3502_v24 = vor.u32 7, %v7217_v49  ;;  %vm3521_vm10 = vcmp.le.s32.totalorder %v5195_v51, %v3508_v10  ;;  %vm3522_vm11 = vcmp.le.s32.totalorder %v5197_v52, %v3508_v10 }
0x10ea   : > { %v4781_v22 = vsel %vm3521_vm10, 1.0, %v5010_v14  ;;  %v4782_v13 = vsel %vm3522_vm11, 1.0, %v5010_v14 }
0x10eb   : > { %vm3523_vm12 = vcmp.le.s32.totalorder %v5207_v60, %v3509_v57  ;;  %vm3524_vm13 = vcmp.le.s32.totalorder %v5210_v62, %v3509_v57  ;;  %v3510_v34 = vxor.u32 2147483648, %v3502_v24  ;;  %v3574_v63 = vadd.f32 %v4782_v13, %v4781_v22 }
0x10ec   : > { %v4783_v1 = vsel %vm3523_vm12, 1.0, %v5010_v14  ;;  %v4784_v35 = vsel %vm3524_vm13, 1.0, %v5010_v14 }
0x10ed   : > { %v3577_v56 = vadd.f32 %v4784_v35, %v4783_v1  ;;  %3575 = vadd.xlane.f32.xlu1 %v3574_v63  ;;  %vm3525_vm14 = vcmp.le.s32.totalorder %v5216_v4, %v3510_v34  ;;  %vm3526_vm15 = vcmp.le.s32.totalorder %v5218_v5, %v3510_v34  ;;  %v3597_v34 = vor.u32 8, %v7212_v50 }
0x10ee   : > { %v4785_v16 = vsel %vm3525_vm14, 1.0, %v5010_v14  ;;  %v4786_v21 = vsel %vm3526_vm15, 1.0, %v5010_v14 }
0x10ef   : > { %3578 = vadd.xlane.f32.xlu0 %v3577_v56  ;;  %v3580_v39 = vadd.f32 %v4786_v21, %v4785_v16 }
0x10f1   : > { %3581 = vadd.xlane.f32.xlu1 %v3580_v39 }
0x1167   : > { %v3561_v20 = vpop.xlane.xlu0 %3560 }
0x1168   : > { %vm3583_vm0 = vcmp.ge.f32.partialorder %v3561_v20, 128.0 }
0x1169   : > { %v7234_v23 = vsel %vm3583_vm0, %v7162_v54, %v3591_v53 }
0x116a   : > { %v3607_v44 = vor.u32 3, %v7234_v23 }
0x116c   : > { %v3615_v61 = vxor.u32 2147483648, %v3607_v44  ;;  %v3564_v28 = vpop.xlane.xlu1 %3563 }
0x116d   : > { %vm3584_vm1 = vcmp.ge.f32.partialorder %v3564_v28, 128.0 }
0x116e   : > { %vm3623_vm2 = vcmp.le.s32.totalorder %v5144_v8, %v3615_v61  ;;  %vm3624_vm3 = vcmp.le.s32.totalorder %v5146_v9, %v3615_v61  ;;  %v7242_v58 = vsel %vm3584_vm1, %v7170_v47, %v3592_v2  ;;  %v3567_v55 = vpop.xlane.xlu0 %3566  ;;  %v3594_v47 = vor.u32 8, %v7188_v43 }
0x116f   : > { %v4787_v54 = vsel %vm3623_vm2, 1.0, %v5010_v14  ;;  %v4788_v19 = vsel %vm3624_vm3, 1.0, %v5010_v14  ;;  %v3608_v25 = vor.u32 3, %v7242_v58  ;;  %vm3585_vm4 = vcmp.ge.f32.partialorder %v3567_v55, 128.0 }
0x1170   : > { %v3671_v41 = vadd.f32 %v4788_v19, %v4787_v54  ;;  %v7248_v59 = vsel %vm3585_vm4, %v7176_v11, %v3593_v27  ;;  %v3595_v11 = vor.u32 8, %v7194_v3  ;;  %v3598_v61 = vor.u32 8, %v7217_v49 }
0x1171   : > { %v3616_v26 = vxor.u32 2147483648, %v3608_v25  ;;  %v3609_v36 = vor.u32 3, %v7248_v59 }
0x1172   : > { %3672 = vadd.xlane.f32.xlu0 %v3671_v41 }
0x1173   : > { %v3617_v33 = vxor.u32 2147483648, %v3609_v36  ;;  %vm3625_vm5 = vcmp.le.s32.totalorder %v5166_v29, %v3616_v26  ;;  %vm3626_vm6 = vcmp.le.s32.totalorder %v5168_v30, %v3616_v26  ;;  %v3570_v18 = vpop.xlane.xlu1 %3569 }
0x1174   : > { %v4789_v40 = vsel %vm3625_vm5, 1.0, %v5010_v14  ;;  %v4790_v46 = vsel %vm3626_vm6, 1.0, %v5010_v14  ;;  %vm3586_vm7 = vcmp.ge.f32.partialorder %v3570_v18, 128.0 }
0x1175   : > { %v3674_v7 = vadd.f32 %v4790_v46, %v4789_v40  ;;  %vm3627_vm8 = vcmp.le.s32.totalorder %v5151_v12, %v3617_v33  ;;  %vm3628_vm9 = vcmp.le.s32.totalorder %v5156_v17, %v3617_v33  ;;  %v7260_v15 = vsel %vm3586_vm7, %v7188_v43, %v3594_v47  ;;  %v3573_v6 = vpop.xlane.xlu0 %3572 }
0x1176   : > { %v4791_v37 = vsel %vm3627_vm8, 1.0, %v5010_v14  ;;  %v4792_v38 = vsel %vm3628_vm9, 1.0, %v5010_v14  ;;  %v3610_v0 = vor.u32 3, %v7260_v15  ;;  %vm3587_vm10 = vcmp.ge.f32.partialorder %v3573_v6, 128.0 }
0x1177   : > { %3675 = vadd.xlane.f32.xlu1 %v3674_v7  ;;  %v3677_v10 = vadd.f32 %v4792_v38, %v4791_v37  ;;  %v7266_v57 = vsel %vm3587_vm10, %v7194_v3, %v3595_v11  ;;  %v3596_v43 = vor.u32 8, %v7206_v42  ;;  %v3703_v40 = vor.u32 4, %v7234_v23 }
0x1178   : > { %v3618_v24 = vxor.u32 2147483648, %v3610_v0  ;;  %v3611_v22 = vor.u32 3, %v7266_v57  ;;  %v3704_v37 = vor.u32 4, %v7242_v58  ;;  %v3705_v0 = vor.u32 4, %v7248_v59 }
0x1179   : > { %3678 = vadd.xlane.f32.xlu0 %v3677_v10 }
0x117a   : > { %v3619_v13 = vxor.u32 2147483648, %v3611_v22  ;;  %vm3629_vm11 = vcmp.le.s32.totalorder %v5172_v31, %v3618_v24  ;;  %vm3630_vm12 = vcmp.le.s32.totalorder %v5174_v32, %v3618_v24  ;;  %v3576_v63 = vpop.xlane.xlu1 %3575 }
0x117b   : > { %v4793_v1 = vsel %vm3629_vm11, 1.0, %v5010_v14  ;;  %v4794_v35 = vsel %vm3630_vm12, 1.0, %v5010_v14  ;;  %vm3588_vm13 = vcmp.ge.f32.partialorder %v3576_v63, 128.0 }
0x117c   : > { %v3579_v3 = vpop.xlane.xlu0 %3578  ;;  %v3680_v56 = vadd.f32 %v4794_v35, %v4793_v1  ;;  %vm3631_vm14 = vcmp.le.s32.totalorder %v5187_v45, %v3619_v13  ;;  %vm3632_vm15 = vcmp.le.s32.totalorder %v5190_v48, %v3619_v13  ;;  %v7278_v16 = vsel %vm3588_vm13, %v7206_v42, %v3596_v43 }
0x117d   : > { %vm3589_vm0 = vcmp.ge.f32.partialorder %v3579_v3, 128.0  ;;  %v4795_v21 = vsel %vm3631_vm14, 1.0, %v5010_v14  ;;  %v4796_v39 = vsel %vm3632_vm15, 1.0, %v5010_v14  ;;  %v3612_v53 = vor.u32 3, %v7278_v16 }
0x117e   : > { %v7284_v20 = vsel %vm3589_vm0, %v7212_v50, %v3597_v34  ;;  %3681 = vadd.xlane.f32.xlu1 %v3680_v56  ;;  %v3683_v44 = vadd.f32 %v4796_v39, %v4795_v21  ;;  %v3582_v28 = vpop.xlane.xlu1 %3581 }
0x117f   : > { %v3613_v2 = vor.u32 3, %v7284_v20  ;;  %v3620_v27 = vxor.u32 2147483648, %v3612_v53  ;;  %vm3590_vm1 = vcmp.ge.f32.partialorder %v3582_v28, 128.0 }
0x1180   : > { %3684 = vadd.xlane.f32.xlu0 %v3683_v44  ;;  %v7289_v55 = vsel %vm3590_vm1, %v7217_v49, %v3598_v61 }
0x1181   : > { %v3621_v42 = vxor.u32 2147483648, %v3613_v2  ;;  %v3614_v54 = vor.u32 3, %v7289_v55  ;;  %vm3633_vm2 = vcmp.le.s32.totalorder %v5195_v51, %v3620_v27  ;;  %vm3634_vm3 = vcmp.le.s32.totalorder %v5197_v52, %v3620_v27 }
0x1182   : > { %v4797_v50 = vsel %vm3633_vm2, 1.0, %v5010_v14  ;;  %v4798_v19 = vsel %vm3634_vm3, 1.0, %v5010_v14 }
0x1183   : > { %vm3635_vm4 = vcmp.le.s32.totalorder %v5207_v60, %v3621_v42  ;;  %vm3636_vm5 = vcmp.le.s32.totalorder %v5210_v62, %v3621_v42  ;;  %v3622_v25 = vxor.u32 2147483648, %v3614_v54  ;;  %v3686_v41 = vadd.f32 %v4798_v19, %v4797_v50 }
0x1184   : > { %v4799_v26 = vsel %vm3635_vm4, 1.0, %v5010_v14  ;;  %v4800_v49 = vsel %vm3636_vm5, 1.0, %v5010_v14 }
0x1185   : > { %v3689_v36 = vadd.f32 %v4800_v49, %v4799_v26  ;;  %3687 = vadd.xlane.f32.xlu1 %v3686_v41  ;;  %vm3637_vm6 = vcmp.le.s32.totalorder %v5216_v4, %v3622_v25  ;;  %vm3638_vm7 = vcmp.le.s32.totalorder %v5218_v5, %v3622_v25  ;;  %v3709_v25 = vor.u32 4, %v7284_v20 }
0x1186   : > { %v4801_v33 = vsel %vm3637_vm6, 1.0, %v5010_v14  ;;  %v4802_v47 = vsel %vm3638_vm7, 1.0, %v5010_v14 }
0x1187   : > { %3690 = vadd.xlane.f32.xlu0 %v3689_v36  ;;  %v3692_v18 = vadd.f32 %v4802_v47, %v4801_v33 }
0x1189   : > { %3693 = vadd.xlane.f32.xlu1 %v3692_v18 }
0x11ff   : > { %v3673_v46 = vpop.xlane.xlu0 %3672 }
0x1200   : > { %vm3695_vm8 = vcmp.ge.f32.partialorder %v3673_v46, 128.0 }
0x1201   : > { %v7306_v7 = vsel %vm3695_vm8, %v7234_v23, %v3703_v40 }
0x1202   : > { %v3719_v11 = vor.u32 1, %v7306_v7 }
0x1204   : > { %v3727_v6 = vxor.u32 2147483648, %v3719_v11  ;;  %v3676_v38 = vpop.xlane.xlu1 %3675 }
0x1205   : > { %vm3696_vm9 = vcmp.ge.f32.partialorder %v3676_v38, 128.0 }
0x1206   : > { %vm3735_vm10 = vcmp.le.s32.totalorder %v5144_v8, %v3727_v6  ;;  %vm3736_vm11 = vcmp.le.s32.totalorder %v5146_v9, %v3727_v6  ;;  %v7314_v10 = vsel %vm3696_vm9, %v7242_v58, %v3704_v37  ;;  %v3679_v24 = vpop.xlane.xlu0 %3678  ;;  %v3706_v58 = vor.u32 4, %v7260_v15 }
0x1207   : > { %v4803_v23 = vsel %vm3735_vm10, 1.0, %v5010_v14  ;;  %v4804_v22 = vsel %vm3736_vm11, 1.0, %v5010_v14  ;;  %v3720_v13 = vor.u32 1, %v7314_v10  ;;  %vm3697_vm12 = vcmp.ge.f32.partialorder %v3679_v24, 128.0 }
0x1208   : > { %v3783_v43 = vadd.f32 %v4804_v22, %v4803_v23  ;;  %v7320_v34 = vsel %vm3697_vm12, %v7248_v59, %v3705_v0  ;;  %v3707_v59 = vor.u32 4, %v7266_v57  ;;  %v3710_v6 = vor.u32 4, %v7289_v55 }
0x1209   : > { %v3728_v63 = vxor.u32 2147483648, %v3720_v13  ;;  %v3721_v1 = vor.u32 1, %v7320_v34 }
0x120a   : > { %3784 = vadd.xlane.f32.xlu0 %v3783_v43 }
0x120b   : > { %v3729_v35 = vxor.u32 2147483648, %v3721_v1  ;;  %vm3737_vm13 = vcmp.le.s32.totalorder %v5166_v29, %v3728_v63  ;;  %vm3738_vm14 = vcmp.le.s32.totalorder %v5168_v30, %v3728_v63  ;;  %v3682_v3 = vpop.xlane.xlu1 %3681 }
0x120c   : > { %v4805_v56 = vsel %vm3737_vm13, 1.0, %v5010_v14  ;;  %v4806_v21 = vsel %vm3738_vm14, 1.0, %v5010_v14  ;;  %vm3698_vm15 = vcmp.ge.f32.partialorder %v3682_v3, 128.0 }
0x120d   : > { %v3786_v39 = vadd.f32 %v4806_v21, %v4805_v56  ;;  %vm3739_vm0 = vcmp.le.s32.totalorder %v5151_v12, %v3729_v35  ;;  %vm3740_vm1 = vcmp.le.s32.totalorder %v5156_v17, %v3729_v35  ;;  %v7332_v53 = vsel %vm3698_vm15, %v7260_v15, %v3706_v58  ;;  %v3685_v44 = vpop.xlane.xlu0 %3684 }
0x120e   : > { %v4807_v61 = vsel %vm3739_vm0, 1.0, %v5010_v14  ;;  %v4808_v2 = vsel %vm3740_vm1, 1.0, %v5010_v14  ;;  %v3722_v28 = vor.u32 1, %v7332_v53  ;;  %vm3699_vm2 = vcmp.ge.f32.partialorder %v3685_v44, 128.0 }
0x120f   : > { %3787 = vadd.xlane.f32.xlu1 %v3786_v39  ;;  %v3789_v27 = vadd.f32 %v4808_v2, %v4807_v61  ;;  %v7338_v42 = vsel %vm3699_vm2, %v7266_v57, %v3707_v59  ;;  %v3708_v15 = vor.u32 4, %v7278_v16  ;;  %v3815_v56 = vor.u32 2, %v7306_v7 }
0x1210   : > { %v3730_v54 = vxor.u32 2147483648, %v3722_v28  ;;  %v3723_v50 = vor.u32 1, %v7338_v42  ;;  %v3816_v44 = vor.u32 2, %v7314_v10 }
0x1211   : > { %3790 = vadd.xlane.f32.xlu0 %v3789_v27 }
0x1212   : > { %v3731_v19 = vxor.u32 2147483648, %v3723_v50  ;;  %vm3741_vm3 = vcmp.le.s32.totalorder %v5172_v31, %v3730_v54  ;;  %vm3742_vm4 = vcmp.le.s32.totalorder %v5174_v32, %v3730_v54  ;;  %v3688_v41 = vpop.xlane.xlu1 %3687  ;;  %v3817_v54 = vor.u32 2, %v7320_v34 }
0x1213   : > { %v4809_v26 = vsel %vm3741_vm3, 1.0, %v5010_v14  ;;  %v4810_v49 = vsel %vm3742_vm4, 1.0, %v5010_v14  ;;  %vm3700_vm5 = vcmp.ge.f32.partialorder %v3688_v41, 128.0 }
0x1214   : > { %v3691_v57 = vpop.xlane.xlu0 %3690  ;;  %v3792_v36 = vadd.f32 %v4810_v49, %v4809_v26  ;;  %vm3743_vm6 = vcmp.le.s32.totalorder %v5187_v45, %v3731_v19  ;;  %vm3744_vm7 = vcmp.le.s32.totalorder %v5190_v48, %v3731_v19  ;;  %v7350_v33 = vsel %vm3700_vm5, %v7278_v16, %v3708_v15 }
0x1215   : > { %vm3701_vm8 = vcmp.ge.f32.partialorder %v3691_v57, 128.0  ;;  %v4811_v47 = vsel %vm3743_vm6, 1.0, %v5010_v14  ;;  %v4812_v18 = vsel %vm3744_vm7, 1.0, %v5010_v14  ;;  %v3724_v40 = vor.u32 1, %v7350_v33 }
0x1216   : > { %v7356_v46 = vsel %vm3701_vm8, %v7284_v20, %v3709_v25  ;;  %3793 = vadd.xlane.f32.xlu1 %v3792_v36  ;;  %v3795_v11 = vadd.f32 %v4812_v18, %v4811_v47  ;;  %v3694_v38 = vpop.xlane.xlu1 %3693  ;;  %v3818_v49 = vor.u32 2, %v7332_v53  ;;  %v3819_v18 = vor.u32 2, %v7338_v42 }
0x1217   : > { %v3725_v37 = vor.u32 1, %v7356_v46  ;;  %v3732_v0 = vxor.u32 2147483648, %v3724_v40  ;;  %vm3702_vm9 = vcmp.ge.f32.partialorder %v3694_v38, 128.0 }
0x1218   : > { %3796 = vadd.xlane.f32.xlu0 %v3795_v11  ;;  %v7361_v24 = vsel %vm3702_vm9, %v7289_v55, %v3710_v6 }
0x1219   : > { %v3733_v16 = vxor.u32 2147483648, %v3725_v37  ;;  %v3726_v23 = vor.u32 1, %v7361_v24  ;;  %vm3745_vm10 = vcmp.le.s32.totalorder %v5195_v51, %v3732_v0  ;;  %vm3746_vm11 = vcmp.le.s32.totalorder %v5197_v52, %v3732_v0 }
0x121a   : > { %v4813_v20 = vsel %vm3745_vm10, 1.0, %v5010_v14  ;;  %v4814_v22 = vsel %vm3746_vm11, 1.0, %v5010_v14 }
0x121b   : > { %vm3747_vm12 = vcmp.le.s32.totalorder %v5207_v60, %v3733_v16  ;;  %vm3748_vm13 = vcmp.le.s32.totalorder %v5210_v62, %v3733_v16  ;;  %v3734_v13 = vxor.u32 2147483648, %v3726_v23  ;;  %v3798_v43 = vadd.f32 %v4814_v22, %v4813_v20 }
0x121c   : > { %v4815_v63 = vsel %vm3747_vm12, 1.0, %v5010_v14  ;;  %v4816_v55 = vsel %vm3748_vm13, 1.0, %v5010_v14  ;;  %v3820_v23 = vor.u32 2, %v7350_v33 }
0x121d   : > { %v3801_v1 = vadd.f32 %v4816_v55, %v4815_v63  ;;  %3799 = vadd.xlane.f32.xlu1 %v3798_v43  ;;  %vm3749_vm14 = vcmp.le.s32.totalorder %v5216_v4, %v3734_v13  ;;  %vm3750_vm15 = vcmp.le.s32.totalorder %v5218_v5, %v3734_v13  ;;  %v3821_v13 = vor.u32 2, %v7356_v46 }
0x121e   : > { %v4817_v35 = vsel %vm3749_vm14, 1.0, %v5010_v14  ;;  %v4818_v58 = vsel %vm3750_vm15, 1.0, %v5010_v14 }
0x121f   : > { %3802 = vadd.xlane.f32.xlu0 %v3801_v1  ;;  %v3804_v3 = vadd.f32 %v4818_v58, %v4817_v35  ;;  %v3822_v58 = vor.u32 2, %v7361_v24 }
0x1221   : > { %3805 = vadd.xlane.f32.xlu1 %v3804_v3 }
0x1297   : > { %v3785_v21 = vpop.xlane.xlu0 %3784 }
0x1298   : > { %vm3807_vm0 = vcmp.ge.f32.partialorder %v3785_v21, 128.0 }
0x1299   : > { %v7378_v39 = vsel %vm3807_vm0, %v7306_v7, %v3815_v56 }
0x129a   : > { %v3831_v59 = vxor.u32 2147483648, %v7378_v39 }
0x129c   : > { %vm3839_vm1 = vcmp.le.s32.totalorder %v5144_v8, %v3831_v59  ;;  %vm3840_vm2 = vcmp.le.s32.totalorder %v5146_v9, %v3831_v59  ;;  %v3788_v61 = vpop.xlane.xlu1 %3787 }
0x129d   : > { %v4819_v2 = vsel %vm3839_vm1, 1.0, %v5010_v14  ;;  %v4820_v28 = vsel %vm3840_vm2, 1.0, %v5010_v14  ;;  %vm3808_vm3 = vcmp.ge.f32.partialorder %v3788_v61, 128.0 }
0x129e   : > { %v3887_v27 = vadd.f32 %v4820_v28, %v4819_v2  ;;  %v7388_v7 = vsel %vm3808_vm3, %v7314_v10, %v3816_v44  ;;  %v3791_v50 = vpop.xlane.xlu0 %3790 }
0x129f   : > { %v3832_v19 = vxor.u32 2147483648, %v7388_v7  ;;  %vm3809_vm4 = vcmp.ge.f32.partialorder %v3791_v50, 128.0  ;;  %v4925_v50 = vld [vmem:[%s5133_s14] sm:$0xff] }
0x12a0   : > { %3888 = vadd.xlane.f32.xlu0 %v3887_v27  ;;  %v7392_v15 = vsel %vm3809_vm4, %v7320_v34, %v3817_v54 }
0x12a1   : > { %v3833_v25 = vxor.u32 2147483648, %v7392_v15  ;;  %vm3841_vm5 = vcmp.le.s32.totalorder %v5166_v29, %v3832_v19  ;;  %vm3842_vm6 = vcmp.le.s32.totalorder %v5168_v30, %v3832_v19  ;;  %v4926_v19 = vld [vmem:[%s5133_s14 + $0x8] sm:$0xff] }
0x12a2   : > { %v4821_v41 = vsel %vm3841_vm5, 1.0, %v5010_v14  ;;  %v4822_v26 = vsel %vm3842_vm6, 1.0, %v5010_v14 }
0x12a3   : > { %v3890_v10 = vadd.f32 %v4822_v26, %v4821_v41  ;;  %vm3843_vm7 = vcmp.le.s32.totalorder %v5151_v12, %v3833_v25  ;;  %vm3844_vm8 = vcmp.le.s32.totalorder %v5156_v17, %v3833_v25  ;;  %v3794_v57 = vpop.xlane.xlu1 %3793  ;;  %v263_v25 = vadd.f32 %v4926_v19, %v4925_v50  ;;  %v7451_v41 = vld [vmem:[%s5133_s14 + $0x10] sm:$0xff]  ;;  %v7454_v26 = vld [vmem:[%s5133_s14 + $0x18] sm:$0xff] }
0x12a4   : > { %v4823_v34 = vsel %vm3843_vm7, 1.0, %v5010_v14  ;;  %v4824_v36 = vsel %vm3844_vm8, 1.0, %v5010_v14  ;;  %vm3810_vm9 = vcmp.ge.f32.partialorder %v3794_v57, 128.0  ;;  %v7462_v57 = vld [vmem:[%s5133_s14 + $0x28] sm:$0xff] }
0x12a5   : > { %3891 = vadd.xlane.f32.xlu1 %v3890_v10  ;;  %v3893_v47 = vadd.f32 %v4824_v36, %v4823_v34  ;;  %v7406_v40 = vsel %vm3810_vm9, %v7332_v53, %v3818_v49  ;;  %v3797_v11 = vpop.xlane.xlu0 %3796  ;;  %v266_v10 = vadd.f32 %v7454_v26, %v7451_v41  ;;  %v7459_v49 = vld [vmem:[%s5133_s14 + $0x20] sm:$0xff]  ;;  %v7467_v36 = vld [vmem:[%s5133_s14 + $0x30] sm:$0xff] }
0x12a6   : > { %v3834_v6 = vxor.u32 2147483648, %v7406_v40  ;;  %vm3811_vm10 = vcmp.ge.f32.partialorder %v3797_v11, 128.0  ;;  %v269_v34 = vadd.f32 %v7462_v57, %v7459_v49  ;;  %v7475_v11 = vld [vmem:[%s5133_s14 + $0x40] sm:$0xff] }
0x12a7   : > { %3894 = vadd.xlane.f32.xlu0 %v3893_v47  ;;  %v7410_v37 = vsel %vm3811_vm10, %v7338_v42, %v3819_v18  ;;  %v7470_v47 = vld [vmem:[%s5133_s14 + $0x38] sm:$0xff] }
0x12a8   : > { %v3835_v38 = vxor.u32 2147483648, %v7410_v37  ;;  %vm3845_vm11 = vcmp.le.s32.totalorder %v5172_v31, %v3834_v6  ;;  %vm3846_vm12 = vcmp.le.s32.totalorder %v5174_v32, %v3834_v6  ;;  %v272_v18 = vadd.f32 %v7470_v47, %v7467_v36  ;;  %v7478_v6 = vld [vmem:[%s5133_s14 + $0x48] sm:$0xff] }
0x12a9   : > { %v4825_v0 = vsel %vm3845_vm11, 1.0, %v5010_v14  ;;  %v4826_v16 = vsel %vm3846_vm12, 1.0, %v5010_v14 }
0x12aa   : > { %v3896_v53 = vadd.f32 %v4826_v16, %v4825_v0  ;;  %vm3847_vm13 = vcmp.le.s32.totalorder %v5187_v45, %v3835_v38  ;;  %vm3848_vm14 = vcmp.le.s32.totalorder %v5190_v48, %v3835_v38  ;;  %v3800_v20 = vpop.xlane.xlu1 %3799  ;;  %v275_v38 = vadd.f32 %v7478_v6, %v7475_v11  ;;  %v7483_v0 = vld [vmem:[%s5133_s14 + $0x50] sm:$0xff]  ;;  %v7486_v16 = vld [vmem:[%s5133_s14 + $0x58] sm:$0xff] }
0x12ab   : > { %v4827_v42 = vsel %vm3847_vm13, 1.0, %v5010_v14  ;;  %v4828_v22 = vsel %vm3848_vm14, 1.0, %v5010_v14  ;;  %vm3812_vm15 = vcmp.ge.f32.partialorder %v3800_v20, 128.0  ;;  %v7494_v20 = vld [vmem:[%s5133_s14 + $0x68] sm:$0xff] }
0x12ac   : > { %v3803_v43 = vpop.xlane.xlu0 %3802  ;;  %3897 = vadd.xlane.f32.xlu1 %v3896_v53  ;;  %v3899_v63 = vadd.f32 %v4828_v22, %v4827_v42  ;;  %v7424_v55 = vsel %vm3812_vm15, %v7350_v33, %v3820_v23  ;;  %v278_v53 = vadd.f32 %v7486_v16, %v7483_v0  ;;  %v7491_v23 = vld [vmem:[%s5133_s14 + $0x60] sm:$0xff]  ;;  %v7499_v22 = vld [vmem:[%s5133_s14 + $0x70] sm:$0xff] }
0x12ad   : > { %vm3813_vm0 = vcmp.ge.f32.partialorder %v3803_v43, 128.0  ;;  %v3836_v1 = vxor.u32 2147483648, %v7424_v55  ;;  %v281_v42 = vadd.f32 %v7494_v20, %v7491_v23 }
0x12ae   : > { %v7428_v35 = vsel %vm3813_vm0, %v7356_v46, %v3821_v13  ;;  %3900 = vadd.xlane.f32.xlu0 %v3899_v63  ;;  %v3806_v56 = vpop.xlane.xlu1 %3805  ;;  %v7502_v13 = vld [vmem:[%s5133_s14 + $0x78] sm:$0xff]  ;;  %v295_v63 = vmax.f32 %v4925_v50, %v4926_v19 }
0x12af   : > { %v3837_v3 = vxor.u32 2147483648, %v7428_v35  ;;  %vm3814_vm1 = vcmp.ge.f32.partialorder %v3806_v56, 128.0  ;;  %vm3849_vm2 = vcmp.le.s32.totalorder %v5195_v51, %v3836_v1  ;;  %vm3850_vm3 = vcmp.le.s32.totalorder %v5197_v52, %v3836_v1 }
0x12b0   : > { %v7435_v33 = vsel %vm3814_vm1, %v7361_v24, %v3822_v58  ;;  %v4829_v21 = vsel %vm3849_vm2, 1.0, %v5010_v14  ;;  %v4830_v46 = vsel %vm3850_vm3, 1.0, %v5010_v14  ;;  %v284_v43 = vadd.f32 %v7502_v13, %v7499_v22 }
0x12b1   : > { %vm3851_vm4 = vcmp.le.s32.totalorder %v5207_v60, %v3837_v3  ;;  %v3838_v59 = vxor.u32 2147483648, %v7435_v33  ;;  %v3902_v44 = vadd.f32 %v4830_v46, %v4829_v21  ;;  %vm3852_vm5 = vcmp.le.s32.totalorder %v5210_v62, %v3837_v3 }
0x12b2   : > { %v4831_v61 = vsel %vm3851_vm4, 1.0, %v5010_v14  ;;  %v4832_v24 = vsel %vm3852_vm5, 1.0, %v5010_v14  ;;  %v298_v1 = vmax.f32 %v7451_v41, %v7454_v26  ;;  %v301_v58 = vmax.f32 %v7459_v49, %v7462_v57 }
0x12b3   : > { %3903 = vadd.xlane.f32.xlu1 %v3902_v44  ;;  %v3905_v2 = vadd.f32 %v4832_v24, %v4831_v61  ;;  %vm3853_vm6 = vcmp.le.s32.totalorder %v5216_v4, %v3838_v59  ;;  %vm3854_vm7 = vcmp.le.s32.totalorder %v5218_v5, %v3838_v59  ;;  %v304_v3 = vmax.f32 %v7467_v36, %v7470_v47 }
0x12b4   : > { %v4833_v28 = vsel %vm3853_vm6, 1.0, %v5010_v14  ;;  %v4834_v27 = vsel %vm3854_vm7, 1.0, %v5010_v14  ;;  %v307_v56 = vmax.f32 %v7475_v11, %v7478_v6  ;;  %v310_v21 = vmax.f32 %v7483_v0, %v7486_v16 }
0x12b5   : > { %3906 = vadd.xlane.f32.xlu0 %v3905_v2  ;;  %v3908_v54 = vadd.f32 %v4834_v27, %v4833_v28  ;;  %v313_v46 = vmax.f32 %v7491_v23, %v7494_v20  ;;  %v316_v59 = vmax.f32 %v7499_v22, %v7502_v13  ;;  %v3919_v44 = vor.u32 1, %v7378_v39 }
0x12b6   : > { %v3920_v28 = vor.u32 1, %v7388_v7 }
0x12b7   : > { %3909 = vadd.xlane.f32.xlu1 %v3908_v54 }
0x12b9   : > { %264 = vadd.xlane.f32.xlu0 %v263_v25 }
0x12bb   : > { %267 = vadd.xlane.f32.xlu1 %v266_v10 }
0x12bd   : > { %270 = vadd.xlane.f32.xlu0 %v269_v34  ;;  %v3921_v34 = vor.u32 1, %v7392_v15 }
0x12bf   : > { %273 = vadd.xlane.f32.xlu1 %v272_v18 }
0x12c1   : > { %276 = vadd.xlane.f32.xlu0 %v275_v38 }
0x12c3   : > { %279 = vadd.xlane.f32.xlu1 %v278_v53 }
0x12c5   : > { %282 = vadd.xlane.f32.xlu0 %v281_v42 }
0x12c7   : > { %285 = vadd.xlane.f32.xlu1 %v284_v43 }
0x12c9   : > { %296 = vmax.xlane.f32.xlu0 %v295_v63 }
0x12cb   : > { %299 = vmax.xlane.f32.xlu1 %v298_v1  ;;  %v3924_v1 = vor.u32 1, %v7424_v55 }
0x12cd   : > { %302 = vmax.xlane.f32.xlu0 %v301_v58 }
0x12cf   : > { %305 = vmax.xlane.f32.xlu1 %v304_v3 }
0x12d1   : > { %308 = vmax.xlane.f32.xlu0 %v307_v56 }
0x12d3   : > { %311 = vmax.xlane.f32.xlu1 %v310_v21 }
0x12d5   : > { %314 = vmax.xlane.f32.xlu0 %v313_v46 }
0x12d7   : > { %317 = vmax.xlane.f32.xlu1 %v316_v59 }
0x132d   : > { %v3889_v61 = vpop.xlane.xlu0 %3888 }
0x132e   : > { %vm3911_vm8 = vcmp.ge.f32.partialorder %v3889_v61, 128.0 }
0x132f   : > { %v3927_v24 = vsel %vm3911_vm8, %v7378_v39, %v3919_v44 }
0x1330   : > { %v3935_v2 = vxor.u32 2147483648, %v3927_v24 }
0x1332   : > { %vm3943_vm9 = vcmp.ge.s32.totalorder %v5144_v8, %v3935_v2  ;;  %vm3944_vm10 = vcmp.ge.s32.totalorder %v5146_v9, %v3935_v2  ;;  %v3892_v27 = vpop.xlane.xlu1 %3891 }
0x1333   : > { %v3959_v54 = vsel %vm3943_vm9, %v4925_v50, inf  ;;  %v3960_v25 = vsel %vm3944_vm10, %v4926_v19, inf  ;;  %vm3912_vm11 = vcmp.ge.f32.partialorder %v3892_v27, 128.0  ;;  %v3922_v19 = vor.u32 1, %v7406_v40 }
0x1334   : > { %v3975_v10 = vmin.f32 %v3959_v54, %v3960_v25  ;;  %v3928_v18 = vsel %vm3912_vm11, %v7388_v7, %v3920_v28  ;;  %v3895_v38 = vpop.xlane.xlu0 %3894 }
0x1335   : > { %v3936_v53 = vxor.u32 2147483648, %v3928_v18  ;;  %vm3913_vm12 = vcmp.ge.f32.partialorder %v3895_v38, 128.0 }
0x1336   : > { %3976 = vmin.xlane.f32.xlu0 %v3975_v10  ;;  %v3929_v39 = vsel %vm3913_vm12, %v7392_v15, %v3921_v34 }
0x1337   : > { %vm3945_vm13 = vcmp.ge.s32.totalorder %v5166_v29, %v3936_v53  ;;  %vm3946_vm14 = vcmp.ge.s32.totalorder %v5168_v30, %v3936_v53  ;;  %v3937_v8 = vxor.u32 2147483648, %v3929_v39  ;;  %v3923_v30 = vor.u32 1, %v7410_v37 }
0x1338   : > { %v3961_v9 = vsel %vm3945_vm13, %v7451_v41, inf  ;;  %v3962_v50 = vsel %vm3946_vm14, %v7454_v26, inf }
0x1339   : > { %vm3947_vm15 = vcmp.ge.s32.totalorder %v5151_v12, %v3937_v8  ;;  %vm3948_vm0 = vcmp.ge.s32.totalorder %v5156_v17, %v3937_v8  ;;  %v3978_v7 = vmin.f32 %v3961_v9, %v3962_v50  ;;  %v3898_v42 = vpop.xlane.xlu1 %3897 }
0x133a   : > { %v3963_v43 = vsel %vm3947_vm15, %v7459_v49, inf  ;;  %v3964_v15 = vsel %vm3948_vm0, %v7462_v57, inf  ;;  %vm3914_vm1 = vcmp.ge.f32.partialorder %v3898_v42, 128.0  ;;  %vm5013_vm0 = vmmov 0  }
0x133b   : > { %3979 = vmin.xlane.f32.xlu1 %v3978_v7  ;;  %v3981_v29 = vmin.f32 %v3963_v43, %v3964_v15  ;;  %v3930_v41 = vsel %vm3914_vm1, %v7406_v40, %v3922_v19  ;;  %v3901_v26 = vpop.xlane.xlu0 %3900  ;;  %4856 = vmatprep.mubr.msk.f32.mxu0 %vm5013_vm0, %v5010_v14  ;;  %vm3999_vm1 = vcmask 7168  }
0x133c   : > { %v3938_v63 = vxor.u32 2147483648, %v3930_v41  ;;  %vm3915_vm2 = vcmp.ge.f32.partialorder %v3901_v26, 128.0 }
0x133d   : > { %3982 = vmin.xlane.f32.xlu0 %v3981_v29  ;;  %v3931_v12 = vsel %vm3915_vm2, %v7410_v37, %v3923_v30  ;;  %vm4002_vm2 = vcmask 15360  }
0x133e   : > { %vm3949_vm3 = vcmp.ge.s32.totalorder %v5172_v31, %v3938_v63  ;;  %vm3950_vm4 = vcmp.ge.s32.totalorder %v5174_v32, %v3938_v63  ;;  %v3939_v17 = vxor.u32 2147483648, %v3931_v12  ;;  %v3925_v32 = vor.u32 1, %v7428_v35 }
0x133f   : > { %v3965_v49 = vsel %vm3949_vm3, %v7467_v36, inf  ;;  %v3966_v57 = vsel %vm3950_vm4, %v7470_v47, inf  ;;  %vm4005_vm3 = vcmask 23552   ;;  %vm4008_vm4 = vcmask 31744  }
0x1340   : > { %vm3951_vm5 = vcmp.ge.s32.totalorder %v5187_v45, %v3939_v17  ;;  %vm3952_vm6 = vcmp.ge.s32.totalorder %v5190_v48, %v3939_v17  ;;  %v3984_v40 = vmin.f32 %v3965_v49, %v3966_v57  ;;  %v3904_v58 = vpop.xlane.xlu1 %3903  ;;  %v3926_v45 = vor.u32 1, %v7435_v33 }
0x1341   : > { %v3967_v3 = vsel %vm3951_vm5, %v7475_v11, inf  ;;  %v3968_v37 = vsel %vm3952_vm6, %v7478_v6, inf  ;;  %vm3916_vm7 = vcmp.ge.f32.partialorder %v3904_v58, 128.0  ;;  %vm4011_vm5 = vcmask 39936  }
0x1342   : > { %3985 = vmin.xlane.f32.xlu1 %v3984_v40  ;;  %v3987_v31 = vmin.f32 %v3967_v3, %v3968_v37  ;;  %v3932_v36 = vsel %vm3916_vm7, %v7424_v55, %v3924_v1  ;;  %v3907_v47 = vpop.xlane.xlu0 %3906  ;;  %vm4014_vm6 = vcmask 48128   ;;  %vm4017_vm7 = vcmask 56320  }
0x1343   : > { %v3940_v56 = vxor.u32 2147483648, %v3932_v36  ;;  %vm3917_vm8 = vcmp.ge.f32.partialorder %v3907_v47, 128.0 }
0x1344   : > { %3988 = vmin.xlane.f32.xlu0 %v3987_v31  ;;  %v3933_v48 = vsel %vm3917_vm8, %v7428_v35, %v3925_v32  ;;  %v3910_v21 = vpop.xlane.xlu1 %3909  ;;  %vm4020_vm8 = vcmask 64512  }
0x1345   : > { %vm3953_vm9 = vcmp.ge.s32.totalorder %v5195_v51, %v3940_v56  ;;  %vm3954_vm10 = vcmp.ge.s32.totalorder %v5197_v52, %v3940_v56  ;;  %v3941_v11 = vxor.u32 2147483648, %v3933_v48  ;;  %vm3918_vm11 = vcmp.ge.f32.partialorder %v3910_v21, 128.0 }
0x1346   : > { %v3934_v6 = vsel %vm3918_vm11, %v7435_v33, %v3926_v45  ;;  %v3969_v46 = vsel %vm3953_vm9, %v7483_v0, inf  ;;  %v3970_v55 = vsel %vm3954_vm10, %v7486_v16, inf  ;;  %v5014_v16 = vmov 0  }
0x1347   : > { %vm3955_vm12 = vcmp.ge.s32.totalorder %v5207_v60, %v3941_v11  ;;  %vm3956_vm13 = vcmp.ge.s32.totalorder %v5210_v62, %v3941_v11  ;;  %v3942_v59 = vxor.u32 2147483648, %v3934_v6  ;;  %v3990_v44 = vmin.f32 %v3969_v46, %v3970_v55  ;;  %4915 = vset.pattern.permute.xlu0 %v5014_v16  ;;  %4916 = vset.pattern.permute.xlu1 %v5014_v16 }
0x1348   : > { %v3971_v35 = vsel %vm3955_vm12, %v7491_v23, inf  ;;  %v3972_v51 = vsel %vm3956_vm13, %v7494_v20, inf  ;;  %v5012_v62 = vmov 0.0|0.0   ;;  %v268_v23 = vpop.xlane.xlu1 %267  ;;  %vm4023_vm9 = vcmask 72704  }
0x1349   : > { %vm3957_vm14 = vcmp.ge.s32.totalorder %v5216_v4, %v3942_v59  ;;  %vm3958_vm15 = vcmp.ge.s32.totalorder %v5218_v5, %v3942_v59  ;;  %3991 = vmin.xlane.f32.xlu1 %v3990_v44  ;;  %v3993_v52 = vmin.f32 %v3971_v35, %v3972_v51  ;;  %4864 = vmatprep.subr.bf16.mxu0 %v5012_v62  ;;  %v4033_v4 = vld [vmem:[%s7611_s2] sm:$0xf]  ;;  %v265_v5 = vpop.xlane.xlu0 %264  ;;  %v288_v34 = vmul.f32 0.00390625, %v268_v23 }
0x134a   : > { %v3973_v33 = vsel %vm3957_vm14, %v7499_v22, inf  ;;  %v3974_v0 = vsel %vm3958_vm15, %v7502_v13, inf  ;;  %v287_v18 = vmul.f32 0.00390625, %v265_v5  ;;  %vm4026_vm10 = vcmask 80896   ;;  %v4032_v35 = vld [vmem:[%s7610_s1] sm:$0xf] }
0x134b   : > { %3994 = vmin.xlane.f32.xlu0 %v3993_v52  ;;  %v3996_v60 = vmin.f32 %v3973_v33, %v3974_v0  ;;  %vm4029_vm11 = vcmask 89088   ;;  %vm4039_vm12 = vcmask 130048   ;;  %v4114_v51 = vld [vmem:[%s7612_s3] sm:$0xff]  ;;  %v4117_v33 = vld [vmem:[%s7613_s4 + $0x8] sm:$0xff]  ;;  %vm4134_vm13 = vcmask 1043456  }
0x134c   : > { %v274_v22 = vpop.xlane.xlu1 %273  ;;  %4861 = vmatprep.mubr.msk.f32.mxu1 %vm4008_vm4, %v4114_v51  ;;  %v4116_v52 = vld [vmem:[%s7613_s4] sm:$0xff]  ;;  %v4115_v5 = vld [vmem:[%s7612_s3 + $0x8] sm:$0xff] }
0x134d   : > { %3997 = vmin.xlane.f32.xlu1 %v3996_v60  ;;  %v271_v20 = vpop.xlane.xlu0 %270  ;;  %v290_v38 = vmul.f32 0.00390625, %v274_v22 }
0x134e   : > { %v289_v53 = vmul.f32 0.00390625, %v271_v20 }
0x134f   : > { %v4001_v50 = vsel %vm3999_vm1, %v288_v34, %v290_v38 }
0x1350   : > { %v280_v61 = vpop.xlane.xlu1 %279  ;;  %v4000_v7 = vsel %vm3999_vm1, %v287_v18, %v289_v53 }
0x1351   : > { %v277_v13 = vpop.xlane.xlu0 %276  ;;  %v292_v8 = vmul.f32 0.00390625, %v280_v61 }
0x1352   : > { %v291_v9 = vmul.f32 0.00390625, %v277_v13 }
0x1353   : > { %v4004_v29 = vsel %vm4002_vm2, %v4001_v50, %v292_v8 }
0x1354   : > { %v286_v2 = vpop.xlane.xlu1 %285  ;;  %v4003_v30 = vsel %vm4002_vm2, %v4000_v7, %v291_v9 }
0x1355   : > { %v283_v24 = vpop.xlane.xlu0 %282  ;;  %v294_v43 = vmul.f32 0.00390625, %v286_v2 }
0x1356   : > { %v293_v15 = vmul.f32 0.00390625, %v283_v24 }
0x1357   : > { %v4007_v26 = vsel %vm4005_vm3, %v4004_v29, %v294_v43 }
0x1358   : > { %v300_v27 = vpop.xlane.xlu1 %299  ;;  %v4006_v63 = vsel %vm4005_vm3, %v4003_v30, %v293_v15 }
0x1359   : > { %v297_v28 = vpop.xlane.xlu0 %296  ;;  %v4010_v17 = vsel %vm4008_vm4, %v4007_v26, %v300_v27 }
0x135a   : > { %v4009_v49 = vsel %vm4008_vm4, %v4006_v63, %v297_v28 }
0x135c   : > { %v306_v14 = vpop.xlane.xlu1 %305 }
0x135d   : > { %v303_v54 = vpop.xlane.xlu0 %302  ;;  %v4013_v40 = vsel %vm4011_vm5, %v4010_v17, %v306_v14 }
0x135e   : > { %v4012_v1 = vsel %vm4011_vm5, %v4009_v49, %v303_v54  ;;  %4120 = vperm.xlu1 %4916, %v4116_v52  }
0x1360   : > { %v312_v10 = vpop.xlane.xlu1 %311 }
0x1361   : > { %4036 = vperm.xlu0 %4915, %v4033_v4   ;;  %v309_v25 = vpop.xlane.xlu0 %308  ;;  %v4016_v3 = vsel %vm4014_vm6, %v4013_v40, %v312_v10 }
0x1362   : > { %v4015_v37 = vsel %vm4014_vm6, %v4012_v1, %v309_v25  ;;  %4125 = vperm.xlu1 %4916, %v4117_v33  }
0x1364   : > { %v318_v19 = vpop.xlane.xlu1 %317 }
0x1365   : > { %v315_v39 = vpop.xlane.xlu0 %314  ;;  %v4019_v32 = vsel %vm4017_vm7, %v4016_v3, %v318_v19 }
0x1366   : > { %v4018_v36 = vsel %vm4017_vm7, %v4015_v37, %v315_v39 }
0x13c3   : > { %v3977_v42 = vpop.xlane.xlu0 %3976 }
0x13c4   : > { %v4021_v47 = vsel %vm4020_vm8, %v4018_v36, %v3977_v42 }
0x13c8   : > { %v3980_v41 = vpop.xlane.xlu1 %3979 }
0x13c9   : > { %v4022_v56 = vsel %vm4020_vm8, %v4019_v32, %v3980_v41 }
0x13ca   : > { %v3983_v12 = vpop.xlane.xlu0 %3982 }
0x13cb   : > { %v4024_v48 = vsel %vm4023_vm9, %v4021_v47, %v3983_v12 }
0x13cf   : > { %v3986_v57 = vpop.xlane.xlu1 %3985 }
0x13d0   : > { %v4025_v21 = vsel %vm4023_vm9, %v4022_v56, %v3986_v57 }
0x13d1   : > { %v3989_v58 = vpop.xlane.xlu0 %3988 }
0x13d2   : > { %v4027_v11 = vsel %vm4026_vm10, %v4024_v48, %v3989_v58 }
0x13d6   : > { %v3992_v31 = vpop.xlane.xlu1 %3991 }
0x13d7   : > { %v4028_v6 = vsel %vm4026_vm10, %v4025_v21, %v3992_v31 }
0x13d8   : > { %v3995_v45 = vpop.xlane.xlu0 %3994 }
0x13d9   : > { %v4030_v55 = vsel %vm4029_vm11, %v4027_v11, %v3995_v45 }
0x13da   : > { %v3998_v46 = vpop.xlane.xlu1 %3997 }
0x13db   : > { %v4031_v59 = vsel %vm4029_vm11, %v4028_v6, %v3998_v46 }
0x13dc   : > { %v4865_v44 = vpack.c.bf16 %v4031_v59, %v4030_v55 }
0x13de   : > { %4866 = vmatpush3.bf16.msra.mxu0 %v4865_v44  ;;  %v4121_v23 = vpop.permute.xlu1 %4120 }
0x13e0   : > { %v4037_v0 = vpop.permute.xlu0 %4036 }
0x13e1   : > { %4857 = vmatmul.mubr.msk.f32.vlgmr.msra.gmra.mrb[0].mxu0 %vm4039_vm12, %v4032_v35 }
0x13e2   : > { %v4126_v20 = vpop.permute.xlu1 %4125 }
0x14b4   : > { %v4109_v60 = vpop.f32.mrb[0].mxu0 }
0x14b5   : > { %v4110_v62 = vadd.f32 %v4109_v60, %v4037_v0  ;;  %v4858_v4 = vpop.f32.mrb[1].mxu0 }
0x14b7   : > { %v4113_v16 = vmax.f32 %v4110_v62, 0.0 }
0x14b9   : > { %4859 = vmatprep.subr.msk.mxu1 %vm4134_vm13, %v4113_v16 }
0x14ba   : > { %4860 = vmatpush3.msk.msra.mxu1 %vm4134_vm13, %v4113_v16 }
0x14bb   : > { %4862 = vmatmul.mubr.msk.f32.vlgmr.msra.gmra.mrb[0].mxu1 %vm4008_vm4, %v4115_v5 }
0x158e   : > { %v4863_v22 = vpop.f32.mrb[0].mxu1 }
0x158f   : > { %v4210_v13 = vadd.f32 %v4863_v22, %v4126_v20  ;;  %v4204_v61 = vpop.f32.mrb[1].mxu1 }
0x1590   : > { %v4205_v24 = vadd.f32 %v4204_v61, %v4121_v23 }
0x1591   : > { %v4840_v2 = vmul.f32 -1.442695, %v4210_v13 }
0x1592   : > { %v4839_v28 = vmul.f32 -1.442695, %v4205_v24 }
0x1593   : > { %4917 = vpow2.f32 %v4840_v2 }
0x1594   : > { %4919 = vpow2.f32 %v4839_v28 }
0x159d   : > { %v4918_v27 = vpop.eup %4917 }
0x159e   : > { %v4920_v54 = vpop.eup %4919  ;;  %v4220_v14 = vadd.f32 1.0, %v4918_v27 }
0x159f   : > { %v4219_v25 = vadd.f32 1.0, %v4920_v54 }
0x15a0   : > { %4921 = vrcp.f32 %v4220_v14 }
0x15a1   : > { %4923 = vrcp.f32 %v4219_v25 }
0x15aa   : > { %v4922_v10 = vpop.eup %4921 }
0x15ab   : > { %4229 = vrot.lane.b32.xlu1 %v4922_v10, %s5015_s28  ;;  %v4924_v34 = vpop.eup %4923 }
0x15af   : > { %4227 = vrot.lane.b32.xlu1 %v4924_v34, %s5015_s28 }
0x15b3   : > { %4235 = vrot.lane.b32.xlu1 %v4924_v34, %s5016_s29 }
0x15b7   : > { %4237 = vrot.lane.b32.xlu1 %v4922_v10, %s5016_s29 }
0x161d   : > { %v4230_v18 = vpop.permute.xlu1 %4229 }
0x161e   : > { %v4234_v9 = vadd.f32 %v4922_v10, %v4230_v18 }
0x1621   : > { %v4228_v38 = vpop.permute.xlu1 %4227 }
0x1622   : > { %v4233_v53 = vadd.f32 %v4924_v34, %v4228_v38 }
0x1625   : > { %v4236_v39 = vpop.permute.xlu1 %4235 }
0x1626   : > { %v4241_v8 = vadd.f32 %v4236_v39, %v4233_v53 }
0x1628   : > { %4243 = vst.msk [vmem:[%s246_s9] sm:$0xff] %vm4008_vm4, %v4241_v8 }
0x1629   : > { %v4238_v50 = vpop.permute.xlu1 %4237 }
0x162a   : > { %v4242_v7 = vadd.f32 %v4238_v50, %v4234_v9 }
0x162c   : > { %4244 = vst.msk [vmem:[%s246_s9 + $0x8] sm:$0xff] %vm4008_vm4, %v4242_v7 }
0x162d PF: > { %p15_p8 = scmp.ge.s32.totalorder %s5069_s23, 6   ;;  %s7618_s18 = smov %s4997_s19 }
0x162e   : > { %s7619_s19 = smov %s5001_s20  ;;  %s7620_s20 = smov %s5079_s26 }
0x162f   : > { %s7621_s21 = smov %s5069_s23  ;;  %17 = sbr.rel (!%p15_p8) target bundleno = 3 (0x3), region = 80 }
0x1636   :  { %4266 = vsyncpa [#allocation3], 1 }
0x1637   :  { %4268 = vsyncpa [#allocation3 + $0x1], 1 }

</bundles_post_ra>
